<compile_context>
chip_gen: v7x
topology: tpu7x:2x2x1
jax: 0.10.0
libtpu: 0.0.40
codegen_flags: <defaults>
</compile_context>

<pallas_src>
import functools

import jax
import jax.numpy as jnp
import numpy as np
from jax.experimental import pallas as pl
from jax.experimental.pallas import tpu as pltpu


def _ge2e_loss_kernel(w_ref, b_ref, v_ref, o_ref, *, N, M):
    """One tile of Bt independent GE2E loss instances per grid step.

    w_ref, b_ref : (1, 1) f32 in SMEM       -- learnable scale / bias
    v_ref        : (N, M, D, Bt) in VMEM    -- batch on lanes, embedding dim on sublanes
    o_ref        : (1, Bt) f32 in VMEM      -- per-instance loss (lane-dense)
    """
    eps = 1e-8  # F.cosine_similarity default eps
    w = w_ref[0, 0]
    b = b_ref[0, 0]

    V4 = v_ref[...].astype(jnp.float32)                       # (N, M, D, Bt)
    _, _, D, Bt = V4.shape
    NM = N * M
    V = V4.reshape(NM, D, Bt)                                  # outer-dim merge (free)

    # ---- unit-normalized utterance vectors (clamped like torch cosine_similarity) ----
    row_ss = jnp.sum(V * V, axis=1, keepdims=True)             # (NM, 1, Bt) sublane reduce
    v_hat = V * jax.lax.rsqrt(jnp.maximum(row_ss, eps * eps))  # (NM, D, Bt)

    # ---- per-speaker sums; cosine is scale-invariant so fold 1/M into the eps clamp ----
    s_spk = jnp.sum(V4, axis=1)                                # (N, D, Bt) elementwise adds
    c_ss = jnp.sum(s_spk * s_spk, axis=1, keepdims=True)       # (N, 1, Bt)
    c_hat = s_spk * jax.lax.rsqrt(jnp.maximum(c_ss, (M * eps) ** 2))       # (N, D, Bt)

    # ---- leave-one-out centroids (1/(M-1) also folded into the clamp) ----
    d = (s_spk[:, None, :, :] - V4).reshape(NM, D, Bt)         # (NM, D, Bt)
    d_ss = jnp.sum(d * d, axis=1, keepdims=True)               # (NM, 1, Bt)
    s_diag = jnp.sum(d * v_hat, axis=1, keepdims=True) * jax.lax.rsqrt(
        jnp.maximum(d_ss, ((M - 1) * eps) ** 2))               # (NM, 1, Bt)

    # ---- all N x (N*M) cross cosine similarities in one stacked broadcast + reduce ----
    cross = jnp.sum(c_hat[:, None, :, :] * v_hat[None, :, :, :],
                    axis=2, keepdims=True)                     # (N, NM, 1, Bt)

    # ---- replace own-speaker columns with the leave-one-out similarity ----
    spk_row = jax.lax.broadcasted_iota(jnp.int32, (N, NM, 1, Bt), 0)
    col = jax.lax.broadcasted_iota(jnp.int32, (N, NM, 1, Bt), 1)
    own = jnp.logical_and(col >= spk_row * M, col < (spk_row + 1) * M)
    s_full = jnp.where(own, s_diag[None], cross)               # (N, NM, 1, Bt)

    # ---- max-stabilized logsumexp over the N centroid rows ----
    logits = w * s_full + b                                    # (N, NM, 1, Bt)
    mx = jnp.max(logits, axis=0)                               # (NM, 1, Bt)
    se = jnp.sum(jnp.exp(logits - mx[None]), axis=0)           # (NM, 1, Bt)
    lse = mx + jnp.log(se)

    L = lse - (w * s_diag + b)                                 # (NM, 1, Bt)
    o_ref[...] = jnp.sum(L, axis=0)                            # (1, Bt) lane-dense store


def _round_up(x, m):
    return (x + m - 1) // m * m


def speaker_encoder_loss_batched(speaker_vectors, N, M, w=10.0, b=-5.0, block_b=256):
    """speaker_vectors: (B, N*M, D) -> (B,) independent GE2E losses in one pallas_call.

    block_b is the per-grid-step batch tile; 256 keeps the working set a few MiB so it
    fits comfortably in v7x's 64 MiB VMEM (and trivially in v5e/v6e's 128 MiB).
    """
    B, NM, D = speaker_vectors.shape
    assert NM == N * M and M > 1

    # Batch tile on the lane axis: either full-extent (waives the 128-divisibility rule)
    # or a multiple of 128. Prefer an even grid length so both v7x TensorCores get work.
    if B <= block_b:
        Bt = _round_up(B, 8)
        Bp = Bt
    else:
        Bt = _round_up(block_b, 128)
        Bp = _round_up(B, Bt)
    grid = (Bp // Bt,)

    v = speaker_vectors
    if Bp != B:
        # Zero padding: padded instances produce a finite dummy loss (N*M*log N) and are
        # sliced away below, so they never contribute to the returned values.
        v = jnp.pad(v, ((0, Bp - B), (0, 0), (0, 0)))
    # Layout plumbing (wrapper-side): batch -> lanes, D -> sublanes, (speaker, utt) outer.
    v_t = jnp.transpose(v, (1, 2, 0)).reshape(N, M, D, Bp)     # native dtype, no astype

    w_arr = jnp.full((1, 1), w, jnp.float32)
    b_arr = jnp.full((1, 1), b, jnp.float32)

    out = pl.pallas_call(
        functools.partial(_ge2e_loss_kernel, N=N, M=M),
        out_shape=jax.ShapeDtypeStruct((1, Bp), jnp.float32),
        grid=grid,
        in_specs=[
            pl.BlockSpec((1, 1), lambda i: (0, 0),
                         memory_space=pltpu.MemorySpace.SMEM),     # w
            pl.BlockSpec((1, 1), lambda i: (0, 0),
                         memory_space=pltpu.MemorySpace.SMEM),     # b
            pl.BlockSpec((N, M, D, Bt), lambda i: (0, 0, 0, i)),   # Bt loss instances / step
        ],
        out_specs=pl.BlockSpec((1, Bt), lambda i: (0, i)),         # lane-dense loss row
        compiler_params=pltpu.CompilerParams(
            dimension_semantics=("parallel",)),                    # split batch on v7x TCs
    )(w_arr, b_arr, v_t)
    return out[0, :B]


def speaker_encoder_loss(speaker_vectors, N, M, w=10.0, b=-5.0):
    """Module-equivalent forward: one (N*M, D) batch of speaker vectors -> scalar loss."""
    return speaker_encoder_loss_batched(speaker_vectors[None], N, M, w, b)[0]


def _reference_loss(V, N, M, w=10.0, b=-5.0):
    """Pure-JAX transcription of the PyTorch forward (loop form) for validation."""
    eps = 1e-8

    def cos(a, c):
        na = jnp.maximum(jnp.sqrt(jnp.sum(a * a, axis=-1)), eps)
        nc = jnp.maximum(jnp.sqrt(jnp.sum(c * c, axis=-1)), eps)
        return jnp.sum(a * c, axis=-1) / (na * nc)

    C, C_min = [], []
    for n in range(N):
        block = V[n * M:(n + 1) * M]
        s = block.sum(axis=0)
        C.append(s / M)
        for m in range(M):
            C_min.append((s - block[m]) / (M - 1))
    C = jnp.stack(C)
    C_min = jnp.stack(C_min)
    S_diag = cos(C_min, V)
    S = jnp.zeros((N, N * M), jnp.float32)
    for n in range(N):
        row = cos(C[n][None, :], V)
        row = row.at[n * M:(n + 1) * M].set(S_diag[n * M:(n + 1) * M])
        S = S.at[n].set(row)
    L = -(w * S_diag + b) + jnp.log(jnp.sum(jnp.exp(w * S + b), axis=0))
    return L.sum()


if __name__ == "__main__":
    N, M, D = 4, 4, 32           # 4 speakers, 4 utterances each, 32-dim embeddings
    B = 6                        # batch of independent loss instances (exercises padding)
    init_w, init_b = 10.0, -5.0  # nn.Parameter initial values from __init__

    key = jax.random.PRNGKey(0)
    batch = jax.random.normal(key, (B, N * M, D), dtype=jnp.float32)

    # Batched path: one pallas_call, batch tiled on the lane axis, lane-dense loss output.
    losses = jax.block_until_ready(
        speaker_encoder_loss_batched(batch, N, M, init_w, init_b))
    refs = np.stack([np.asarray(_reference_loss(batch[i], N, M, init_w, init_b))
                     for i in range(B)])
    np.testing.assert_allclose(np.asarray(losses), refs, rtol=1e-4, atol=1e-4)

    # Single-instance path (exact module semantics: scalar loss for one batch).
    loss0 = jax.block_until_ready(speaker_encoder_loss(batch[0], N, M, init_w, init_b))
    np.testing.assert_allclose(np.asarray(loss0), refs[0], rtol=1e-4, atol=1e-4)

    print("KERNEL_OK")
</pallas_src>

<mosaic_0001>
module attributes {stable_mosaic.version = 11 : i64} {
  func.func @_ge2e_loss_kernel(%arg0: i32, %arg1: memref<1x1xf32, #tpu.memory_space<smem>>, %arg2: memref<1x1xf32, #tpu.memory_space<smem>>, %arg3: memref<4x4x32x8xf32, #tpu.memory_space<vmem>>, %arg4: memref<1x8xf32, #tpu.memory_space<vmem>>) attributes {dimension_semantics = [#tpu.dimension_semantics<parallel>], iteration_bounds = array<i64: 1>, scalar_prefetch = 0 : i64, scratch_operands = 0 : i64, tpu.core_type = #tpu.core_type<tc>, window_params = [{transform_indices = @transform_0, window_bounds = array<i64: 1, 1>}, {transform_indices = @transform_1, window_bounds = array<i64: 1, 1>}, {transform_indices = @transform_2, window_bounds = array<i64: 4, 4, 32, 8>}, {transform_indices = @transform_3, window_bounds = array<i64: 1, 8>}]} {
    %c0 = arith.constant 0 : index
    %c0_0 = arith.constant 0 : index
    %0 = memref.load %arg1[%c0, %c0_0] : memref<1x1xf32, #tpu.memory_space<smem>>
    %c0_1 = arith.constant 0 : index
    %c0_2 = arith.constant 0 : index
    %1 = memref.load %arg2[%c0_1, %c0_2] : memref<1x1xf32, #tpu.memory_space<smem>>
    %c0_3 = arith.constant 0 : index
    %c0_4 = arith.constant 0 : index
    %c0_5 = arith.constant 0 : index
    %c0_6 = arith.constant 0 : index
    %2 = vector.load %arg3[%c0_3, %c0_4, %c0_5, %c0_6] : memref<4x4x32x8xf32, #tpu.memory_space<vmem>>, vector<4x4x32x8xf32>
    %3 = vector.shape_cast %2 : vector<4x4x32x8xf32> to vector<16x32x8xf32>
    %4 = arith.mulf %3, %3 : vector<16x32x8xf32>
    %cst = arith.constant dense<0.000000e+00> : vector<16x8xf32>
    %5 = vector.multi_reduction <add>, %4, %cst [1] : vector<16x32x8xf32> to vector<16x8xf32>
    %6 = vector.shape_cast %5 : vector<16x8xf32> to vector<16x1x8xf32>
    %cst_7 = arith.constant 1.000000e-16 : f32
    %7 = vector.broadcast %cst_7 : f32 to vector<16x1x8xf32>
    %8 = arith.maximumf %6, %7 : vector<16x1x8xf32>
    %9 = math.rsqrt %8 : vector<16x1x8xf32>
    %10 = vector.broadcast %9 : vector<16x1x8xf32> to vector<16x32x8xf32>
    %11 = arith.mulf %3, %10 : vector<16x32x8xf32>
    %cst_8 = arith.constant dense<0.000000e+00> : vector<4x32x8xf32>
    %12 = vector.multi_reduction <add>, %2, %cst_8 [1] : vector<4x4x32x8xf32> to vector<4x32x8xf32>
    %13 = arith.mulf %12, %12 : vector<4x32x8xf32>
    %cst_9 = arith.constant dense<0.000000e+00> : vector<4x8xf32>
    %14 = vector.multi_reduction <add>, %13, %cst_9 [1] : vector<4x32x8xf32> to vector<4x8xf32>
    %15 = vector.shape_cast %14 : vector<4x8xf32> to vector<4x1x8xf32>
    %cst_10 = arith.constant 1.600000e-15 : f32
    %16 = vector.broadcast %cst_10 : f32 to vector<4x1x8xf32>
    %17 = arith.maximumf %15, %16 : vector<4x1x8xf32>
    %18 = math.rsqrt %17 : vector<4x1x8xf32>
    %19 = vector.broadcast %18 : vector<4x1x8xf32> to vector<4x32x8xf32>
    %20 = arith.mulf %12, %19 : vector<4x32x8xf32>
    %21 = vector.shape_cast %12 : vector<4x32x8xf32> to vector<4x1x32x8xf32>
    %22 = vector.broadcast %21 : vector<4x1x32x8xf32> to vector<4x4x32x8xf32>
    %23 = arith.subf %22, %2 : vector<4x4x32x8xf32>
    %24 = vector.shape_cast %23 : vector<4x4x32x8xf32> to vector<16x32x8xf32>
    %25 = arith.mulf %24, %24 : vector<16x32x8xf32>
    %cst_11 = arith.constant dense<0.000000e+00> : vector<16x8xf32>
    %26 = vector.multi_reduction <add>, %25, %cst_11 [1] : vector<16x32x8xf32> to vector<16x8xf32>
    %27 = vector.shape_cast %26 : vector<16x8xf32> to vector<16x1x8xf32>
    %28 = arith.mulf %24, %11 : vector<16x32x8xf32>
    %cst_12 = arith.constant dense<0.000000e+00> : vector<16x8xf32>
    %29 = vector.multi_reduction <add>, %28, %cst_12 [1] : vector<16x32x8xf32> to vector<16x8xf32>
    %30 = vector.shape_cast %29 : vector<16x8xf32> to vector<16x1x8xf32>
    %cst_13 = arith.constant 9.000000e-16 : f32
    %31 = vector.broadcast %cst_13 : f32 to vector<16x1x8xf32>
    %32 = arith.maximumf %27, %31 : vector<16x1x8xf32>
    %33 = math.rsqrt %32 : vector<16x1x8xf32>
    %34 = arith.mulf %30, %33 : vector<16x1x8xf32>
    %35 = vector.shape_cast %20 : vector<4x32x8xf32> to vector<4x1x32x8xf32>
    %36 = vector.shape_cast %11 : vector<16x32x8xf32> to vector<1x16x32x8xf32>
    %37 = vector.broadcast %35 : vector<4x1x32x8xf32> to vector<4x16x32x8xf32>
    %38 = vector.broadcast %36 : vector<1x16x32x8xf32> to vector<4x16x32x8xf32>
    %39 = arith.mulf %37, %38 : vector<4x16x32x8xf32>
    %cst_14 = arith.constant dense<0.000000e+00> : vector<4x16x8xf32>
    %40 = vector.multi_reduction <add>, %39, %cst_14 [2] : vector<4x16x32x8xf32> to vector<4x16x8xf32>
    %41 = vector.shape_cast %40 : vector<4x16x8xf32> to vector<4x16x1x8xf32>
    %42 = tpu.iota {dimensions = array<i32: 0>} : vector<4x16x1x8xi32>
    %43 = tpu.iota {dimensions = array<i32: 1>} : vector<4x16x1x8xi32>
    %c4_i32 = arith.constant 4 : i32
    %44 = vector.broadcast %c4_i32 : i32 to vector<4x16x1x8xi32>
    %45 = arith.muli %42, %44 : vector<4x16x1x8xi32>
    %46 = arith.cmpi sge, %43, %45 : vector<4x16x1x8xi32>
    %c1_i32 = arith.constant 1 : i32
    %47 = vector.broadcast %c1_i32 : i32 to vector<4x16x1x8xi32>
    %48 = arith.addi %42, %47 : vector<4x16x1x8xi32>
    %c4_i32_15 = arith.constant 4 : i32
    %49 = vector.broadcast %c4_i32_15 : i32 to vector<4x16x1x8xi32>
    %50 = arith.muli %48, %49 : vector<4x16x1x8xi32>
    %51 = arith.cmpi slt, %43, %50 : vector<4x16x1x8xi32>
    %52 = arith.andi %46, %51 : vector<4x16x1x8xi1>
    %53 = vector.shape_cast %34 : vector<16x1x8xf32> to vector<1x16x1x8xf32>
    %54 = vector.shape_cast %53 : vector<1x16x1x8xf32> to vector<1x16x1x8xf32>
    %55 = vector.broadcast %54 : vector<1x16x1x8xf32> to vector<4x16x1x8xf32>
    %56 = arith.select %52, %55, %41 : vector<4x16x1x8xi1>, vector<4x16x1x8xf32>
    %57 = vector.broadcast %0 : f32 to vector<4x16x1x8xf32>
    %58 = arith.mulf %57, %56 : vector<4x16x1x8xf32>
    %59 = vector.broadcast %1 : f32 to vector<4x16x1x8xf32>
    %60 = arith.addf %58, %59 : vector<4x16x1x8xf32>
    %cst_16 = arith.constant dense<0xFF800000> : vector<16x1x8xf32>
    %61 = vector.multi_reduction <maximumf>, %60, %cst_16 [0] : vector<4x16x1x8xf32> to vector<16x1x8xf32>
    %62 = vector.shape_cast %61 : vector<16x1x8xf32> to vector<1x16x1x8xf32>
    %63 = vector.broadcast %62 : vector<1x16x1x8xf32> to vector<4x16x1x8xf32>
    %64 = arith.subf %60, %63 : vector<4x16x1x8xf32>
    %65 = math.exp %64 : vector<4x16x1x8xf32>
    %cst_17 = arith.constant dense<0.000000e+00> : vector<16x1x8xf32>
    %66 = vector.multi_reduction <add>, %65, %cst_17 [0] : vector<4x16x1x8xf32> to vector<16x1x8xf32>
    %67 = math.log %66 : vector<16x1x8xf32>
    %68 = arith.addf %61, %67 : vector<16x1x8xf32>
    %69 = vector.broadcast %0 : f32 to vector<16x1x8xf32>
    %70 = arith.mulf %69, %34 : vector<16x1x8xf32>
    %71 = vector.broadcast %1 : f32 to vector<16x1x8xf32>
    %72 = arith.addf %70, %71 : vector<16x1x8xf32>
    %73 = arith.subf %68, %72 : vector<16x1x8xf32>
    %cst_18 = arith.constant dense<0.000000e+00> : vector<1x8xf32>
    %74 = vector.multi_reduction <add>, %73, %cst_18 [0] : vector<16x1x8xf32> to vector<1x8xf32>
    %c0_19 = arith.constant 0 : index
    %c0_20 = arith.constant 0 : index
    %75 = vector.load %arg4[%c0_19, %c0_20] : memref<1x8xf32, #tpu.memory_space<vmem>>, vector<1x8xf32>
    tpu.vector_store %arg4[%c0_19, %c0_20], %74 {strides = array<i32>} : memref<1x8xf32, #tpu.memory_space<vmem>>, vector<1x8xf32>,
    return
  }
  func.func @transform_0(%arg0: i32) -> (i32, i32) {
    %c0_i32 = arith.constant 0 : i32
    %c0_i32_0 = arith.constant 0 : i32
    %c0_i32_1 = arith.constant 0 : i32
    return %c0_i32, %c0_i32_0 : i32, i32
  }
  func.func @transform_1(%arg0: i32) -> (i32, i32) {
    %c0_i32 = arith.constant 0 : i32
    %c0_i32_0 = arith.constant 0 : i32
    %c0_i32_1 = arith.constant 0 : i32
    return %c0_i32, %c0_i32_0 : i32, i32
  }
  func.func @transform_2(%arg0: i32) -> (i32, i32, i32, i32) {
    %c0_i32 = arith.constant 0 : i32
    %c0_i32_0 = arith.constant 0 : i32
    %c0_i32_1 = arith.constant 0 : i32
    %c0_i32_2 = arith.constant 0 : i32
    return %c0_i32, %c0_i32_0, %c0_i32_1, %arg0 : i32, i32, i32, i32
  }
  func.func @transform_3(%arg0: i32) -> (i32, i32) {
    %c0_i32 = arith.constant 0 : i32
    %c0_i32_0 = arith.constant 0 : i32
    return %c0_i32, %arg0 : i32, i32
  }
}

</mosaic_0001>

<bundles_post_ra>
// kernel: tpu_custom_call.1
= control target key start
LH: loop header
LB: loop body
LE: loop exit
PB: predicated region body
PF: predicated region fallthrough
CT: control target
= control target key end

     0   :  { %10 = vsyncpa [#allocation5], 0  ;;  %vm147_vm0 = vcmask 64512   ;;  %vm3137_vm1 = vcmask 57344   ;;  %s8498_s0 = inlined_call_operand.<no memory space> [shape: f32[1,1], index: 0, kind: input, shape index: {}]   ;;  %s8499_s1 = inlined_call_operand.<no memory space> [shape: f32[1,1], index: 1, kind: input, shape index: {}]   ;;  %s8500_s2 = inlined_call_operand.vmem [shape: f32[4,4,32,8], index: 2, kind: input, shape index: {}]   ;;  %s8501_s3 = inlined_call_operand.hbm [shape: f32[1,8], index: 3, kind: output, shape index: {}]  }
   0x1   :  { %v3498_v0 = vld [vmem:[%s8500_s2] sm:$0xff]  ;;  %v3503_v1 = vld [vmem:[%s8500_s2 + $0x8] sm:$0xff]  ;;  %v3512_v4 = vld [vmem:[%s8500_s2 + $0x10] sm:$0xff] }
   0x2   :  { %8871 = vst [vmem:[#allocation7_spill] sm:$0xff] %v3498_v0  ;;  %8872 = vst [vmem:[#allocation8_spill] sm:$0xff] %v3503_v1  ;;  %v83_v2 = vmul.f32 %v3498_v0, %v3498_v0  ;;  %v84_v3 = vmul.f32 %v3503_v1, %v3503_v1  ;;  %v85_v5 = vmul.f32 %v3512_v4, %v3512_v4  ;;  %v3521_v8 = vld [vmem:[%s8500_s2 + $0x18] sm:$0xff]  ;;  %v3526_v9 = vld [vmem:[%s8500_s2 + $0x20] sm:$0xff]  ;;  %v3578_v25 = vsel %vm147_vm0, %v3498_v0, 0.0 }
   0x3   :  { %8873 = vst [vmem:[#allocation9_spill] sm:$0xff] %v3512_v4  ;;  %8874 = vst [vmem:[#allocation10_spill] sm:$0xff] %v3521_v8  ;;  %v3531_v10 = vld [vmem:[%s8500_s2 + $0x28] sm:$0xff]  ;;  %v86_v12 = vmul.f32 %v3521_v8, %v3521_v8  ;;  %v3539_v14 = vld [vmem:[%s8500_s2 + $0x30] sm:$0xff]  ;;  %v87_v16 = vmul.f32 %v3526_v9, %v3526_v9  ;;  %v3601_v31 = vsel %vm147_vm0, %v3526_v9, 0.0  ;;  %v3605_v32 = vsel %vm147_vm0, %v3503_v1, 0.0 }
   0x4   :  { %v148_v6 = vsel %vm147_vm0, %v83_v2, 0.0  ;;  %v149_v7 = vsel %vm147_vm0, %v84_v3, 0.0  ;;  %8875 = vst [vmem:[#allocation11_spill] sm:$0xff] %v3526_v9  ;;  %v151_v13 = vsel %vm147_vm0, %v85_v5, 0.0  ;;  %8876 = vst [vmem:[#allocation12_spill] sm:$0xff] %v3539_v14  ;;  %v3544_v15 = vld [vmem:[%s8500_s2 + $0x38] sm:$0xff]  ;;  %v88_v17 = vmul.f32 %v3531_v10, %v3531_v10 }
   0x5   :  { %v150_v11 = vadd.f32 %v149_v7, %v148_v6  ;;  %8877 = vst [vmem:[#allocation13_spill] sm:$0xff] %v3544_v15  ;;  %v3553_v18 = vld [vmem:[%s8500_s2 + $0x40] sm:$0xff]  ;;  %v3558_v19 = vld [vmem:[%s8500_s2 + $0x48] sm:$0xff]  ;;  %v3563_v21 = vld [vmem:[%s8500_s2 + $0x50] sm:$0xff]  ;;  %v153_v24 = vsel %vm147_vm0, %v86_v12, 0.0  ;;  %v89_v29 = vmul.f32 %v3539_v14, %v3539_v14  ;;  %v90_v30 = vmul.f32 %v3544_v15, %v3544_v15 }
   0x6   :  { %8878 = vst [vmem:[#allocation14_spill] sm:$0xff] %v3558_v19  ;;  %8879 = vst [vmem:[#allocation15_spill] sm:$0xff] %v3563_v21  ;;  %v3568_v22 = vld [vmem:[%s8500_s2 + $0x58] sm:$0xff]  ;;  %v3573_v23 = vld [vmem:[%s8500_s2 + $0x60] sm:$0xff]  ;;  %v91_v33 = vmul.f32 %v3553_v18, %v3553_v18  ;;  %v92_v34 = vmul.f32 %v3558_v19, %v3558_v19  ;;  %v161_v35 = vsel %vm147_vm0, %v87_v16, 0.0  ;;  %v162_v36 = vsel %vm147_vm0, %v88_v17, 0.0 }
   0x7   :  { %v152_v20 = vadd.f32 %v151_v13, %v150_v11  ;;  %8880 = vst [vmem:[#allocation16_spill] sm:$0xff] %v3568_v22  ;;  %8881 = vst [vmem:[#allocation17_spill] sm:$0xff] %v3573_v23  ;;  %v3583_v26 = vld [vmem:[%s8500_s2 + $0x68] sm:$0xff]  ;;  %v3588_v27 = vld [vmem:[%s8500_s2 + $0x70] sm:$0xff]  ;;  %v3625_v39 = vmul.f32 %v3563_v21, %v3563_v21  ;;  %v3629_v40 = vmul.f32 %v3568_v22, %v3568_v22  ;;  %v164_v63 = vsel %vm147_vm0, %v89_v29, 0.0 }
   0x8   :  { %8882 = vst [vmem:[#allocation18_spill] sm:$0xff] %v3583_v26  ;;  %8883 = vst [vmem:[#allocation19_spill] sm:$0xff] %v3588_v27  ;;  %v3593_v28 = vld [vmem:[%s8500_s2 + $0x78] sm:$0xff]  ;;  %v3616_v37 = vld [vmem:[%s8500_s2 + $0x80] sm:$0xff]  ;;  %v95_v41 = vmul.f32 %v3573_v23, %v3573_v23  ;;  %v96_v46 = vmul.f32 %v3583_v26, %v3583_v26  ;;  %v3652_v47 = vmul.f32 %v3588_v27, %v3588_v27 }
   0x9   :  { %8884 = vst [vmem:[#allocation20_spill] sm:$0xff] %v3593_v28  ;;  %8885 = vst [vmem:[#allocation21_spill] sm:$0xff] %v3616_v37  ;;  %v3621_v38 = vld [vmem:[%s8500_s2 + $0x88] sm:$0xff]  ;;  %v154_v42 = vadd.f32 %v153_v24, %v152_v20  ;;  %v3636_v43 = vld [vmem:[%s8500_s2 + $0x90] sm:$0xff]  ;;  %v3656_v48 = vmul.f32 %v3593_v28, %v3593_v28  ;;  %v99_v49 = vmul.f32 %v3616_v37, %v3616_v37 }
   0xa   :  { %8886 = vst [vmem:[#allocation22_spill] sm:$0xff] %v3621_v38  ;;  %8887 = vst [vmem:[#allocation23_spill] sm:$0xff] %v3636_v43  ;;  %v3641_v44 = vld [vmem:[%s8500_s2 + $0x98] sm:$0xff]  ;;  %v3646_v45 = vld [vmem:[%s8500_s2 + $0xa0] sm:$0xff]  ;;  %v100_v53 = vmul.f32 %v3621_v38, %v3621_v38  ;;  %v3679_v54 = vmul.f32 %v3636_v43, %v3636_v43  ;;  %v163_v56 = vadd.f32 %v162_v36, %v161_v35 }
   0xb   :  { %8888 = vst [vmem:[#allocation24_spill] sm:$0xff] %v3641_v44  ;;  %8889 = vst [vmem:[#allocation25_spill] sm:$0xff] %v3646_v45  ;;  %v3663_v50 = vld [vmem:[%s8500_s2 + $0xa8] sm:$0xff]  ;;  %v3668_v51 = vld [vmem:[%s8500_s2 + $0xb0] sm:$0xff]  ;;  %v3683_v55 = vmul.f32 %v3641_v44, %v3641_v44  ;;  %v3702_v60 = vmul.f32 %v3646_v45, %v3646_v45  ;;  %v155_v12 = vrot.slane %v154_v42, 4 }
   0xc   :  { %8890 = vst [vmem:[#allocation26_spill] sm:$0xff] %v3663_v50  ;;  %8891 = vst [vmem:[#allocation27_spill] sm:$0xff] %v3668_v51  ;;  %v3673_v52 = vld [vmem:[%s8500_s2 + $0xb8] sm:$0xff]  ;;  %v3688_v57 = vld [vmem:[%s8500_s2 + $0xc0] sm:$0xff]  ;;  %v3706_v61 = vmul.f32 %v3663_v50, %v3663_v50  ;;  %v3710_v62 = vmul.f32 %v3668_v51, %v3668_v51 }
   0xd   :  { %8892 = vst [vmem:[#allocation28_spill] sm:$0xff] %v3673_v52  ;;  %8893 = vst [vmem:[#allocation29_spill] sm:$0xff] %v3688_v57  ;;  %v3693_v58 = vld [vmem:[%s8500_s2 + $0xc8] sm:$0xff]  ;;  %v3698_v59 = vld [vmem:[%s8500_s2 + $0xd0] sm:$0xff]  ;;  %v3730_v6 = vmul.f32 %v3673_v52, %v3673_v52  ;;  %v3734_v7 = vmul.f32 %v3688_v57, %v3688_v57 }
   0xe   :  { %8894 = vst [vmem:[#allocation30_spill] sm:$0xff] %v3693_v58  ;;  %8895 = vst [vmem:[#allocation31_spill] sm:$0xff] %v3698_v59  ;;  %v3716_v2 = vld [vmem:[%s8500_s2 + $0xd8] sm:$0xff]  ;;  %v3721_v3 = vld [vmem:[%s8500_s2 + $0xe0] sm:$0xff]  ;;  %v3738_v11 = vmul.f32 %v3693_v58, %v3693_v58  ;;  %v3757_v20 = vmul.f32 %v3698_v59, %v3698_v59  ;;  %v165_v59 = vadd.f32 %v164_v63, %v163_v56  ;;  %v166_v56 = vsel %vm147_vm0, %v90_v30, 0.0 }
   0xf   :  { %8896 = vst [vmem:[#allocation32_spill] sm:$0xff] %v3716_v2  ;;  %8897 = vst [vmem:[#allocation33_spill] sm:$0xff] %v3721_v3  ;;  %v3726_v5 = vld [vmem:[%s8500_s2 + $0xe8] sm:$0xff]  ;;  %v3743_v13 = vld [vmem:[%s8500_s2 + $0xf0] sm:$0xff]  ;;  %v3761_v24 = vmul.f32 %v3716_v2, %v3716_v2  ;;  %v3765_v29 = vmul.f32 %v3721_v3, %v3721_v3  ;;  %v174_v63 = vsel %vm147_vm0, %v91_v33, 0.0  ;;  %v188_v3 = vsel %vm147_vm0, %v96_v46, 0.0 }
  0x10   :  { %8898 = vst [vmem:[#allocation34_spill] sm:$0xff] %v3726_v5  ;;  %8899 = vst [vmem:[#allocation35_spill] sm:$0xff] %v3743_v13  ;;  %v3748_v16 = vld [vmem:[%s8500_s2 + $0xf8] sm:$0xff]  ;;  %v3753_v17 = vld [vmem:[%s8500_s2 + $0x100] sm:$0xff]  ;;  %v3769_v35 = vmul.f32 %v3726_v5, %v3726_v5  ;;  %v3778_v52 = vmul.f32 %v3743_v13, %v3743_v13  ;;  %v175_v13 = vsel %vm147_vm0, %v92_v34, 0.0  ;;  %v3832_v34 = vadd.f32 %v155_v12, %v154_v42 }
  0x11   :  { %8900 = vst [vmem:[#allocation36_spill] sm:$0xff] %v3748_v16  ;;  %8901 = vst [vmem:[#allocation37_spill] sm:$0xff] %v3753_v17  ;;  %v3774_v36 = vld [vmem:[%s8500_s2 + $0x108] sm:$0xff]  ;;  %v3782_v2 = vmul.f32 %v3748_v16, %v3748_v16  ;;  %v3786_v44 = vmul.f32 %v3753_v17, %v3753_v17  ;;  %v3791_v51 = vld [vmem:[%s8500_s2 + $0x110] sm:$0xff]  ;;  %v201_v46 = vsel %vm147_vm0, %v100_v53, 0.0  ;;  %v177_v53 = vsel %vm147_vm0, %v3625_v39, 0.0 }
  0x12   :  { %8902 = vst [vmem:[#allocation38_spill] sm:$0xff] %v3774_v36  ;;  %8903 = vst [vmem:[#allocation39_spill] sm:$0xff] %v3791_v51  ;;  %v3796_v43 = vld [vmem:[%s8500_s2 + $0x118] sm:$0xff]  ;;  %v3801_v16 = vld [vmem:[%s8500_s2 + $0x120] sm:$0xff]  ;;  %v3805_v17 = vmul.f32 %v3774_v36, %v3774_v36  ;;  %v3822_v36 = vmul.f32 %v3791_v51, %v3791_v51  ;;  %v187_v51 = vsel %vm147_vm0, %v95_v41, 0.0  ;;  %v200_v41 = vsel %vm147_vm0, %v99_v49, 0.0 }
  0x13   :  { %8904 = vst [vmem:[#allocation40_spill] sm:$0xff] %v3796_v43  ;;  %8905 = vst [vmem:[#allocation41_spill] sm:$0xff] %v3801_v16  ;;  %v3813_v5 = vld [vmem:[%s8500_s2 + $0x128] sm:$0xff]  ;;  %v3818_v58 = vld [vmem:[%s8500_s2 + $0x130] sm:$0xff]  ;;  %v3826_v30 = vmul.f32 %v3796_v43, %v3796_v43  ;;  %v3830_v33 = vmul.f32 %v3801_v16, %v3801_v16  ;;  %v202_v9 = vadd.f32 %v201_v46, %v200_v41  ;;  %v203_v46 = vsel %vm147_vm0, %v3679_v54, 0.0 }
  0x14   :  { %8906 = vst [vmem:[#allocation42_spill] sm:$0xff] %v3813_v5  ;;  %8907 = vst [vmem:[#allocation43_spill] sm:$0xff] %v3818_v58  ;;  %v3836_v50 = vmul.f32 %v3813_v5, %v3813_v5  ;;  %v3840_v38 = vmul.f32 %v3818_v58, %v3818_v58  ;;  %v3847_v43 = vld [vmem:[%s8500_s2 + $0x138] sm:$0xff]  ;;  %v3852_v42 = vld [vmem:[%s8500_s2 + $0x140] sm:$0xff]  ;;  %v167_v58 = vadd.f32 %v166_v56, %v165_v59  ;;  %v179_v54 = vsel %vm147_vm0, %v3629_v40, 0.0 }
  0x15   :  { %8908 = vst [vmem:[#allocation44_spill] sm:$0xff] %v3847_v43  ;;  %8909 = vst [vmem:[#allocation45_spill] sm:$0xff] %v3852_v42  ;;  %v3857_v12 = vld [vmem:[%s8500_s2 + $0x148] sm:$0xff]  ;;  %v176_v5 = vadd.f32 %v175_v13, %v174_v63  ;;  %v3864_v16 = vld [vmem:[%s8500_s2 + $0x150] sm:$0xff]  ;;  %v3873_v45 = vmul.f32 %v3847_v43, %v3847_v43  ;;  %v3877_v59 = vmul.f32 %v3852_v42, %v3852_v42  ;;  %v214_v40 = vsel %vm147_vm0, %v3706_v61, 0.0 }
  0x16   :  { %8910 = vst [vmem:[#allocation46_spill] sm:$0xff] %v3857_v12  ;;  %8911 = vst [vmem:[#allocation47_spill] sm:$0xff] %v3864_v16  ;;  %v3869_v57 = vld [vmem:[%s8500_s2 + $0x158] sm:$0xff]  ;;  %v3881_v49 = vmul.f32 %v3857_v12, %v3857_v12  ;;  %v3888_v13 = vld [vmem:[%s8500_s2 + $0x160] sm:$0xff]  ;;  %v3897_v63 = vmul.f32 %v3864_v16, %v3864_v16  ;;  %v189_v12 = vadd.f32 %v188_v3, %v187_v51 }
  0x17   :  { %8912 = vst [vmem:[#allocation48_spill] sm:$0xff] %v3869_v57  ;;  %8913 = vst [vmem:[#allocation49_spill] sm:$0xff] %v3888_v13  ;;  %v3893_v56 = vld [vmem:[%s8500_s2 + $0x168] sm:$0xff]  ;;  %v3901_v43 = vmul.f32 %v3869_v57, %v3869_v57  ;;  %v3907_v42 = vld [vmem:[%s8500_s2 + $0x170] sm:$0xff]  ;;  %v3911_v37 = vmul.f32 %v3888_v13, %v3888_v13  ;;  %v190_v57 = vsel %vm147_vm0, %v3652_v47, 0.0  ;;  %v168_v47 = vrot.slane %v167_v58, 4 }
  0x18   :  { %8914 = vst [vmem:[#allocation50_spill] sm:$0xff] %v3893_v56  ;;  %8915 = vst [vmem:[#allocation51_spill] sm:$0xff] %v3907_v42  ;;  %v3915_v16 = vmul.f32 %v3893_v56, %v3893_v56  ;;  %v3922_v51 = vld [vmem:[%s8500_s2 + $0x178] sm:$0xff]  ;;  %v3927_v3 = vld [vmem:[%s8500_s2 + $0x180] sm:$0xff]  ;;  %v3936_v56 = vmul.f32 %v3907_v42, %v3907_v42  ;;  %v178_v41 = vadd.f32 %v177_v53, %v176_v5 }
  0x19   :  { %8916 = vst [vmem:[#allocation52_spill] sm:$0xff] %v3922_v51  ;;  %8917 = vst [vmem:[#allocation53_spill] sm:$0xff] %v3927_v3  ;;  %v3932_v39 = vld [vmem:[%s8500_s2 + $0x188] sm:$0xff]  ;;  %v3943_v13 = vld [vmem:[%s8500_s2 + $0x190] sm:$0xff]  ;;  %v3947_v28 = vmul.f32 %v3922_v51, %v3922_v51  ;;  %v3951_v22 = vmul.f32 %v3927_v3, %v3927_v3  ;;  %v191_v51 = vadd.f32 %v190_v57, %v189_v12  ;;  %v192_v57 = vsel %vm147_vm0, %v3656_v48, 0.0 }
  0x1a   :  { %8918 = vst [vmem:[#allocation54_spill] sm:$0xff] %v3932_v39  ;;  %8919 = vst [vmem:[#allocation55_spill] sm:$0xff] %v3943_v13  ;;  %v3955_v42 = vmul.f32 %v3932_v39, %v3932_v39  ;;  %v3962_v5 = vld [vmem:[%s8500_s2 + $0x198] sm:$0xff]  ;;  %v3967_v53 = vld [vmem:[%s8500_s2 + $0x1a0] sm:$0xff]  ;;  %v3971_v3 = vmul.f32 %v3943_v13, %v3943_v13  ;;  %v213_v39 = vsel %vm147_vm0, %v3702_v60, 0.0  ;;  %v204_v60 = vadd.f32 %v203_v46, %v202_v9 }
  0x1b   :  { %8920 = vst [vmem:[#allocation56_spill] sm:$0xff] %v3962_v5  ;;  %8921 = vst [vmem:[#allocation57_spill] sm:$0xff] %v3967_v53  ;;  %v3980_v15 = vld [vmem:[%s8500_s2 + $0x1a8] sm:$0xff]  ;;  %v3984_v1 = vmul.f32 %v3962_v5, %v3962_v5  ;;  %v3988_v13 = vmul.f32 %v3967_v53, %v3967_v53  ;;  %v3995_v61 = vld [vmem:[%s8500_s2 + $0x1b0] sm:$0xff]  ;;  %v4011_v9 = vadd.f32 %v168_v47, %v167_v58  ;;  %v205_v46 = vsel %vm147_vm0, %v3683_v55, 0.0 }
  0x1c   :  { %8922 = vst [vmem:[#allocation58_spill] sm:$0xff] %v3980_v15  ;;  %8923 = vst [vmem:[#allocation59_spill] sm:$0xff] %v3995_v61  ;;  %v4000_v12 = vld [vmem:[%s8500_s2 + $0x1b8] sm:$0xff]  ;;  %v4005_v5 = vld [vmem:[%s8500_s2 + $0x1c0] sm:$0xff]  ;;  %v4009_v53 = vmul.f32 %v3980_v15, %v3980_v15  ;;  %v180_v48 = vadd.f32 %v179_v54, %v178_v41  ;;  %v4027_v15 = vmul.f32 %v3995_v61, %v3995_v61 }
  0x1d   :  { %8924 = vst [vmem:[#allocation60_spill] sm:$0xff] %v4000_v12  ;;  %8925 = vst [vmem:[#allocation61_spill] sm:$0xff] %v4005_v5  ;;  %v4018_v0 = vld [vmem:[%s8500_s2 + $0x1c8] sm:$0xff]  ;;  %v4023_v8 = vld [vmem:[%s8500_s2 + $0x1d0] sm:$0xff]  ;;  %v4031_v58 = vmul.f32 %v4000_v12, %v4000_v12  ;;  %v4035_v55 = vmul.f32 %v4005_v5, %v4005_v5  ;;  %v215_v47 = vadd.f32 %v214_v40, %v213_v39  ;;  %v216_v5 = vsel %vm147_vm0, %v3710_v62, 0.0 }
  0x1e   :  { %8926 = vst [vmem:[#allocation62_spill] sm:$0xff] %v4018_v0  ;;  %8927 = vst [vmem:[#allocation63_spill] sm:$0xff] %v4023_v8  ;;  %v4040_v41 = vld [vmem:[%s8500_s2 + $0x1d8] sm:$0xff]  ;;  %v4045_v54 = vld [vmem:[%s8500_s2 + $0x1e0] sm:$0xff]  ;;  %v4054_v61 = vmul.f32 %v4018_v0, %v4018_v0  ;;  %v4058_v39 = vmul.f32 %v4023_v8, %v4023_v8  ;;  %v193_v40 = vadd.f32 %v192_v57, %v191_v51  ;;  %v181_v23 = vrot.slane %v180_v48, 4 }
  0x1f   :  { %8928 = vst [vmem:[#allocation64_spill] sm:$0xff] %v4040_v41  ;;  %8929 = vst [vmem:[#allocation65_spill] sm:$0xff] %v4045_v54  ;;  %v4050_v12 = vld [vmem:[%s8500_s2 + $0x1e8] sm:$0xff]  ;;  %v4065_v27 = vld [vmem:[%s8500_s2 + $0x1f0] sm:$0xff]  ;;  %v4074_v0 = vmul.f32 %v4040_v41, %v4040_v41  ;;  %v4078_v51 = vmul.f32 %v4045_v54, %v4045_v54  ;;  %v206_v57 = vadd.f32 %v205_v46, %v204_v60  ;;  %v218_v54 = vsel %vm147_vm0, %v3730_v6, 0.0 }
  0x20   :  { %8930 = vst [vmem:[#allocation66_spill] sm:$0xff] %v4050_v12  ;;  %8931 = vst [vmem:[#allocation67_spill] sm:$0xff] %v4065_v27  ;;  %v4070_v21 = vld [vmem:[%s8500_s2 + $0x1f8] sm:$0xff]  ;;  %v4082_v62 = vmul.f32 %v4050_v12, %v4050_v12  ;;  %v4086_v8 = vmul.f32 %v4065_v27, %v4065_v27  ;;  %v217_v14 = vadd.f32 %v216_v5, %v215_v47  ;;  %v226_v12 = vsel %vm147_vm0, %v3734_v7, 0.0 }
  0x21   :  { %8932 = vst [vmem:[#allocation68_spill] sm:$0xff] %v4070_v21  ;;  %v4090_v26 = vmul.f32 %v4070_v21, %v4070_v21  ;;  %v227_v60 = vsel %vm147_vm0, %v3738_v11, 0.0  ;;  %v194_v46 = vrot.slane %v193_v40, 4  ;;  %v229_v27 = vsel %vm147_vm0, %v3757_v20, 0.0 }
  0x22   :  { %v239_v21 = vsel %vm147_vm0, %v3765_v29, 0.0  ;;  %v240_v41 = vsel %vm147_vm0, %v3769_v35, 0.0  ;;  %v207_v5 = vrot.slane %v206_v57, 4  ;;  %v231_v6 = vsel %vm147_vm0, %v3761_v24, 0.0 }
  0x23   :  { %v252_v7 = vsel %vm147_vm0, %v3786_v44, 0.0  ;;  %v253_v11 = vsel %vm147_vm0, %v3805_v17, 0.0  ;;  %v4111_v47 = vadd.f32 %v181_v23, %v180_v48  ;;  %v228_v4 = vadd.f32 %v227_v60, %v226_v12 }
  0x24   :  { %v265_v20 = vsel %vm147_vm0, %v3830_v33, 0.0  ;;  %v266_v29 = vsel %vm147_vm0, %v3836_v50, 0.0  ;;  %v219_v35 = vadd.f32 %v218_v54, %v217_v14  ;;  %v241_v19 = vadd.f32 %v240_v41, %v239_v21 }
  0x25   :  { %v278_v24 = vsel %vm147_vm0, %v3877_v59, 0.0  ;;  %v279_v44 = vsel %vm147_vm0, %v3881_v49, 0.0  ;;  %v242_v17 = vsel %vm147_vm0, %v3778_v52, 0.0  ;;  %v254_v23 = vadd.f32 %v253_v11, %v252_v7 }
  0x26   :  { %v291_v12 = vsel %vm147_vm0, %v3911_v37, 0.0  ;;  %v292_v33 = vsel %vm147_vm0, %v3915_v16, 0.0  ;;  %v4127_v48 = vadd.f32 %v194_v46, %v193_v40  ;;  %v4129_v14 = vadd.f32 %v207_v5, %v206_v57 }
  0x27   :  { %v255_v21 = vsel %vm147_vm0, %v3822_v36, 0.0  ;;  %v267_v50 = vadd.f32 %v266_v29, %v265_v20  ;;  %v230_v59 = vadd.f32 %v229_v27, %v228_v4  ;;  %v268_v49 = vsel %vm147_vm0, %v3840_v38, 0.0 }
  0x28   :  { %v280_v52 = vadd.f32 %v279_v44, %v278_v24  ;;  %v304_v41 = vsel %vm147_vm0, %v3951_v22, 0.0  ;;  %v243_v37 = vadd.f32 %v242_v17, %v241_v19  ;;  %v281_v16 = vsel %vm147_vm0, %v3897_v63, 0.0 }
  0x29   :  { %v293_v54 = vadd.f32 %v292_v33, %v291_v12  ;;  %v305_v40 = vsel %vm147_vm0, %v3955_v42, 0.0  ;;  %v244_v36 = vsel %vm147_vm0, %v3782_v2, 0.0  ;;  %v256_v57 = vadd.f32 %v255_v21, %v254_v23 }
  0x2a   :  { %v294_v4 = vsel %vm147_vm0, %v3936_v56, 0.0  ;;  %v306_v27 = vadd.f32 %v305_v40, %v304_v41  ;;  %v257_v38 = vsel %vm147_vm0, %v3826_v30, 0.0  ;;  %v269_v22 = vadd.f32 %v268_v49, %v267_v50 }
  0x2b   :  { %v307_v19 = vsel %vm147_vm0, %v3971_v3, 0.0  ;;  %v317_v63 = vsel %vm147_vm0, %v3988_v13, 0.0  ;;  %v232_v60 = vadd.f32 %v231_v6, %v230_v59  ;;  %v270_v42 = vsel %vm147_vm0, %v3873_v45, 0.0 }
  0x2c   :  { %v282_v2 = vadd.f32 %v281_v16, %v280_v52  ;;  %v318_v46 = vsel %vm147_vm0, %v4009_v53, 0.0  ;;  %v245_v56 = vadd.f32 %v244_v36, %v243_v37  ;;  %v283_v5 = vsel %vm147_vm0, %v3901_v43, 0.0 }
  0x2d   :  { %v295_v30 = vadd.f32 %v294_v4, %v293_v54  ;;  %v319_v7 = vadd.f32 %v318_v46, %v317_v63  ;;  %v258_v11 = vadd.f32 %v257_v38, %v256_v57  ;;  %v296_v3 = vsel %vm147_vm0, %v3947_v28, 0.0 }
  0x2e   :  { %v308_v20 = vadd.f32 %v307_v19, %v306_v27  ;;  %v320_v13 = vsel %vm147_vm0, %v4027_v15, 0.0  ;;  %v271_v6 = vadd.f32 %v270_v42, %v269_v22  ;;  %v309_v45 = vsel %vm147_vm0, %v3984_v1, 0.0 }
  0x2f   :  { %v330_v53 = vsel %vm147_vm0, %v4035_v55, 0.0  ;;  %v331_v43 = vsel %vm147_vm0, %v4054_v61, 0.0  ;;  %v220_v29 = vrot.slane %v219_v35, 4  ;;  %v233_v24 = vrot.slane %v232_v60, 4 }
  0x30   :  { %v284_v44 = vadd.f32 %v283_v5, %v282_v2  ;;  %v332_v17 = vadd.f32 %v331_v43, %v330_v53  ;;  %v246_v23 = vrot.slane %v245_v56, 4  ;;  %v297_v28 = vadd.f32 %v296_v3, %v295_v30 }
  0x31   :  { %v321_v12 = vadd.f32 %v320_v13, %v319_v7  ;;  %v333_v15 = vsel %vm147_vm0, %v4058_v39, 0.0  ;;  %v259_v33 = vrot.slane %v258_v11, 4  ;;  %v310_v21 = vadd.f32 %v309_v45, %v308_v20 }
  0x32   :  { %v322_v1 = vsel %vm147_vm0, %v4031_v58, 0.0  ;;  %v334_v50 = vadd.f32 %v333_v15, %v332_v17  ;;  %v272_v55 = vrot.slane %v271_v6, 4  ;;  %v335_v61 = vsel %vm147_vm0, %v4074_v0, 0.0 }
  0x33   :  { %v343_v59 = vsel %vm147_vm0, %v4078_v51, 0.0  ;;  %v344_v49 = vsel %vm147_vm0, %v4082_v62, 0.0  ;;  %v221_v52 = vadd.f32 %v220_v29, %v219_v35  ;;  %v234_v41 = vadd.f32 %v233_v24, %v232_v60 }
  0x34   :  { %v285_v37 = vrot.slane %v284_v44, 4  ;;  %v345_v39 = vadd.f32 %v344_v49, %v343_v59  ;;  %v298_v16 = vrot.slane %v297_v28, 4  ;;  %v323_v54 = vadd.f32 %v322_v1, %v321_v12 }
  0x35   :  { %v346_v58 = vsel %vm147_vm0, %v4086_v8, 0.0  ;;  %v348_v40 = vsel %vm147_vm0, %v4090_v26, 0.0  ;;  %v247_v36 = vadd.f32 %v246_v23, %v245_v56  ;;  %v311_v0 = vrot.slane %v310_v21, 4 }
  0x36   :  { %v336_v57 = vadd.f32 %v335_v61, %v334_v50  ;;  %v347_v4 = vadd.f32 %v346_v58, %v345_v39  ;;  %v8933_v51 = vrot.slane %v3832_v34, 2  ;;  %v183_v35 = vrot.slane %v4111_v47, 2 }
  0x37   :  { %v260_v27 = vadd.f32 %v259_v33, %v258_v11  ;;  %v273_v38 = vadd.f32 %v272_v55, %v271_v6  ;;  %v196_v22 = vrot.slane %v4127_v48, 2  ;;  %v209_v19 = vrot.slane %v4129_v14, 2 }
  0x38   :  { %v158_v62 = vadd.f32 %v8933_v51, %v3832_v34  ;;  %v286_v8 = vadd.f32 %v285_v37, %v284_v44  ;;  %v349_v63 = vadd.f32 %v348_v40, %v347_v4  ;;  %v222_v60 = vrot.slane %v221_v52, 2 }
  0x39   :  { %v235_v26 = vrot.slane %v234_v41, 2  ;;  %v299_v42 = vadd.f32 %v298_v16, %v297_v28  ;;  %v324_v2 = vrot.slane %v323_v54, 4  ;;  %v8934_v46 = vrot.slane %v4011_v9, 2 }
  0x3a   :  { %v248_v5 = vrot.slane %v247_v36, 2  ;;  %v312_v34 = vadd.f32 %v311_v0, %v310_v21  ;;  %v337_v30 = vrot.slane %v336_v57, 4  ;;  %v159_v7 = vrot.slane %v158_v62, 1 }
  0x3b   :  { %v171_v56 = vadd.f32 %v8934_v46, %v4011_v9  ;;  %v184_v11 = vadd.f32 %v183_v35, %v4111_v47  ;;  %v261_v3 = vrot.slane %v260_v27, 2  ;;  %v274_v20 = vrot.slane %v273_v38, 2 }
  0x3c   :  { %v197_v13 = vadd.f32 %v196_v22, %v4127_v48  ;;  %v210_v6 = vadd.f32 %v209_v19, %v4129_v14  ;;  %v287_v45 = vrot.slane %v286_v8, 2  ;;  %v350_v53 = vrot.slane %v349_v63, 4 }
  0x3d   :  { %v223_v43 = vadd.f32 %v222_v60, %v221_v52  ;;  %v236_v29 = vadd.f32 %v235_v26, %v234_v41  ;;  %v300_v24 = vrot.slane %v299_v42, 2  ;;  %v325_v44 = vadd.f32 %v324_v2, %v323_v54 }
  0x3e   :  { %v172_v17 = vrot.slane %v171_v56, 1  ;;  %v249_v9 = vadd.f32 %v248_v5, %v247_v36  ;;  %v313_v23 = vrot.slane %v312_v34, 2  ;;  %v338_v28 = vadd.f32 %v337_v30, %v336_v57 }
  0x3f   :  { %v160_v12 = vadd.f32 %v159_v7, %v158_v62  ;;  %v185_v15 = vrot.slane %v184_v11, 1  ;;  %v262_v33 = vadd.f32 %v261_v3, %v260_v27  ;;  %v275_v47 = vadd.f32 %v274_v20, %v273_v38 }
  0x40   :  { %v198_v21 = vrot.slane %v197_v13, 1  ;;  %v211_v1 = vrot.slane %v210_v6, 1  ;;  %v288_v50 = vadd.f32 %v287_v45, %v286_v8  ;;  %v351_v48 = vadd.f32 %v350_v53, %v349_v63  ;;  %v8935_v53 = vld [vmem:[#allocation14_spill] sm:$0xff] }
  0x41   :  { %v224_v55 = vrot.slane %v223_v43, 1  ;;  %v237_v14 = vrot.slane %v236_v29, 1  ;;  %v301_v61 = vadd.f32 %v300_v24, %v299_v42  ;;  %v326_v59 = vrot.slane %v325_v44, 2 }
  0x42   :  { %v173_v49 = vadd.f32 %v172_v17, %v171_v56  ;;  %v250_v52 = vrot.slane %v249_v9, 1  ;;  %v314_v41 = vadd.f32 %v313_v23, %v312_v34  ;;  %v339_v37 = vrot.slane %v338_v28, 2 }
  0x43   :  { %v186_v39 = vadd.f32 %v185_v15, %v184_v11  ;;  %v263_v16 = vrot.slane %v262_v33, 1  ;;  %v276_v54 = vrot.slane %v275_v47, 1  ;;  %v356_v58 = vmax.f32 %v160_v12, 1e-16 }
  0x44   :  { %v199_v40 = vadd.f32 %v198_v21, %v197_v13  ;;  %v212_v36 = vadd.f32 %v211_v1, %v210_v6  ;;  %v289_v0 = vrot.slane %v288_v50, 1  ;;  %v352_v57 = vrot.slane %v351_v48, 2 }
  0x45   :  { %v225_v4 = vadd.f32 %v224_v55, %v223_v43  ;;  %v238_v51 = vadd.f32 %v237_v14, %v236_v29  ;;  %v302_v62 = vrot.slane %v301_v61, 1  ;;  %v327_v35 = vadd.f32 %v326_v59, %v325_v44 }
  0x46   :  { %v251_v27 = vadd.f32 %v250_v52, %v249_v9  ;;  %v315_v38 = vrot.slane %v314_v41, 1  ;;  %v340_v22 = vadd.f32 %v339_v37, %v338_v28  ;;  %v357_v19 = vmax.f32 %v173_v49, 1e-16  ;;  %v8936_v9 = vld [vmem:[#allocation9_spill] sm:$0xff]  ;;  %v8937_v28 = vld [vmem:[#allocation12_spill] sm:$0xff] }
  0x47   :  { %v264_v8 = vadd.f32 %v263_v16, %v262_v33  ;;  %v277_v63 = vadd.f32 %v276_v54, %v275_v47  ;;  %v358_v60 = vmax.f32 %v186_v39, 1e-16  ;;  %3154 = vrsqrt.f32 %v356_v58  ;;  %v8941_v16 = vld [vmem:[#allocation19_spill] sm:$0xff]  ;;  %v8942_v58 = vld [vmem:[#allocation10_spill] sm:$0xff] }
  0x48   :  { %v290_v26 = vadd.f32 %v289_v0, %v288_v50  ;;  %v353_v42 = vadd.f32 %v352_v57, %v351_v48  ;;  %v454_v2 = vadd.f32 %v3601_v31, %v3578_v25  ;;  %v460_v46 = vsel %vm147_vm0, %v3531_v10, 0.0  ;;  %v8939_v50 = vld [vmem:[#allocation18_spill] sm:$0xff]  ;;  %v8943_v57 = vld [vmem:[#allocation7_spill] sm:$0xff] }
  0x49   :  { %v303_v56 = vadd.f32 %v302_v62, %v301_v61  ;;  %v328_v5 = vrot.slane %v327_v35, 1  ;;  %v359_v34 = vmax.f32 %v199_v40, 1e-16  ;;  %v360_v30 = vmax.f32 %v212_v36, 1e-16 }
  0x4a   :  { %v316_v7 = vadd.f32 %v315_v38, %v314_v41  ;;  %v341_v11 = vrot.slane %v340_v22, 1  ;;  %3156 = vrsqrt.f32 %v357_v19  ;;  %v455_v3 = vsel %vm147_vm0, %v3553_v18, 0.0  ;;  %v8940_v41 = vld [vmem:[#allocation15_spill] sm:$0xff]  ;;  %v8949_v19 = vld [vmem:[#allocation13_spill] sm:$0xff] }
  0x4b   :  { %v361_v20 = vmax.f32 %v225_v4, 1e-16  ;;  %v362_v13 = vmax.f32 %v238_v51, 1e-16  ;;  %3158 = vrsqrt.f32 %v358_v60  ;;  %v461_v6 = vadd.f32 %v460_v46, %v3605_v32  ;;  %v8938_v32 = vld [vmem:[#allocation17_spill] sm:$0xff]  ;;  %v8945_v51 = vld [vmem:[#allocation8_spill] sm:$0xff] }
  0x4c   :  { %v354_v45 = vrot.slane %v353_v42, 1  ;;  %v363_v25 = vmax.f32 %v251_v27, 1e-16  ;;  %v364_v31 = vmax.f32 %v264_v8, 1e-16  ;;  %v462_v43 = vsel %vm147_vm0, %v8935_v53, 0.0 }
  0x4d   :  { %v329_v29 = vadd.f32 %v328_v5, %v327_v35  ;;  %v365_v24 = vmax.f32 %v277_v63, 1e-16  ;;  %3160 = vrsqrt.f32 %v359_v34  ;;  %v456_v44 = vadd.f32 %v455_v3, %v454_v2  ;;  %v8950_v63 = vld [vmem:[#allocation16_spill] sm:$0xff]  ;;  %v8952_v46 = vld [vmem:[#allocation11_spill] sm:$0xff] }
  0x4e   :  { %v342_v17 = vadd.f32 %v341_v11, %v340_v22  ;;  %3162 = vrsqrt.f32 %v360_v30  ;;  %v466_v23 = vsel %vm147_vm0, %v8936_v9, 0.0  ;;  %v467_v12 = vsel %vm147_vm0, %v8937_v28, 0.0 }
  0x4f   :  { %v366_v15 = vmax.f32 %v290_v26, 1e-16  ;;  %3164 = vrsqrt.f32 %v361_v20  ;;  %v457_v33 = vsel %vm147_vm0, %v8938_v32, 0.0  ;;  %v463_v47 = vadd.f32 %v462_v43, %v461_v6  ;;  %v8951_v26 = vld [vmem:[#allocation20_spill] sm:$0xff]  ;;  %v8959_v6 = vld [vmem:[#allocation21_spill] sm:$0xff]  ;;  %v8965_v32 = vld [vmem:[#allocation30_spill] sm:$0xff] }
  0x50   :  { %v4208_v21 = vadd.f32 %v354_v45, %v353_v42  ;;  %v367_v1 = vmax.f32 %v303_v56, 1e-16  ;;  %3166 = vrsqrt.f32 %v362_v13  ;;  %v464_v48 = vsel %vm147_vm0, %v8939_v50, 0.0 }
  0x51   :  { %v3155_v55 = vpop.eup %3154  ;;  %v368_v14 = vmax.f32 %v316_v7, 1e-16  ;;  %v369_v61 = vmax.f32 %v329_v29, 1e-16  ;;  %3168 = vrsqrt.f32 %v363_v25  ;;  %v468_v59 = vadd.f32 %v467_v12, %v466_v23  ;;  %v8960_v25 = vld [vmem:[#allocation25_spill] sm:$0xff]  ;;  %v8964_v12 = vld [vmem:[#allocation26_spill] sm:$0xff] }
  0x52   :  { %v370_v49 = vmax.f32 %v342_v17, 1e-16  ;;  %3170 = vrsqrt.f32 %v364_v31  ;;  %v4212_v52 = vadd.f32 %v457_v33, %v456_v44  ;;  %v469_v37 = vsel %vm147_vm0, %v8940_v41, 0.0  ;;  %v8962_v44 = vld [vmem:[#allocation33_spill] sm:$0xff]  ;;  %v8963_v17 = vld [vmem:[#allocation22_spill] sm:$0xff] }
  0x53   :  { %3172 = vrsqrt.f32 %v365_v24  ;;  %v4216_v39 = vadd.f32 %v464_v48, %v463_v47  ;;  %v471_v54 = vsel %vm147_vm0, %v8941_v16, 0.0  ;;  %v473_v40 = vsel %vm147_vm0, %v8942_v58, 0.0  ;;  %v8966_v47 = vld [vmem:[#allocation34_spill] sm:$0xff] }
  0x54   :  { %v3157_v36 = vpop.eup %3156  ;;  %3174 = vrsqrt.f32 %v366_v15  ;;  %v4224_v4 = vmul.f32 %v3155_v55, %v8943_v57  ;;  %v4227_v62 = vmul.f32 %v3155_v55, %v8945_v51  ;;  %v4232_v27 = vmul.f32 %v3155_v55, %v8936_v9 }
  0x55   :  { %v4229_v35 = vpop.eup %3158  ;;  %3176 = vrsqrt.f32 %v367_v1  ;;  %v4235_v38 = vmul.f32 %v3155_v55, %v8942_v58  ;;  %v470_v22 = vadd.f32 %v469_v37, %v468_v59  ;;  %v474_v8 = vsel %vm147_vm0, %v8949_v19, 0.0  ;;  %v8968_v59 = vld [vmem:[#allocation27_spill] sm:$0xff] }
  0x56   :  { %8944 = vst [vmem:[#allocation14_spill] sm:$0xff] %v4224_v4  ;;  %8946 = vst [vmem:[#allocation9_spill] sm:$0xff] %v4227_v62  ;;  %3178 = vrsqrt.f32 %v368_v14  ;;  %v476_v60 = vsel %vm147_vm0, %v8950_v63, 0.0  ;;  %v478_v42 = vsel %vm147_vm0, %v8951_v26, 0.0  ;;  %v4246_v56 = vmul.f32 %v3157_v36, %v8952_v46  ;;  %v8967_v14 = vld [vmem:[#allocation23_spill] sm:$0xff]  ;;  %v8973_v63 = vld [vmem:[#allocation28_spill] sm:$0xff] }
  0x57   :  { %8947 = vst [vmem:[#allocation12_spill] sm:$0xff] %v4232_v27  ;;  %8948 = vst [vmem:[#allocation17_spill] sm:$0xff] %v4235_v38  ;;  %v4243_v2 = vpop.eup %3160  ;;  %3180 = vrsqrt.f32 %v369_v61  ;;  %v4249_v5 = vmul.f32 %v3157_v36, %v3531_v10  ;;  %v4252_v34 = vmul.f32 %v3157_v36, %v8937_v28  ;;  %v4257_v7 = vmul.f32 %v3157_v36, %v8949_v19  ;;  %v8972_v19 = vld [vmem:[#allocation24_spill] sm:$0xff]  ;;  %v9004_v27 = vld [vmem:[#allocation54_spill] sm:$0xff] }
  0x58   :  { %8953 = vst [vmem:[#allocation18_spill] sm:$0xff] %v4246_v56  ;;  %v4254_v30 = vpop.eup %3162  ;;  %3182 = vrsqrt.f32 %v370_v49  ;;  %v4261_v11 = vmul.f32 %v4229_v35, %v3553_v18  ;;  %v4265_v3 = vmul.f32 %v4229_v35, %v8935_v53  ;;  %v4269_v10 = vadd.f32 %v471_v54, %v470_v22  ;;  %v8961_v18 = vld [vmem:[#allocation29_spill] sm:$0xff]  ;;  %v8969_v54 = vld [vmem:[#allocation31_spill] sm:$0xff] }
  0x59   :  { %8954 = vst [vmem:[#allocation15_spill] sm:$0xff] %v4249_v5  ;;  %8955 = vst [vmem:[#allocation19_spill] sm:$0xff] %v4252_v34  ;;  %v4267_v20 = vpop.eup %3164  ;;  %v475_v13 = vadd.f32 %v474_v8, %v473_v40  ;;  %v480_v45 = vsel %vm147_vm0, %v8959_v6, 0.0  ;;  %v481_v31 = vsel %vm147_vm0, %v8960_v25, 0.0  ;;  %v483_v24 = vsel %vm147_vm0, %v8961_v18, 0.0  ;;  %v8970_v40 = vld [vmem:[#allocation35_spill] sm:$0xff] }
  0x5a   :  { %8956 = vst [vmem:[#allocation10_spill] sm:$0xff] %v4257_v7  ;;  %8957 = vst [vmem:[#allocation7_spill] sm:$0xff] %v4261_v11  ;;  %v4275_v43 = vpop.eup %3166  ;;  %v482_v29 = vadd.f32 %v481_v31, %v480_v45  ;;  %v485_v53 = vsel %vm147_vm0, %v8962_v44, 0.0  ;;  %v487_v9 = vsel %vm147_vm0, %v8963_v17, 0.0  ;;  %v488_v15 = vsel %vm147_vm0, %v8964_v12, 0.0  ;;  %v8975_v45 = vld [vmem:[#allocation36_spill] sm:$0xff] }
  0x5b   :  { %8958 = vst [vmem:[#allocation8_spill] sm:$0xff] %v4265_v3  ;;  %v4283_v23 = vpop.eup %3168  ;;  %v477_v28 = vadd.f32 %v476_v60, %v475_v13  ;;  %v490_v33 = vsel %vm147_vm0, %v8965_v32, 0.0  ;;  %v492_v1 = vsel %vm147_vm0, %v8966_v47, 0.0  ;;  %v489_v55 = vadd.f32 %v488_v15, %v487_v9  ;;  %v8974_v13 = vld [vmem:[#allocation32_spill] sm:$0xff]  ;;  %v8978_v18 = vld [vmem:[#allocation37_spill] sm:$0xff] }
  0x5c   :  { %v4291_v50 = vpop.eup %3170  ;;  %v484_v48 = vadd.f32 %v483_v24, %v482_v29  ;;  %v494_v61 = vsel %vm147_vm0, %v8967_v14, 0.0  ;;  %v495_v49 = vsel %vm147_vm0, %v8968_v59, 0.0  ;;  %v497_v58 = vsel %vm147_vm0, %v8969_v54, 0.0  ;;  %v8979_v44 = vld [vmem:[#allocation41_spill] sm:$0xff]  ;;  %v8986_v14 = vld [vmem:[#allocation42_spill] sm:$0xff]  ;;  %v8998_v11 = vld [vmem:[#allocation52_spill] sm:$0xff] }
  0x5d   :  { %v4297_v41 = vpop.eup %3172  ;;  %v4299_v37 = vadd.f32 %v478_v42, %v477_v28  ;;  %v496_v16 = vadd.f32 %v495_v49, %v494_v61  ;;  %v499_v36 = vsel %vm147_vm0, %v8970_v40, 0.0  ;;  %v491_v22 = vadd.f32 %v490_v33, %v489_v55  ;;  %v8980_v17 = vld [vmem:[#allocation45_spill] sm:$0xff]  ;;  %v8987_v59 = vld [vmem:[#allocation46_spill] sm:$0xff] }
  0x5e   :  { %v4305_v57 = vpop.eup %3174  ;;  %v4307_v51 = vadd.f32 %v485_v53, %v484_v48  ;;  %v501_v8 = vsel %vm147_vm0, %v8972_v19, 0.0  ;;  %v502_v60 = vsel %vm147_vm0, %v8973_v63, 0.0  ;;  %v504_v6 = vsel %vm147_vm0, %v8974_v13, 0.0  ;;  %v8983_v33 = vld [vmem:[#allocation49_spill] sm:$0xff]  ;;  %v8985_v48 = vld [vmem:[#allocation38_spill] sm:$0xff]  ;;  %v8990_v19 = vld [vmem:[#allocation39_spill] sm:$0xff] }
  0x5f   :  { %v4313_v26 = vpop.eup %3176  ;;  %v498_v42 = vadd.f32 %v497_v58, %v496_v16  ;;  %v503_v46 = vadd.f32 %v502_v60, %v501_v8  ;;  %v506_v25 = vsel %vm147_vm0, %v8975_v45, 0.0  ;;  %v4321_v29 = vadd.f32 %v492_v1, %v491_v22  ;;  %v8988_v16 = vld [vmem:[#allocation50_spill] sm:$0xff]  ;;  %v8991_v63 = vld [vmem:[#allocation43_spill] sm:$0xff]  ;;  %v8999_v34 = vld [vmem:[#allocation53_spill] sm:$0xff] }
  0x60   :  { %8971 = vst [vmem:[#allocation13_spill] sm:$0xff] %v4307_v51  ;;  %v4319_v31 = vpop.eup %3178  ;;  %v508_v24 = vsel %vm147_vm0, %v8978_v18, 0.0  ;;  %v509_v53 = vsel %vm147_vm0, %v8979_v44, 0.0  ;;  %v511_v9 = vsel %vm147_vm0, %v8980_v17, 0.0  ;;  %v513_v47 = vsel %vm147_vm0, %v8983_v33, 0.0  ;;  %v8993_v13 = vld [vmem:[#allocation51_spill] sm:$0xff] }
  0x61   :  { %8976 = vst [vmem:[#allocation16_spill] sm:$0xff] %v4319_v31  ;;  %8977 = vst [vmem:[#allocation20_spill] sm:$0xff] %v4321_v29  ;;  %v4329_v28 = vpop.eup %3180  ;;  %v4331_v12 = vadd.f32 %v499_v36, %v498_v42  ;;  %v505_v15 = vadd.f32 %v504_v6, %v503_v46  ;;  %v510_v32 = vadd.f32 %v509_v53, %v508_v24  ;;  %v515_v55 = vsel %vm147_vm0, %v8985_v48, 0.0  ;;  %v8992_v42 = vld [vmem:[#allocation47_spill] sm:$0xff]  ;;  %v8994_v24 = vld [vmem:[#allocation40_spill] sm:$0xff] }
  0x62   :  { %8981 = vst [vmem:[#allocation11_spill] sm:$0xff] %v4329_v28  ;;  %v4335_v1 = vpop.eup %3182  ;;  %v516_v61 = vsel %vm147_vm0, %v8986_v14, 0.0  ;;  %v518_v49 = vsel %vm147_vm0, %v8987_v59, 0.0  ;;  %v520_v54 = vsel %vm147_vm0, %v8988_v16, 0.0  ;;  %v522_v8 = vsel %vm147_vm0, %v8990_v19, 0.0 }
  0x63   :  { %8982 = vst [vmem:[#allocation21_spill] sm:$0xff] %v4331_v12  ;;  %8984 = vst [vmem:[#allocation25_spill] sm:$0xff] %v4335_v1  ;;  %v4345_v58 = vadd.f32 %v506_v25, %v505_v15  ;;  %v512_v36 = vadd.f32 %v511_v9, %v510_v32  ;;  %v517_v22 = vadd.f32 %v516_v61, %v515_v55  ;;  %v523_v60 = vsel %vm147_vm0, %v8991_v63, 0.0  ;;  %v8996_v15 = vld [vmem:[#allocation44_spill] sm:$0xff]  ;;  %v9006_v1 = vld [vmem:[#allocation58_spill] sm:$0xff] }
  0x64   :  { %v525_v46 = vsel %vm147_vm0, %v8992_v42, 0.0  ;;  %v527_v6 = vsel %vm147_vm0, %v8993_v13, 0.0  ;;  %v529_v53 = vsel %vm147_vm0, %v8994_v24, 0.0  ;;  %v524_v9 = vadd.f32 %v523_v60, %v522_v8  ;;  %v8997_v61 = vld [vmem:[#allocation48_spill] sm:$0xff] }
  0x65   :  { %8989 = vst [vmem:[#allocation29_spill] sm:$0xff] %v4345_v58  ;;  %v4357_v0 = vadd.f32 %v513_v47, %v512_v36  ;;  %v519_v25 = vadd.f32 %v518_v49, %v517_v22  ;;  %v530_v32 = vsel %vm147_vm0, %v8996_v15, 0.0  ;;  %v532_v3 = vsel %vm147_vm0, %v8997_v61, 0.0  ;;  %v9001_v47 = vld [vmem:[#allocation57_spill] sm:$0xff] }
  0x66   :  { %v531_v55 = vadd.f32 %v530_v32, %v529_v53  ;;  %v534_v7 = vsel %vm147_vm0, %v8998_v11, 0.0  ;;  %v536_v5 = vsel %vm147_vm0, %v8999_v34, 0.0  ;;  %v526_v38 = vadd.f32 %v525_v46, %v524_v9  ;;  %v9002_v36 = vld [vmem:[#allocation61_spill] sm:$0xff]  ;;  %v9007_v46 = vld [vmem:[#allocation62_spill] sm:$0xff] }
  0x67   :  { %8995 = vst [vmem:[#allocation33_spill] sm:$0xff] %v4357_v0  ;;  %v4367_v56 = vadd.f32 %v520_v54, %v519_v25  ;;  %v537_v49 = vsel %vm147_vm0, %v9001_v47, 0.0  ;;  %v539_v22 = vsel %vm147_vm0, %v9002_v36, 0.0  ;;  %v9003_v53 = vld [vmem:[#allocation65_spill] sm:$0xff]  ;;  %v543_v62 = vsel %vm147_vm0, %v9004_v27, 0.0  ;;  %v9008_v9 = vld [vmem:[#allocation66_spill] sm:$0xff] }
  0x68   :  { %v533_v8 = vadd.f32 %v532_v3, %v531_v55  ;;  %v538_v60 = vadd.f32 %v537_v49, %v536_v5  ;;  %v541_v32 = vsel %vm147_vm0, %v9003_v53, 0.0  ;;  %v4377_v4 = vadd.f32 %v527_v6, %v526_v38  ;;  %v9010_v55 = vld [vmem:[#allocation55_spill] sm:$0xff] }
  0x69   :  { %9000 = vst [vmem:[#allocation22_spill] sm:$0xff] %v4367_v56  ;;  %v544_v54 = vsel %vm147_vm0, %v9006_v1, 0.0  ;;  %v546_v25 = vsel %vm147_vm0, %v9007_v46, 0.0  ;;  %v548_v28 = vsel %vm147_vm0, %v9008_v9, 0.0  ;;  %v550_v49 = vsel %vm147_vm0, %v9010_v55, 0.0  ;;  %v9011_v53 = vld [vmem:[#allocation59_spill] sm:$0xff] }
  0x6a   :  { %9005 = vst [vmem:[#allocation26_spill] sm:$0xff] %v4377_v4  ;;  %v4385_v36 = vadd.f32 %v534_v7, %v533_v8  ;;  %v540_v5 = vadd.f32 %v539_v22, %v538_v60  ;;  %v545_v3 = vadd.f32 %v544_v54, %v543_v62  ;;  %v551_v38 = vsel %vm147_vm0, %v9011_v53, 0.0  ;;  %v9012_v6 = vld [vmem:[#allocation63_spill] sm:$0xff]  ;;  %v9014_v46 = vld [vmem:[#allocation56_spill] sm:$0xff] }
  0x6b   :  { %v553_v47 = vsel %vm147_vm0, %v9012_v6, 0.0  ;;  %v9013_v1 = vld [vmem:[#allocation67_spill] sm:$0xff]  ;;  %v557_v31 = vsel %vm147_vm0, %v9014_v46, 0.0  ;;  %v552_v22 = vadd.f32 %v551_v38, %v550_v49  ;;  %v9016_v62 = vld [vmem:[#allocation60_spill] sm:$0xff]  ;;  %v569_v49 = vmul.f32 %v4321_v29, %v4321_v29 }
  0x6c   :  { %9009 = vst [vmem:[#allocation30_spill] sm:$0xff] %v4385_v36  ;;  %v555_v27 = vsel %vm147_vm0, %v9013_v1, 0.0  ;;  %v4397_v9 = vadd.f32 %v541_v32, %v540_v5  ;;  %v547_v7 = vadd.f32 %v546_v25, %v545_v3  ;;  %v558_v8 = vsel %vm147_vm0, %v9016_v62, 0.0  ;;  %v9017_v54 = vld [vmem:[#allocation64_spill] sm:$0xff] }
  0x6d   :  { %v559_v60 = vadd.f32 %v558_v8, %v557_v31  ;;  %v560_v53 = vsel %vm147_vm0, %v9017_v54, 0.0  ;;  %v9018_v55 = vld [vmem:[#allocation68_spill] sm:$0xff]  ;;  %v564_v1 = vmul.f32 %v4212_v52, %v4212_v52  ;;  %v554_v46 = vadd.f32 %v553_v47, %v552_v22 }
  0x6e   :  { %9015 = vst [vmem:[#allocation34_spill] sm:$0xff] %v4397_v9  ;;  %v562_v6 = vsel %vm147_vm0, %v9018_v55, 0.0  ;;  %v4407_v34 = vadd.f32 %v548_v28, %v547_v7  ;;  %v565_v32 = vmul.f32 %v4216_v39, %v4216_v39  ;;  %v566_v25 = vmul.f32 %v4269_v10, %v4269_v10 }
  0x6f   :  { %v561_v5 = vadd.f32 %v560_v53, %v559_v60  ;;  %v567_v31 = vmul.f32 %v4299_v37, %v4299_v37  ;;  %v568_v3 = vmul.f32 %v4307_v51, %v4307_v51  ;;  %v4419_v38 = vadd.f32 %v555_v27, %v554_v46 }
  0x70   :  { %9019 = vst [vmem:[#allocation23_spill] sm:$0xff] %v4407_v34  ;;  %v570_v28 = vmul.f32 %v4331_v12, %v4331_v12  ;;  %v571_v47 = vmul.f32 %v4345_v58, %v4345_v58  ;;  %v572_v53 = vmul.f32 %v4357_v0, %v4357_v0  ;;  %v573_v22 = vmul.f32 %v4367_v56, %v4367_v56 }
  0x71   :  { %9020 = vst [vmem:[#allocation27_spill] sm:$0xff] %v4419_v38  ;;  %v4427_v7 = vadd.f32 %v562_v6, %v561_v5  ;;  %v574_v8 = vmul.f32 %v4377_v4, %v4377_v4  ;;  %v575_v27 = vmul.f32 %v4385_v36, %v4385_v36  ;;  %v576_v46 = vmul.f32 %v4397_v9, %v4397_v9 }
  0x72   :  { %v577_v60 = vmul.f32 %v4407_v34, %v4407_v34  ;;  %v578_v0 = vmul.f32 %v4419_v38, %v4419_v38  ;;  %v580_v6 = vsel %vm147_vm0, %v564_v1, 0.0  ;;  %v581_v56 = vsel %vm147_vm0, %v565_v32, 0.0 }
  0x73   :  { %9021 = vst [vmem:[#allocation31_spill] sm:$0xff] %v4427_v7  ;;  %v579_v5 = vmul.f32 %v4427_v7, %v4427_v7  ;;  %v583_v4 = vsel %vm147_vm0, %v566_v25, 0.0  ;;  %v585_v36 = vsel %vm147_vm0, %v567_v31, 0.0  ;;  %v582_v58 = vadd.f32 %v581_v56, %v580_v6 }
  0x74   :  { %v593_v9 = vsel %vm147_vm0, %v568_v3, 0.0  ;;  %v594_v12 = vsel %vm147_vm0, %v569_v49, 0.0  ;;  %v596_v34 = vsel %vm147_vm0, %v570_v28, 0.0  ;;  %v598_v38 = vsel %vm147_vm0, %v571_v47, 0.0 }
  0x75   :  { %v595_v29 = vadd.f32 %v594_v12, %v593_v9  ;;  %v606_v1 = vsel %vm147_vm0, %v572_v53, 0.0  ;;  %v607_v7 = vsel %vm147_vm0, %v573_v22, 0.0  ;;  %v584_v51 = vadd.f32 %v583_v4, %v582_v58  ;;  %v4461_v12 = vld [vmem:[%s8500_s2 + $0x50] sm:$0xff] }
  0x76   :  { %v608_v32 = vadd.f32 %v607_v7, %v606_v1  ;;  %v609_v25 = vsel %vm147_vm0, %v574_v8, 0.0  ;;  %v611_v31 = vsel %vm147_vm0, %v575_v27, 0.0  ;;  %v619_v3 = vsel %vm147_vm0, %v576_v46, 0.0  ;;  %v4518_v1 = vld [vmem:[%s8500_s2 + $0x80] sm:$0xff] }
  0x77   :  { %v597_v56 = vadd.f32 %v596_v34, %v595_v29  ;;  %v620_v49 = vsel %vm147_vm0, %v577_v60, 0.0  ;;  %v622_v28 = vsel %vm147_vm0, %v578_v0, 0.0  ;;  %v4465_v4 = vmul.f32 %v4461_v12, %v4229_v35  ;;  %v4470_v34 = vld [vmem:[%s8500_s2 + $0x58] sm:$0xff]  ;;  %v4479_v29 = vld [vmem:[%s8500_s2 + $0x60] sm:$0xff] }
  0x78   :  { %v586_v58 = vadd.f32 %v585_v36, %v584_v51  ;;  %v610_v9 = vadd.f32 %v609_v25, %v608_v32  ;;  %v621_v47 = vadd.f32 %v620_v49, %v619_v3  ;;  %v4474_v0 = vmul.f32 %v4470_v34, %v4229_v35  ;;  %v4491_v35 = vld [vmem:[%s8500_s2 + $0x68] sm:$0xff]  ;;  %v4509_v60 = vld [vmem:[%s8500_s2 + $0x78] sm:$0xff]  ;;  %v4536_v49 = vld [vmem:[%s8500_s2 + $0x90] sm:$0xff] }
  0x79   :  { %9022 = vst [vmem:[#allocation35_spill] sm:$0xff] %v4465_v4  ;;  %v4483_v53 = vmul.f32 %v4479_v29, %v4243_v2  ;;  %v599_v51 = vadd.f32 %v598_v38, %v597_v56  ;;  %v624_v36 = vsel %vm147_vm0, %v579_v5, 0.0  ;;  %v9025_v7 = vmax.f32 %v4208_v21, 1e-16  ;;  %v4500_v38 = vld [vmem:[%s8500_s2 + $0x70] sm:$0xff]  ;;  %v4527_v3 = vld [vmem:[%s8500_s2 + $0x88] sm:$0xff] }
  0x7a   :  { %9023 = vst [vmem:[#allocation24_spill] sm:$0xff] %v4474_v0  ;;  %v587_v22 = vrot.slane %v586_v58, 4  ;;  %v612_v8 = vadd.f32 %v611_v31, %v610_v9  ;;  %v623_v27 = vadd.f32 %v622_v28, %v621_v47  ;;  %v4495_v46 = vmul.f32 %v4491_v35, %v4243_v2  ;;  %v3434_v4 = vld [vmem:[%s8500_s2 + $0x180] sm:$0xff] }
  0x7b   :  { %9024 = vst [vmem:[#allocation28_spill] sm:$0xff] %v4483_v53  ;;  %3184 = vrsqrt.f32 %v9025_v7  ;;  %v4504_v21 = vmul.f32 %v4500_v38, %v4243_v2  ;;  %v4513_v6 = vmul.f32 %v4509_v60, %v4243_v2  ;;  %v600_v5 = vrot.slane %v599_v51, 4 }
  0x7c   :  { %9026 = vst [vmem:[#allocation32_spill] sm:$0xff] %v4495_v46  ;;  %v4522_v32 = vmul.f32 %v4518_v1, %v4254_v30  ;;  %v588_v25 = vadd.f32 %v587_v22, %v586_v58  ;;  %v613_v31 = vrot.slane %v612_v8, 4  ;;  %v625_v56 = vadd.f32 %v624_v36, %v623_v27  ;;  %v4545_v58 = vld [vmem:[%s8500_s2 + $0x98] sm:$0xff]  ;;  %v4554_v36 = vld [vmem:[%s8500_s2 + $0xa0] sm:$0xff]  ;;  %v4563_v22 = vld [vmem:[%s8500_s2 + $0xa8] sm:$0xff] }
  0x7d   :  { %9027 = vst [vmem:[#allocation36_spill] sm:$0xff] %v4504_v21  ;;  %9028 = vst [vmem:[#allocation37_spill] sm:$0xff] %v4513_v6  ;;  %v4531_v2 = vmul.f32 %v4527_v3, %v4254_v30  ;;  %v4540_v28 = vmul.f32 %v4536_v49, %v4254_v30  ;;  %v4549_v9 = vmul.f32 %v4545_v58, %v4254_v30  ;;  %v4617_v6 = vld [vmem:[%s8500_s2 + $0xd8] sm:$0xff] }
  0x7e   :  { %9029 = vst [vmem:[#allocation41_spill] sm:$0xff] %v4522_v32  ;;  %v601_v47 = vadd.f32 %v600_v5, %v599_v51  ;;  %v4558_v7 = vmul.f32 %v4554_v36, %v4267_v20  ;;  %v4567_v27 = vmul.f32 %v4563_v22, %v4267_v20  ;;  %v614_v30 = vadd.f32 %v613_v31, %v612_v8  ;;  %v4572_v5 = vld [vmem:[%s8500_s2 + $0xb0] sm:$0xff]  ;;  %v4590_v8 = vld [vmem:[%s8500_s2 + $0xc0] sm:$0xff] }
  0x7f   :  { %9030 = vst [vmem:[#allocation45_spill] sm:$0xff] %v4531_v2  ;;  %9031 = vst [vmem:[#allocation49_spill] sm:$0xff] %v4540_v28  ;;  %v626_v51 = vrot.slane %v625_v56, 4  ;;  %v4594_v31 = vmul.f32 %v4590_v8, %v4275_v43  ;;  %v4621_v21 = vmul.f32 %v4617_v6, %v4275_v43  ;;  %v4655_v53 = vmul.f32 %v4291_v50, %v8985_v48 }
  0x80   :  { %9032 = vst [vmem:[#allocation38_spill] sm:$0xff] %v4549_v9  ;;  %9033 = vst [vmem:[#allocation42_spill] sm:$0xff] %v4558_v7  ;;  %v4576_v9 = vmul.f32 %v4572_v5, %v4267_v20  ;;  %v4581_v7 = vld [vmem:[%s8500_s2 + $0xb8] sm:$0xff]  ;;  %v4675_v48 = vmul.f32 %v4297_v41, %v8991_v63  ;;  %v4695_v63 = vmul.f32 %v4305_v57, %v8997_v61  ;;  %v9062_v61 = vld [vmem:[#allocation16_spill] sm:$0xff] }
  0x81   :  { %9034 = vst [vmem:[#allocation46_spill] sm:$0xff] %v4567_v27  ;;  %v4585_v28 = vmul.f32 %v4581_v7, %v4267_v20  ;;  %9037 = vst [vmem:[#allocation43_spill] sm:$0xff] %v4594_v31  ;;  %v589_v27 = vrot.slane %v588_v25, 2  ;;  %v4608_v20 = vld [vmem:[%s8500_s2 + $0xd0] sm:$0xff]  ;;  %v602_v31 = vrot.slane %v601_v47, 2  ;;  %v627_v32 = vadd.f32 %v626_v51, %v625_v56  ;;  %v4635_v56 = vld [vmem:[%s8500_s2 + $0xe8] sm:$0xff] }
  0x82   :  { %9035 = vst [vmem:[#allocation50_spill] sm:$0xff] %v4576_v9  ;;  %v4599_v9 = vld [vmem:[%s8500_s2 + $0xc8] sm:$0xff]  ;;  %9040 = vst [vmem:[#allocation40_spill] sm:$0xff] %v4621_v21  ;;  %v4639_v51 = vmul.f32 %v4635_v56, %v4283_v23  ;;  %v4643_v21 = vmul.f32 %v4283_v23, %v8970_v40  ;;  %v4663_v40 = vmul.f32 %v4291_v50, %v8994_v24 }
  0x83   :  { %9036 = vst [vmem:[#allocation39_spill] sm:$0xff] %v4585_v28  ;;  %v4603_v2 = vmul.f32 %v4599_v9, %v4275_v43  ;;  %v4612_v28 = vmul.f32 %v4608_v20, %v4275_v43  ;;  %v615_v43 = vrot.slane %v614_v30, 2  ;;  %9046 = vst [vmem:[#allocation68_spill] sm:$0xff] %v4655_v53  ;;  %v628_v0 = vrot.slane %v627_v32, 2  ;;  %v3431_v53 = vld [vmem:[%s8500_s2 + $0x168] sm:$0xff] }
  0x84   :  { %9042 = vst [vmem:[#allocation48_spill] sm:$0xff] %v4639_v51  ;;  %9043 = vst [vmem:[#allocation52_spill] sm:$0xff] %v4643_v21  ;;  %v4659_v51 = vmul.f32 %v4291_v50, %v8990_v19  ;;  %v590_v21 = vadd.f32 %v589_v27, %v588_v25  ;;  %v603_v19 = vadd.f32 %v602_v31, %v601_v47 }
  0x85   :  { %9038 = vst [vmem:[#allocation47_spill] sm:$0xff] %v4603_v2  ;;  %9039 = vst [vmem:[#allocation51_spill] sm:$0xff] %v4612_v28  ;;  %v4626_v2 = vld [vmem:[%s8500_s2 + $0xe0] sm:$0xff]  ;;  %v4647_v28 = vmul.f32 %v4283_v23, %v8975_v45  ;;  %v4667_v45 = vmul.f32 %v4297_v41, %v8979_v44  ;;  %v4683_v24 = vmul.f32 %v4305_v57, %v8980_v17 }
  0x86   :  { %v4630_v46 = vmul.f32 %v4626_v2, %v4283_v23  ;;  %9047 = vst [vmem:[#allocation69_spill] sm:$0xff] %v4659_v51  ;;  %9048 = vst [vmem:[#allocation70_spill] sm:$0xff] %v4663_v40  ;;  %v3185_v23 = vpop.eup %3184  ;;  %v4687_v44 = vmul.f32 %v4305_v57, %v8987_v59  ;;  %v616_v25 = vadd.f32 %v615_v43, %v614_v30  ;;  %v9068_v43 = vld [vmem:[#allocation56_spill] sm:$0xff]  ;;  %v3429_v40 = vld [vmem:[%s8500_s2 + $0x158] sm:$0xff] }
  0x87   :  { %9044 = vst [vmem:[#allocation60_spill] sm:$0xff] %v4647_v28  ;;  %9049 = vst [vmem:[#allocation71_spill] sm:$0xff] %v4667_v45  ;;  %v4703_v17 = vmul.f32 %v4313_v26, %v8988_v16  ;;  %v4707_v59 = vmul.f32 %v4313_v26, %v8993_v13  ;;  %v629_v47 = vadd.f32 %v628_v0, %v627_v32  ;;  %v9066_v16 = vld [vmem:[#allocation55_spill] sm:$0xff]  ;;  %v604_v13 = vrot.slane %v603_v19, 1  ;;  %v9073_v32 = vld [vmem:[#allocation58_spill] sm:$0xff] }
  0x88   :  { %9041 = vst [vmem:[#allocation44_spill] sm:$0xff] %v4630_v46  ;;  %v4651_v46 = vmul.f32 %v4291_v50, %v8978_v18  ;;  %v4671_v18 = vmul.f32 %v4297_v41, %v8986_v14  ;;  %9051 = vst [vmem:[#allocation73_spill] sm:$0xff] %v4675_v48  ;;  %v4679_v50 = vmul.f32 %v4297_v41, %v8996_v15  ;;  %v591_v15 = vrot.slane %v590_v21, 1  ;;  %v3426_v48 = vld [vmem:[%s8500_s2 + $0x140] sm:$0xff]  ;;  %v3428_v45 = vld [vmem:[%s8500_s2 + $0x150] sm:$0xff] }
  0x89   :  { %9053 = vst [vmem:[#allocation75_spill] sm:$0xff] %v4683_v24  ;;  %9054 = vst [vmem:[#allocation76_spill] sm:$0xff] %v4687_v44  ;;  %v4691_v14 = vmul.f32 %v4305_v57, %v8992_v42  ;;  %v4699_v41 = vmul.f32 %v4313_v26, %v8983_v33  ;;  %v4711_v42 = vmul.f32 %v4313_v26, %v8998_v11  ;;  %v9061_v57 = vld [vmem:[#allocation53_spill] sm:$0xff]  ;;  %v9064_v33 = vld [vmem:[#allocation54_spill] sm:$0xff] }
  0x8a   :  { %9045 = vst [vmem:[#allocation64_spill] sm:$0xff] %v4651_v46  ;;  %9050 = vst [vmem:[#allocation72_spill] sm:$0xff] %v4671_v18  ;;  %v4715_v27 = vmul.f32 %v9062_v61, %v9061_v57  ;;  %v4719_v30 = vmul.f32 %v9062_v61, %v9064_v33  ;;  %v4723_v31 = vmul.f32 %v9062_v61, %v9066_v16  ;;  %v9070_v11 = vld [vmem:[#allocation57_spill] sm:$0xff]  ;;  %v9071_v26 = vld [vmem:[#allocation11_spill] sm:$0xff] }
  0x8b   :  { %9052 = vst [vmem:[#allocation74_spill] sm:$0xff] %v4679_v50  ;;  %9055 = vst [vmem:[#allocation77_spill] sm:$0xff] %v4691_v14  ;;  %v4731_v0 = vmul.f32 %v9071_v26, %v9070_v11  ;;  %v4735_v57 = vmul.f32 %v9071_v26, %v9073_v32  ;;  %v9075_v33 = vld [vmem:[#allocation59_spill] sm:$0xff]  ;;  %v4743_v16 = vmul.f32 %v9071_v26, %v9016_v62  ;;  %v9086_v62 = vld [vmem:[#allocation65_spill] sm:$0xff] }
  0x8c   :  { %9056 = vst [vmem:[#allocation78_spill] sm:$0xff] %v4695_v63  ;;  %9057 = vst [vmem:[#allocation79_spill] sm:$0xff] %v4699_v41  ;;  %v3421_v41 = vld [vmem:[%s8500_s2 + $0x118] sm:$0xff]  ;;  %v3422_v14 = vld [vmem:[%s8500_s2 + $0x120] sm:$0xff] }
  0x8d   :  { %9058 = vst [vmem:[#allocation80_spill] sm:$0xff] %v4703_v17  ;;  %9059 = vst [vmem:[#allocation81_spill] sm:$0xff] %v4707_v59  ;;  %v4727_v59 = vmul.f32 %v9062_v61, %v9068_v43  ;;  %v9079_v61 = vld [vmem:[#allocation25_spill] sm:$0xff]  ;;  %v3423_v44 = vld [vmem:[%s8500_s2 + $0x128] sm:$0xff] }
  0x8e   :  { %9060 = vst [vmem:[#allocation82_spill] sm:$0xff] %v4711_v42  ;;  %9063 = vst [vmem:[#allocation53_spill] sm:$0xff] %v4715_v27  ;;  %v617_v27 = vrot.slane %v616_v25, 1  ;;  %v3424_v24 = vld [vmem:[%s8500_s2 + $0x130] sm:$0xff]  ;;  %v3425_v50 = vld [vmem:[%s8500_s2 + $0x138] sm:$0xff] }
  0x8f   :  { %9065 = vst [vmem:[#allocation16_spill] sm:$0xff] %v4719_v30  ;;  %9067 = vst [vmem:[#allocation54_spill] sm:$0xff] %v4723_v31  ;;  %v4739_v30 = vmul.f32 %v9071_v26, %v9075_v33  ;;  %v9078_v31 = vld [vmem:[#allocation61_spill] sm:$0xff]  ;;  %v4759_v33 = vmul.f32 %v9079_v61, %v9017_v54  ;;  %v4762_v26 = vmul.f32 %v3185_v23, %v9086_v62  ;;  %v3406_v54 = vld [vmem:[%s8500_s2] sm:$0xff] }
  0x90   :  { %9069 = vst [vmem:[#allocation55_spill] sm:$0xff] %v4727_v59  ;;  %9072 = vst [vmem:[#allocation56_spill] sm:$0xff] %v4731_v0  ;;  %v4747_v43 = vmul.f32 %v9079_v61, %v9078_v31  ;;  %v9081_v59 = vld [vmem:[#allocation62_spill] sm:$0xff]  ;;  %v9083_v0 = vld [vmem:[#allocation63_spill] sm:$0xff] }
  0x91   :  { %9074 = vst [vmem:[#allocation57_spill] sm:$0xff] %v4735_v57  ;;  %9076 = vst [vmem:[#allocation11_spill] sm:$0xff] %v4739_v30  ;;  %v4751_v11 = vmul.f32 %v9079_v61, %v9081_v59  ;;  %v4755_v32 = vmul.f32 %v9079_v61, %v9083_v0  ;;  %v592_v30 = vadd.f32 %v591_v15, %v590_v21  ;;  %v630_v57 = vrot.slane %v629_v47, 1  ;;  %v3407_v15 = vld [vmem:[%s8500_s2 + $0x8] sm:$0xff]  ;;  %v3430_v51 = vld [vmem:[%s8500_s2 + $0x160] sm:$0xff] }
  0x92   :  { %9077 = vst [vmem:[#allocation58_spill] sm:$0xff] %v4743_v16  ;;  %9080 = vst [vmem:[#allocation59_spill] sm:$0xff] %v4747_v43  ;;  %v9088_v16 = vld [vmem:[#allocation66_spill] sm:$0xff]  ;;  %v9090_v43 = vld [vmem:[#allocation67_spill] sm:$0xff]  ;;  %v605_v59 = vadd.f32 %v604_v13, %v603_v19  ;;  %v618_v0 = vadd.f32 %v617_v27, %v616_v25  ;;  %v4777_v21 = vsub.f32 %v4212_v52, %v3406_v54 }
  0x93   :  { %9082 = vst [vmem:[#allocation61_spill] sm:$0xff] %v4751_v11  ;;  %9084 = vst [vmem:[#allocation25_spill] sm:$0xff] %v4755_v32  ;;  %v4765_v31 = vmul.f32 %v3185_v23, %v9088_v16  ;;  %v4768_v42 = vmul.f32 %v3185_v23, %v9090_v43  ;;  %v4771_v11 = vmul.f32 %v3185_v23, %v9018_v55  ;;  %v3408_v55 = vld [vmem:[%s8500_s2 + $0x10] sm:$0xff]  ;;  %v3409_v19 = vld [vmem:[%s8500_s2 + $0x18] sm:$0xff]  ;;  %v632_v54 = vmax.f32 %v592_v30, 1.6e-15 }
  0x94   :  { %9085 = vst [vmem:[#allocation62_spill] sm:$0xff] %v4759_v33  ;;  %9087 = vst [vmem:[#allocation63_spill] sm:$0xff] %v4762_v26  ;;  %v4783_v16 = vsub.f32 %v4216_v39, %v3407_v15  ;;  %v4789_v23 = vsub.f32 %v4269_v10, %v3408_v55  ;;  %v4795_v25 = vsub.f32 %v4299_v37, %v3409_v19  ;;  %v3410_v27 = vld [vmem:[%s8500_s2 + $0x20] sm:$0xff]  ;;  %v3411_v61 = vld [vmem:[%s8500_s2 + $0x28] sm:$0xff] }
  0x95   :  { %9089 = vst [vmem:[#allocation65_spill] sm:$0xff] %v4765_v31  ;;  %9091 = vst [vmem:[#allocation66_spill] sm:$0xff] %v4768_v42  ;;  %v4801_v13 = vsub.f32 %v4212_v52, %v3410_v27  ;;  %v4807_v43 = vsub.f32 %v4216_v39, %v3411_v61  ;;  %v631_v62 = vadd.f32 %v630_v57, %v629_v47  ;;  %v3412_v15 = vld [vmem:[%s8500_s2 + $0x30] sm:$0xff]  ;;  %v3413_v19 = vld [vmem:[%s8500_s2 + $0x38] sm:$0xff]  ;;  %3186 = vrsqrt.f32 %v632_v54 }
  0x96   :  { %9092 = vst [vmem:[#allocation67_spill] sm:$0xff] %v4771_v11  ;;  %9093 = vst [vmem:[#allocation83_spill] sm:$0xff] %v4783_v16  ;;  %v4813_v55 = vsub.f32 %v4269_v10, %v3412_v15  ;;  %v4819_v27 = vsub.f32 %v4299_v37, %v3413_v19  ;;  %v633_v11 = vmax.f32 %v605_v59, 1.6e-15  ;;  %v3414_v47 = vld [vmem:[%s8500_s2 + $0x40] sm:$0xff]  ;;  %v3415_v57 = vld [vmem:[%s8500_s2 + $0x48] sm:$0xff]  ;;  %v4835_v15 = vsub.f32 %v4269_v10, %v4461_v12 }
  0x97   :  { %9094 = vst [vmem:[#allocation84_spill] sm:$0xff] %v4789_v23  ;;  %9095 = vst [vmem:[#allocation85_spill] sm:$0xff] %v4795_v25  ;;  %v4825_v30 = vsub.f32 %v4212_v52, %v3414_v47  ;;  %v4831_v61 = vsub.f32 %v4216_v39, %v3415_v57  ;;  %v634_v19 = vmax.f32 %v618_v0, 1.6e-15  ;;  %v4839_v59 = vsub.f32 %v4299_v37, %v4470_v34  ;;  %v9108_v0 = vld [vmem:[#allocation13_spill] sm:$0xff]  ;;  %v9110_v31 = vld [vmem:[#allocation20_spill] sm:$0xff] }
  0x98   :  { %9096 = vst [vmem:[#allocation86_spill] sm:$0xff] %v4801_v13  ;;  %9097 = vst [vmem:[#allocation87_spill] sm:$0xff] %v4807_v43  ;;  %v4843_v47 = vsub.f32 %v4212_v52, %v4479_v29  ;;  %v4847_v42 = vsub.f32 %v4216_v39, %v4491_v35  ;;  %v4851_v57 = vsub.f32 %v4269_v10, %v4500_v38  ;;  %v635_v26 = vmax.f32 %v631_v62, 1.6e-15  ;;  %v9112_v35 = vld [vmem:[#allocation21_spill] sm:$0xff]  ;;  %v3419_v62 = vld [vmem:[%s8500_s2 + $0x108] sm:$0xff] }
  0x99   :  { %9098 = vst [vmem:[#allocation88_spill] sm:$0xff] %v4813_v55  ;;  %9099 = vst [vmem:[#allocation89_spill] sm:$0xff] %v4819_v27  ;;  %v4855_v12 = vsub.f32 %v4299_v37, %v4509_v60  ;;  %v4859_v34 = vsub.f32 %v9108_v0, %v4518_v1  ;;  %v4863_v29 = vsub.f32 %v9110_v31, %v4527_v3  ;;  %v9114_v38 = vld [vmem:[#allocation29_spill] sm:$0xff]  ;;  %3188 = vrsqrt.f32 %v633_v11  ;;  %v9130_v54 = vld [vmem:[#allocation22_spill] sm:$0xff] }
  0x9a   :  { %9100 = vst [vmem:[#allocation90_spill] sm:$0xff] %v4825_v30  ;;  %9101 = vst [vmem:[#allocation91_spill] sm:$0xff] %v4831_v61  ;;  %v4867_v33 = vsub.f32 %v9112_v35, %v4536_v49  ;;  %v4871_v32 = vsub.f32 %v9114_v38, %v4545_v58  ;;  %v4875_v60 = vsub.f32 %v9108_v0, %v4554_v36  ;;  %3190 = vrsqrt.f32 %v634_v19  ;;  %v3427_v18 = vld [vmem:[%s8500_s2 + $0x148] sm:$0xff]  ;;  %v3432_v46 = vld [vmem:[%s8500_s2 + $0x170] sm:$0xff] }
  0x9b   :  { %9102 = vst [vmem:[#allocation92_spill] sm:$0xff] %v4835_v15  ;;  %9103 = vst [vmem:[#allocation93_spill] sm:$0xff] %v4839_v59  ;;  %v4879_v1 = vsub.f32 %v9110_v31, %v4563_v22  ;;  %v4883_v3 = vsub.f32 %v9112_v35, %v4572_v5  ;;  %v4887_v49 = vsub.f32 %v9114_v38, %v4581_v7  ;;  %3192 = vrsqrt.f32 %v635_v26  ;;  %v3433_v28 = vld [vmem:[%s8500_s2 + $0x178] sm:$0xff] }
  0x9c   :  { %9104 = vst [vmem:[#allocation94_spill] sm:$0xff] %v4843_v47  ;;  %9105 = vst [vmem:[#allocation95_spill] sm:$0xff] %v4847_v42  ;;  %v4891_v58 = vsub.f32 %v9108_v0, %v4590_v8  ;;  %v4895_v36 = vsub.f32 %v9110_v31, %v4599_v9  ;;  %v4899_v22 = vsub.f32 %v9112_v35, %v4608_v20  ;;  %v3416_v9 = vld [vmem:[%s8500_s2 + $0xf0] sm:$0xff] }
  0x9d   :  { %9106 = vst [vmem:[#allocation96_spill] sm:$0xff] %v4851_v57  ;;  %9107 = vst [vmem:[#allocation97_spill] sm:$0xff] %v4855_v12  ;;  %v4903_v5 = vsub.f32 %v9114_v38, %v4617_v6  ;;  %v4907_v7 = vsub.f32 %v9108_v0, %v4626_v2  ;;  %v4911_v8 = vsub.f32 %v9110_v31, %v4635_v56  ;;  %v3417_v6 = vld [vmem:[%s8500_s2 + $0xf8] sm:$0xff]  ;;  %v3418_v2 = vld [vmem:[%s8500_s2 + $0x100] sm:$0xff] }
  0x9e   :  { %9109 = vst [vmem:[#allocation13_spill] sm:$0xff] %v4859_v34  ;;  %9111 = vst [vmem:[#allocation20_spill] sm:$0xff] %v4863_v29  ;;  %v4917_v20 = vsub.f32 %v9112_v35, %v3416_v9  ;;  %v4923_v11 = vsub.f32 %v9114_v38, %v3417_v6  ;;  %v9128_v56 = vld [vmem:[#allocation33_spill] sm:$0xff]  ;;  %v4935_v19 = vsub.f32 %v9130_v54, %v3419_v62  ;;  %v9132_v6 = vld [vmem:[#allocation26_spill] sm:$0xff] }
  0x9f   :  { %9113 = vst [vmem:[#allocation21_spill] sm:$0xff] %v4867_v33  ;;  %9115 = vst [vmem:[#allocation29_spill] sm:$0xff] %v4871_v32  ;;  %v4929_v26 = vsub.f32 %v9128_v56, %v3418_v2  ;;  %v3420_v9 = vld [vmem:[%s8500_s2 + $0x110] sm:$0xff]  ;;  %v9134_v2 = vld [vmem:[#allocation30_spill] sm:$0xff]  ;;  %v4953_v62 = vsub.f32 %v9128_v56, %v3422_v14 }
  0xa0   :  { %9116 = vst [vmem:[#allocation98_spill] sm:$0xff] %v4875_v60  ;;  %9117 = vst [vmem:[#allocation99_spill] sm:$0xff] %v4879_v1  ;;  %v4941_v17 = vsub.f32 %v9132_v6, %v3420_v9  ;;  %v4947_v63 = vsub.f32 %v9134_v2, %v3421_v41  ;;  %v4959_v9 = vsub.f32 %v9130_v54, %v3423_v44 }
  0xa1   :  { %9118 = vst [vmem:[#allocation100_spill] sm:$0xff] %v4883_v3  ;;  %9119 = vst [vmem:[#allocation101_spill] sm:$0xff] %v4887_v49  ;;  %v4965_v41 = vsub.f32 %v9132_v6, %v3424_v24  ;;  %v4971_v14 = vsub.f32 %v9134_v2, %v3425_v50  ;;  %v4977_v44 = vsub.f32 %v9128_v56, %v3426_v48 }
  0xa2   :  { %9120 = vst [vmem:[#allocation102_spill] sm:$0xff] %v4891_v58  ;;  %9121 = vst [vmem:[#allocation103_spill] sm:$0xff] %v4895_v36  ;;  %v4983_v24 = vsub.f32 %v9130_v54, %v3427_v18  ;;  %v4989_v50 = vsub.f32 %v9132_v6, %v3428_v45  ;;  %v4995_v48 = vsub.f32 %v9134_v2, %v3429_v40 }
  0xa3   :  { %9122 = vst [vmem:[#allocation104_spill] sm:$0xff] %v4899_v22  ;;  %9123 = vst [vmem:[#allocation105_spill] sm:$0xff] %v4903_v5  ;;  %v5001_v18 = vsub.f32 %v9128_v56, %v3430_v51  ;;  %v5007_v45 = vsub.f32 %v9130_v54, %v3431_v53  ;;  %v5013_v40 = vsub.f32 %v9132_v6, %v3432_v46  ;;  %v9148_v53 = vld [vmem:[#allocation34_spill] sm:$0xff]  ;;  %v9150_v46 = vld [vmem:[#allocation23_spill] sm:$0xff] }
  0xa4   :  { %9124 = vst [vmem:[#allocation106_spill] sm:$0xff] %v4907_v7  ;;  %9125 = vst [vmem:[#allocation107_spill] sm:$0xff] %v4911_v8  ;;  %v5019_v51 = vsub.f32 %v9134_v2, %v3433_v28  ;;  %v9152_v28 = vld [vmem:[#allocation27_spill] sm:$0xff] }
  0xa5   :  { %9126 = vst [vmem:[#allocation108_spill] sm:$0xff] %v4917_v20  ;;  %9127 = vst [vmem:[#allocation109_spill] sm:$0xff] %v4923_v11 }
  0xa6   :  { %9129 = vst [vmem:[#allocation33_spill] sm:$0xff] %v4929_v26  ;;  %9131 = vst [vmem:[#allocation22_spill] sm:$0xff] %v4935_v19 }
  0xa7   :  { %9133 = vst [vmem:[#allocation26_spill] sm:$0xff] %v4941_v17  ;;  %9135 = vst [vmem:[#allocation30_spill] sm:$0xff] %v4947_v63 }
  0xa8   :  { %9136 = vst [vmem:[#allocation110_spill] sm:$0xff] %v4953_v62  ;;  %9137 = vst [vmem:[#allocation111_spill] sm:$0xff] %v4959_v9 }
  0xa9   :  { %9138 = vst [vmem:[#allocation112_spill] sm:$0xff] %v4965_v41  ;;  %9139 = vst [vmem:[#allocation113_spill] sm:$0xff] %v4971_v14  ;;  %v3446_v14 = vld [vmem:[%s8500_s2 + $0x1e0] sm:$0xff]  ;;  %v720_v41 = vmul.f32 %v4777_v21, %v4777_v21 }
  0xaa   :  { %9140 = vst [vmem:[#allocation114_spill] sm:$0xff] %v4977_v44  ;;  %9141 = vst [vmem:[#allocation115_spill] sm:$0xff] %v4983_v24  ;;  %v3438_v24 = vld [vmem:[%s8500_s2 + $0x1a0] sm:$0xff] }
  0xab   :  { %9142 = vst [vmem:[#allocation116_spill] sm:$0xff] %v4989_v50  ;;  %9143 = vst [vmem:[#allocation117_spill] sm:$0xff] %v4995_v48  ;;  %v3436_v48 = vld [vmem:[%s8500_s2 + $0x190] sm:$0xff]  ;;  %v3437_v50 = vld [vmem:[%s8500_s2 + $0x198] sm:$0xff] }
  0xac   :  { %9144 = vst [vmem:[#allocation118_spill] sm:$0xff] %v5001_v18  ;;  %9145 = vst [vmem:[#allocation119_spill] sm:$0xff] %v5007_v45  ;;  %v5025_v45 = vsub.f32 %v9148_v53, %v3434_v4  ;;  %v3435_v18 = vld [vmem:[%s8500_s2 + $0x188] sm:$0xff]  ;;  %v3442_v44 = vld [vmem:[%s8500_s2 + $0x1c0] sm:$0xff] }
  0xad   :  { %9146 = vst [vmem:[#allocation120_spill] sm:$0xff] %v5013_v40  ;;  %9147 = vst [vmem:[#allocation121_spill] sm:$0xff] %v5019_v51  ;;  %v5031_v40 = vsub.f32 %v9150_v46, %v3435_v18  ;;  %v5037_v51 = vsub.f32 %v9152_v28, %v3436_v48  ;;  %v9154_v4 = vld [vmem:[#allocation31_spill] sm:$0xff]  ;;  %v5049_v18 = vsub.f32 %v9148_v53, %v3438_v24  ;;  %v3441_v24 = vld [vmem:[%s8500_s2 + $0x1b8] sm:$0xff] }
  0xae   :  { %9149 = vst [vmem:[#allocation34_spill] sm:$0xff] %v5025_v45  ;;  %v5043_v45 = vsub.f32 %v9154_v4, %v3437_v50  ;;  %v3439_v48 = vld [vmem:[%s8500_s2 + $0x1a8] sm:$0xff]  ;;  %v3440_v50 = vld [vmem:[%s8500_s2 + $0x1b0] sm:$0xff] }
  0xaf   :  { %9151 = vst [vmem:[#allocation23_spill] sm:$0xff] %v5031_v40  ;;  %9153 = vst [vmem:[#allocation27_spill] sm:$0xff] %v5037_v51  ;;  %v3187_v40 = vpop.eup %3186  ;;  %v5055_v51 = vsub.f32 %v9150_v46, %v3439_v48  ;;  %v5073_v48 = vsub.f32 %v9148_v53, %v3442_v44  ;;  %v3445_v44 = vld [vmem:[%s8500_s2 + $0x1d8] sm:$0xff] }
  0xb0   :  { %9155 = vst [vmem:[#allocation31_spill] sm:$0xff] %v5043_v45  ;;  %9156 = vst [vmem:[#allocation122_spill] sm:$0xff] %v5049_v18  ;;  %v5061_v45 = vsub.f32 %v9152_v28, %v3440_v50  ;;  %v5067_v18 = vsub.f32 %v9154_v4, %v3441_v24  ;;  %v3443_v50 = vld [vmem:[%s8500_s2 + $0x1c8] sm:$0xff]  ;;  %v3444_v24 = vld [vmem:[%s8500_s2 + $0x1d0] sm:$0xff] }
  0xb1   :  { %9157 = vst [vmem:[#allocation123_spill] sm:$0xff] %v5055_v51  ;;  %9160 = vst [vmem:[#allocation126_spill] sm:$0xff] %v5073_v48  ;;  %v3189_v51 = vpop.eup %3188  ;;  %v5091_v48 = vsub.f32 %v9154_v4, %v3445_v44  ;;  %v3448_v44 = vld [vmem:[%s8500_s2 + $0x1f0] sm:$0xff] }
  0xb2   :  { %9158 = vst [vmem:[#allocation124_spill] sm:$0xff] %v5061_v45  ;;  %9159 = vst [vmem:[#allocation125_spill] sm:$0xff] %v5067_v18  ;;  %v5079_v45 = vsub.f32 %v9150_v46, %v3443_v50  ;;  %v5085_v18 = vsub.f32 %v9152_v28, %v3444_v24  ;;  %v5097_v50 = vsub.f32 %v9148_v53, %v3446_v14  ;;  %v3447_v24 = vld [vmem:[%s8500_s2 + $0x1e8] sm:$0xff]  ;;  %v3449_v14 = vld [vmem:[%s8500_s2 + $0x1f8] sm:$0xff] }
  0xb3   :  { %9163 = vst [vmem:[#allocation129_spill] sm:$0xff] %v5091_v48  ;;  %v5109_v48 = vsub.f32 %v9152_v28, %v3448_v44  ;;  %v722_v44 = vmul.f32 %v4789_v23, %v4789_v23  ;;  %v5146_v23 = vmul.f32 %v3189_v51, %v9112_v35 }
  0xb4   :  { %9161 = vst [vmem:[#allocation127_spill] sm:$0xff] %v5079_v45  ;;  %9162 = vst [vmem:[#allocation128_spill] sm:$0xff] %v5085_v18  ;;  %v3191_v45 = vpop.eup %3190  ;;  %v5103_v18 = vsub.f32 %v9150_v46, %v3447_v24  ;;  %v5120_v24 = vmul.f32 %v3187_v40, %v4212_v52  ;;  %v5137_v52 = vmul.f32 %v3187_v40, %v4299_v37 }
  0xb5   :  { %9164 = vst [vmem:[#allocation130_spill] sm:$0xff] %v5097_v50  ;;  %9166 = vst [vmem:[#allocation132_spill] sm:$0xff] %v5109_v48  ;;  %v5115_v50 = vsub.f32 %v9154_v4, %v3449_v14  ;;  %v5128_v48 = vmul.f32 %v4795_v25, %v4795_v25  ;;  %v3193_v9 = vpop.eup %3192  ;;  %v5131_v14 = vmul.f32 %v3187_v40, %v4216_v39 }
  0xb6   :  { %9165 = vst [vmem:[#allocation131_spill] sm:$0xff] %v5103_v18  ;;  %9168 = vst [vmem:[#allocation134_spill] sm:$0xff] %v5120_v24  ;;  %v721_v18 = vmul.f32 %v4783_v16, %v4783_v16  ;;  %v5140_v24 = vmul.f32 %v3189_v51, %v9108_v0  ;;  %v5143_v16 = vmul.f32 %v3189_v51, %v9110_v31 }
  0xb7   :  { %9167 = vst [vmem:[#allocation133_spill] sm:$0xff] %v5115_v50  ;;  %9169 = vst [vmem:[#allocation135_spill] sm:$0xff] %v5131_v14  ;;  %v5134_v50 = vmul.f32 %v3187_v40, %v4269_v10  ;;  %v5149_v25 = vmul.f32 %v3189_v51, %v9114_v38  ;;  %v5152_v39 = vmul.f32 %v3191_v45, %v9128_v56 }
  0xb8   :  { %9171 = vst [vmem:[#allocation137_spill] sm:$0xff] %v5137_v52  ;;  %9172 = vst [vmem:[#allocation138_spill] sm:$0xff] %v5140_v24  ;;  %v5155_v10 = vmul.f32 %v3191_v45, %v9130_v54  ;;  %v5158_v37 = vmul.f32 %v3191_v45, %v9132_v6  ;;  %v5161_v0 = vmul.f32 %v3191_v45, %v9134_v2 }
  0xb9   :  { %9170 = vst [vmem:[#allocation136_spill] sm:$0xff] %v5134_v50  ;;  %9173 = vst [vmem:[#allocation139_spill] sm:$0xff] %v5143_v16  ;;  %v724_v31 = vmul.f32 %v4801_v13, %v4801_v13  ;;  %v5166_v35 = vmul.f32 %v3193_v9, %v9148_v53  ;;  %v725_v38 = vmul.f32 %v4807_v43, %v4807_v43 }
  0xba   :  { %9174 = vst [vmem:[#allocation140_spill] sm:$0xff] %v5146_v23  ;;  %9175 = vst [vmem:[#allocation141_spill] sm:$0xff] %v5149_v25  ;;  %v726_v56 = vmul.f32 %v4813_v55, %v4813_v55  ;;  %v727_v54 = vmul.f32 %v4819_v27, %v4819_v27  ;;  %v5175_v6 = vmul.f32 %v3193_v9, %v9150_v46  ;;  %v9206_v27 = vld [vmem:[#allocation129_spill] sm:$0xff] }
  0xbb   :  { %9176 = vst [vmem:[#allocation142_spill] sm:$0xff] %v5152_v39  ;;  %9177 = vst [vmem:[#allocation143_spill] sm:$0xff] %v5155_v10  ;;  %v5178_v2 = vmul.f32 %v3193_v9, %v9152_v28  ;;  %v5181_v45 = vmul.f32 %v3193_v9, %v9154_v4  ;;  %v728_v40 = vmul.f32 %v4825_v30, %v4825_v30  ;;  %v797_v16 = vsel %vm147_vm0, %v724_v31, 0.0  ;;  %v9205_v30 = vld [vmem:[#allocation128_spill] sm:$0xff] }
  0xbc   :  { %9178 = vst [vmem:[#allocation144_spill] sm:$0xff] %v5158_v37  ;;  %9179 = vst [vmem:[#allocation145_spill] sm:$0xff] %v5161_v0  ;;  %v729_v51 = vmul.f32 %v4831_v61, %v4831_v61  ;;  %v730_v53 = vmul.f32 %v4835_v15, %v4835_v15  ;;  %v732_v46 = vmul.f32 %v4843_v47, %v4843_v47  ;;  %v784_v0 = vsel %vm147_vm0, %v720_v41, 0.0  ;;  %v9198_v47 = vld [vmem:[#allocation31_spill] sm:$0xff]  ;;  %v9207_v55 = vld [vmem:[#allocation130_spill] sm:$0xff] }
  0xbd   :  { %9180 = vst [vmem:[#allocation146_spill] sm:$0xff] %v5166_v35  ;;  %9181 = vst [vmem:[#allocation147_spill] sm:$0xff] %v5175_v6  ;;  %v731_v35 = vmul.f32 %v4839_v59, %v4839_v59  ;;  %v733_v28 = vmul.f32 %v4847_v42, %v4847_v42  ;;  %v734_v9 = vmul.f32 %v4851_v57, %v4851_v57  ;;  %v785_v37 = vsel %vm147_vm0, %v721_v18, 0.0 }
  0xbe   :  { %9182 = vst [vmem:[#allocation148_spill] sm:$0xff] %v5178_v2  ;;  %9183 = vst [vmem:[#allocation149_spill] sm:$0xff] %v5181_v45  ;;  %v5199_v4 = vmul.f32 %v4855_v12, %v4855_v12  ;;  %v736_v45 = vmul.f32 %v4859_v34, %v4859_v34  ;;  %v737_v2 = vmul.f32 %v4863_v29, %v4863_v29  ;;  %v798_v24 = vsel %vm147_vm0, %v725_v38, 0.0  ;;  %v9190_v29 = vld [vmem:[#allocation117_spill] sm:$0xff]  ;;  %v9197_v12 = vld [vmem:[#allocation27_spill] sm:$0xff] }
  0xbf   :  { %v5207_v6 = vmul.f32 %v4867_v33, %v4867_v33  ;;  %v5213_v10 = vmul.f32 %v4871_v32, %v4871_v32  ;;  %v5217_v39 = vmul.f32 %v4875_v60, %v4875_v60  ;;  %v5221_v25 = vmul.f32 %v4879_v1, %v4879_v1  ;;  %v9188_v1 = vld [vmem:[#allocation115_spill] sm:$0xff] }
  0xc0   :  { %v5225_v23 = vmul.f32 %v4883_v3, %v4883_v3  ;;  %v5229_v41 = vmul.f32 %v4887_v49, %v4887_v49  ;;  %v5233_v18 = vmul.f32 %v4891_v58, %v4891_v58  ;;  %v5239_v52 = vmul.f32 %v4895_v36, %v4895_v36  ;;  %v9187_v3 = vld [vmem:[#allocation114_spill] sm:$0xff] }
  0xc1   :  { %v5243_v50 = vmul.f32 %v4899_v22, %v4899_v22  ;;  %v5247_v14 = vmul.f32 %v4903_v5, %v4903_v5  ;;  %v786_v49 = vadd.f32 %v785_v37, %v784_v0  ;;  %v5251_v58 = vmul.f32 %v4907_v7, %v4907_v7 }
  0xc2   :  { %v5255_v31 = vmul.f32 %v4911_v8, %v4911_v8  ;;  %v5259_v38 = vmul.f32 %v4917_v20, %v4917_v20  ;;  %v787_v22 = vsel %vm147_vm0, %v722_v44, 0.0  ;;  %v5264_v36 = vmul.f32 %v4923_v11, %v4923_v11 }
  0xc3   :  { %v5268_v37 = vmul.f32 %v4929_v26, %v4929_v26  ;;  %v5272_v0 = vmul.f32 %v4935_v19, %v4935_v19  ;;  %v799_v8 = vadd.f32 %v798_v24, %v797_v16  ;;  %v5276_v7 = vmul.f32 %v4941_v17, %v4941_v17  ;;  %v9184_v19 = vld [vmem:[#allocation111_spill] sm:$0xff]  ;;  %v9185_v17 = vld [vmem:[#allocation112_spill] sm:$0xff] }
  0xc4   :  { %v800_v20 = vsel %vm147_vm0, %v726_v56, 0.0  ;;  %v810_v44 = vsel %vm147_vm0, %v728_v40, 0.0  ;;  %v811_v11 = vsel %vm147_vm0, %v729_v51, 0.0  ;;  %v5283_v5 = vmul.f32 %v4947_v63, %v4947_v63  ;;  %v9186_v40 = vld [vmem:[#allocation113_spill] sm:$0xff] }
  0xc5   :  { %v5287_v26 = vmul.f32 %v4953_v62, %v4953_v62  ;;  %v5291_v16 = vmul.f32 %v9184_v19, %v9184_v19  ;;  %v788_v24 = vadd.f32 %v787_v22, %v786_v49  ;;  %v5295_v56 = vmul.f32 %v9185_v17, %v9185_v17  ;;  %v9189_v49 = vld [vmem:[#allocation116_spill] sm:$0xff] }
  0xc6   :  { %v5299_v51 = vmul.f32 %v9186_v40, %v9186_v40  ;;  %v5303_v63 = vmul.f32 %v9187_v3, %v9187_v3  ;;  %v789_v62 = vsel %vm147_vm0, %v5128_v48, 0.0  ;;  %v5309_v19 = vmul.f32 %v9188_v1, %v9188_v1  ;;  %v9191_v1 = vld [vmem:[#allocation118_spill] sm:$0xff] }
  0xc7   :  { %v5313_v22 = vmul.f32 %v9189_v49, %v9189_v49  ;;  %v801_v17 = vadd.f32 %v800_v20, %v799_v8  ;;  %v812_v60 = vadd.f32 %v811_v11, %v810_v44  ;;  %v802_v40 = vsel %vm147_vm0, %v727_v54, 0.0  ;;  %v9192_v49 = vld [vmem:[#allocation119_spill] sm:$0xff]  ;;  %v9193_v11 = vld [vmem:[#allocation120_spill] sm:$0xff] }
  0xc8   :  { %v813_v32 = vsel %vm147_vm0, %v730_v53, 0.0  ;;  %v823_v3 = vsel %vm147_vm0, %v732_v46, 0.0  ;;  %v824_v33 = vsel %vm147_vm0, %v733_v28, 0.0  ;;  %v5321_v48 = vmul.f32 %v9190_v29, %v9190_v29  ;;  %v9194_v53 = vld [vmem:[#allocation121_spill] sm:$0xff]  ;;  %v9195_v28 = vld [vmem:[#allocation34_spill] sm:$0xff]  ;;  %v9196_v29 = vld [vmem:[#allocation23_spill] sm:$0xff] }
  0xc9   :  { %v5325_v34 = vmul.f32 %v9191_v1, %v9191_v1  ;;  %v5329_v8 = vmul.f32 %v9192_v49, %v9192_v49  ;;  %v790_v20 = vadd.f32 %v789_v62, %v788_v24  ;;  %v5333_v54 = vmul.f32 %v9193_v11, %v9193_v11 }
  0xca   :  { %v5337_v46 = vmul.f32 %v9194_v53, %v9194_v53  ;;  %v5341_v44 = vmul.f32 %v9195_v28, %v9195_v28  ;;  %v5345_v1 = vmul.f32 %v9196_v29, %v9196_v29  ;;  %v5349_v49 = vmul.f32 %v9197_v12, %v9197_v12  ;;  %v9199_v29 = vld [vmem:[#allocation122_spill] sm:$0xff]  ;;  %v9200_v12 = vld [vmem:[#allocation123_spill] sm:$0xff] }
  0xcb   :  { %v803_v62 = vadd.f32 %v802_v40, %v801_v17  ;;  %v814_v24 = vadd.f32 %v813_v32, %v812_v60  ;;  %v825_v11 = vadd.f32 %v824_v33, %v823_v3  ;;  %v815_v57 = vsel %vm147_vm0, %v731_v35, 0.0  ;;  %v9201_v33 = vld [vmem:[#allocation124_spill] sm:$0xff]  ;;  %v9202_v3 = vld [vmem:[#allocation125_spill] sm:$0xff] }
  0xcc   :  { %v826_v53 = vsel %vm147_vm0, %v734_v9, 0.0  ;;  %v836_v42 = vsel %vm147_vm0, %v736_v45, 0.0  ;;  %v837_v28 = vsel %vm147_vm0, %v737_v2, 0.0  ;;  %v5357_v59 = vmul.f32 %v9198_v47, %v9198_v47  ;;  %v9203_v2 = vld [vmem:[#allocation126_spill] sm:$0xff]  ;;  %v9204_v9 = vld [vmem:[#allocation127_spill] sm:$0xff] }
  0xcd   :  { %v5361_v15 = vmul.f32 %v9199_v29, %v9199_v29  ;;  %v5365_v17 = vmul.f32 %v9200_v12, %v9200_v12  ;;  %v791_v32 = vrot.slane %v790_v20, 4  ;;  %v5369_v60 = vmul.f32 %v9201_v33, %v9201_v33 }
  0xce   :  { %v5373_v35 = vmul.f32 %v9202_v3, %v9202_v3  ;;  %v5377_v45 = vmul.f32 %v9203_v2, %v9203_v2  ;;  %v5381_v40 = vmul.f32 %v9204_v9, %v9204_v9  ;;  %v804_v29 = vrot.slane %v803_v62, 4 }
  0xcf   :  { %v5383_v12 = vadd.f32 %v815_v57, %v814_v24  ;;  %v827_v47 = vadd.f32 %v826_v53, %v825_v11  ;;  %v838_v61 = vadd.f32 %v837_v28, %v836_v42  ;;  %v5387_v33 = vmul.f32 %v9205_v30, %v9205_v30  ;;  %v9208_v28 = vld [vmem:[#allocation131_spill] sm:$0xff] }
  0xd0   :  { %v5391_v3 = vmul.f32 %v9206_v27, %v9206_v27  ;;  %v828_v2 = vsel %vm147_vm0, %v5199_v4, 0.0  ;;  %v839_v9 = vsel %vm147_vm0, %v5207_v6, 0.0  ;;  %v5399_v57 = vmul.f32 %v9207_v55, %v9207_v55  ;;  %v9209_v4 = vld [vmem:[#allocation132_spill] sm:$0xff]  ;;  %v9210_v6 = vld [vmem:[#allocation133_spill] sm:$0xff] }
  0xd1   :  { %v5401_v11 = vadd.f32 %v791_v32, %v790_v20  ;;  %v849_v42 = vsel %vm147_vm0, %v5217_v39, 0.0  ;;  %v850_v53 = vsel %vm147_vm0, %v5221_v25, 0.0  ;;  %v5409_v24 = vmul.f32 %v9208_v28, %v9208_v28 }
  0xd2   :  { %v5413_v27 = vmul.f32 %v9209_v4, %v9209_v4  ;;  %v5417_v55 = vmul.f32 %v9210_v6, %v9210_v6  ;;  %v841_v20 = vsel %vm147_vm0, %v5213_v10, 0.0  ;;  %v5421_v32 = vadd.f32 %v804_v29, %v803_v62 }
  0xd3   :  { %v817_v39 = vrot.slane %v5383_v12, 4  ;;  %v5424_v25 = vadd.f32 %v828_v2, %v827_v47  ;;  %v840_v30 = vadd.f32 %v839_v9, %v838_v61  ;;  %v851_v28 = vadd.f32 %v850_v53, %v849_v42 }
  0xd4   :  { %v852_v43 = vsel %vm147_vm0, %v5225_v23, 0.0  ;;  %v862_v4 = vsel %vm147_vm0, %v5233_v18, 0.0  ;;  %v863_v6 = vsel %vm147_vm0, %v5239_v52, 0.0  ;;  %v793_v13 = vrot.slane %v5401_v11, 2 }
  0xd5   :  { %v854_v29 = vsel %vm147_vm0, %v5229_v41, 0.0  ;;  %v875_v47 = vsel %vm147_vm0, %v5251_v58, 0.0  ;;  %v876_v61 = vsel %vm147_vm0, %v5255_v31, 0.0  ;;  %v888_v23 = vsel %vm147_vm0, %v5268_v37, 0.0 }
  0xd6   :  { %v889_v10 = vsel %vm147_vm0, %v5272_v0, 0.0  ;;  %v901_v52 = vsel %vm147_vm0, %v5287_v26, 0.0  ;;  %v902_v18 = vsel %vm147_vm0, %v5291_v16, 0.0  ;;  %v830_v41 = vrot.slane %v5424_v25, 4 }
  0xd7   :  { %v864_v62 = vadd.f32 %v863_v6, %v862_v4  ;;  %v914_v58 = vsel %vm147_vm0, %v5303_v63, 0.0  ;;  %v915_v31 = vsel %vm147_vm0, %v5309_v19, 0.0  ;;  %v842_v2 = vadd.f32 %v841_v20, %v840_v30 }
  0xd8   :  { %v865_v37 = vsel %vm147_vm0, %v5243_v50, 0.0  ;;  %v877_v0 = vadd.f32 %v876_v61, %v875_v47  ;;  %v878_v26 = vsel %vm147_vm0, %v5259_v38, 0.0  ;;  %v890_v9 = vadd.f32 %v889_v10, %v888_v23 }
  0xd9   :  { %v903_v42 = vadd.f32 %v902_v18, %v901_v52  ;;  %v927_v16 = vsel %vm147_vm0, %v5325_v34, 0.0  ;;  %v928_v53 = vsel %vm147_vm0, %v5329_v8, 0.0  ;;  %v853_v63 = vadd.f32 %v852_v43, %v851_v28 }
  0xda   :  { %v891_v19 = vsel %vm147_vm0, %v5276_v7, 0.0  ;;  %v904_v30 = vsel %vm147_vm0, %v5295_v56, 0.0  ;;  %v916_v50 = vadd.f32 %v915_v31, %v914_v58  ;;  %v866_v4 = vadd.f32 %v865_v37, %v864_v62 }
  0xdb   :  { %v867_v38 = vsel %vm147_vm0, %v5247_v14, 0.0  ;;  %v917_v6 = vsel %vm147_vm0, %v5313_v22, 0.0  ;;  %v929_v20 = vadd.f32 %v928_v53, %v927_v16  ;;  %v879_v34 = vadd.f32 %v878_v26, %v877_v0 }
  0xdc   :  { %v880_v8 = vsel %vm147_vm0, %v5264_v36, 0.0  ;;  %v930_v43 = vsel %vm147_vm0, %v5333_v54, 0.0  ;;  %v940_v7 = vsel %vm147_vm0, %v5341_v44, 0.0  ;;  %v892_v56 = vadd.f32 %v891_v19, %v890_v9 }
  0xdd   :  { %v893_v28 = vsel %vm147_vm0, %v5283_v5, 0.0  ;;  %v905_v47 = vadd.f32 %v904_v30, %v903_v42  ;;  %v941_v14 = vsel %vm147_vm0, %v5345_v1, 0.0  ;;  %v906_v22 = vsel %vm147_vm0, %v5299_v51, 0.0 }
  0xde   :  { %v918_v61 = vadd.f32 %v917_v6, %v916_v50  ;;  %v942_v23 = vadd.f32 %v941_v14, %v940_v7  ;;  %v943_v36 = vsel %vm147_vm0, %v5349_v49, 0.0  ;;  %v843_v54 = vrot.slane %v842_v2, 4 }
  0xdf   :  { %v919_v44 = vsel %vm147_vm0, %v5321_v48, 0.0  ;;  %v931_v10 = vadd.f32 %v930_v43, %v929_v20  ;;  %v953_v5 = vsel %vm147_vm0, %v5361_v15, 0.0  ;;  %v855_v52 = vadd.f32 %v854_v29, %v853_v63 }
  0xe0   :  { %v868_v18 = vadd.f32 %v867_v38, %v866_v4  ;;  %v881_v62 = vadd.f32 %v880_v8, %v879_v34  ;;  %v932_v1 = vsel %vm147_vm0, %v5337_v46, 0.0  ;;  %v894_v51 = vadd.f32 %v893_v28, %v892_v56 }
  0xe1   :  { %v907_v58 = vadd.f32 %v906_v22, %v905_v47  ;;  %v944_v31 = vadd.f32 %v943_v36, %v942_v23  ;;  %v954_v49 = vsel %vm147_vm0, %v5365_v17, 0.0  ;;  %v920_v37 = vadd.f32 %v919_v44, %v918_v61 }
  0xe2   :  { %v945_v48 = vsel %vm147_vm0, %v5357_v59, 0.0  ;;  %v955_v0 = vadd.f32 %v954_v49, %v953_v5  ;;  %v956_v15 = vsel %vm147_vm0, %v5369_v60, 0.0  ;;  %v806_v29 = vrot.slane %v5421_v32, 2 }
  0xe3   :  { %v818_v46 = vadd.f32 %v817_v39, %v5383_v12  ;;  %v831_v26 = vadd.f32 %v830_v41, %v5424_v25  ;;  %v933_v9 = vadd.f32 %v932_v1, %v931_v10  ;;  %v844_v42 = vadd.f32 %v843_v54, %v842_v2 }
  0xe4   :  { %v856_v16 = vrot.slane %v855_v52, 4  ;;  %v869_v17 = vrot.slane %v868_v18, 4  ;;  %v966_v53 = vsel %vm147_vm0, %v5377_v45, 0.0  ;;  %v882_v59 = vrot.slane %v881_v62, 4 }
  0xe5   :  { %v946_v63 = vadd.f32 %v945_v48, %v944_v31  ;;  %v957_v19 = vadd.f32 %v956_v15, %v955_v0  ;;  %v967_v60 = vsel %vm147_vm0, %v5381_v40, 0.0  ;;  %v895_v30 = vrot.slane %v894_v51, 4 }
  0xe6   :  { %v908_v50 = vrot.slane %v907_v58, 4  ;;  %v921_v4 = vrot.slane %v920_v37, 4  ;;  %v958_v12 = vsel %vm147_vm0, %v5373_v35, 0.0  ;;  %v934_v39 = vrot.slane %v933_v9, 4 }
  0xe7   :  { %v968_v25 = vadd.f32 %v967_v60, %v966_v53  ;;  %v979_v41 = vsel %vm147_vm0, %v5399_v57, 0.0  ;;  %v980_v45 = vsel %vm147_vm0, %v5409_v24, 0.0  ;;  %v857_v2 = vadd.f32 %v856_v16, %v855_v52 }
  0xe8   :  { %v870_v38 = vadd.f32 %v869_v17, %v868_v18  ;;  %v969_v6 = vsel %vm147_vm0, %v5387_v33, 0.0  ;;  %v981_v40 = vadd.f32 %v980_v45, %v979_v41  ;;  %v883_v20 = vadd.f32 %v882_v59, %v881_v62 }
  0xe9   :  { %v947_v34 = vrot.slane %v946_v63, 4  ;;  %v959_v8 = vadd.f32 %v958_v12, %v957_v19  ;;  %v982_v35 = vsel %vm147_vm0, %v5413_v27, 0.0  ;;  %v819_v43 = vrot.slane %v818_v46, 2 }
  0xea   :  { %v896_v7 = vadd.f32 %v895_v30, %v894_v51  ;;  %v909_v56 = vadd.f32 %v908_v50, %v907_v58  ;;  %v922_v28 = vadd.f32 %v921_v4, %v920_v37  ;;  %v832_v57 = vrot.slane %v831_v26, 2 }
  0xeb   :  { %v845_v47 = vrot.slane %v844_v42, 2  ;;  %v935_v14 = vadd.f32 %v934_v39, %v933_v9  ;;  %v970_v24 = vadd.f32 %v969_v6, %v968_v25  ;;  %v858_v22 = vrot.slane %v857_v2, 2 }
  0xec   :  { %v871_v61 = vrot.slane %v870_v38, 2  ;;  %v971_v33 = vsel %vm147_vm0, %v5391_v3, 0.0  ;;  %v983_v23 = vadd.f32 %v982_v35, %v981_v40  ;;  %v884_v36 = vrot.slane %v883_v20, 2 }
  0xed   :  { %v948_v54 = vadd.f32 %v947_v34, %v946_v63  ;;  %v960_v44 = vrot.slane %v959_v8, 4  ;;  %v984_v27 = vsel %vm147_vm0, %v5417_v55, 0.0  ;;  %v794_v10 = vadd.f32 %v793_v13, %v5401_v11 }
  0xee   :  { %v897_v5 = vrot.slane %v896_v7, 2  ;;  %v910_v52 = vrot.slane %v909_v56, 2  ;;  %v923_v18 = vrot.slane %v922_v28, 2  ;;  %v807_v62 = vadd.f32 %v806_v29, %v5421_v32 }
  0xef   :  { %v820_v1 = vadd.f32 %v819_v43, %v818_v46  ;;  %v936_v51 = vrot.slane %v935_v14, 2  ;;  %v972_v58 = vadd.f32 %v971_v33, %v970_v24  ;;  %v833_v3 = vadd.f32 %v832_v57, %v831_v26  ;;  %v9221_v57 = vld [vmem:[#allocation14_spill] sm:$0xff] }
  0xf0   :  { %v846_v31 = vadd.f32 %v845_v47, %v844_v42  ;;  %v859_v49 = vadd.f32 %v858_v22, %v857_v2  ;;  %v985_v37 = vadd.f32 %v984_v27, %v983_v23  ;;  %v872_v48 = vadd.f32 %v871_v61, %v870_v38  ;;  %v9223_v22 = vld [vmem:[#allocation9_spill] sm:$0xff]  ;;  %v9224_v61 = vld [vmem:[#allocation83_spill] sm:$0xff]  ;;  %v9225_v23 = vld [vmem:[#allocation12_spill] sm:$0xff] }
  0xf1   :  { %v885_v0 = vadd.f32 %v884_v36, %v883_v20  ;;  %v949_v15 = vrot.slane %v948_v54, 2  ;;  %v961_v55 = vadd.f32 %v960_v44, %v959_v8  ;;  %v795_v9 = vrot.slane %v794_v10, 1  ;;  %v9226_v36 = vld [vmem:[#allocation84_spill] sm:$0xff]  ;;  %v9227_v27 = vld [vmem:[#allocation17_spill] sm:$0xff] }
  0xf2   :  { %v898_v16 = vadd.f32 %v897_v5, %v896_v7  ;;  %v911_v17 = vadd.f32 %v910_v52, %v909_v56  ;;  %v924_v13 = vadd.f32 %v923_v18, %v922_v28  ;;  %v808_v11 = vrot.slane %v807_v62, 1  ;;  %v9229_v52 = vld [vmem:[#allocation18_spill] sm:$0xff] }
  0xf3   :  { %v821_v53 = vrot.slane %v820_v1, 1  ;;  %v937_v59 = vadd.f32 %v936_v51, %v935_v14  ;;  %v973_v63 = vrot.slane %v972_v58, 4  ;;  %v834_v32 = vrot.slane %v833_v3, 1  ;;  %v9230_v18 = vld [vmem:[#allocation86_spill] sm:$0xff]  ;;  %v9232_v51 = vld [vmem:[#allocation87_spill] sm:$0xff] }
  0xf4   :  { %v847_v29 = vrot.slane %v846_v31, 1  ;;  %v860_v46 = vrot.slane %v859_v49, 1  ;;  %v986_v19 = vrot.slane %v985_v37, 4  ;;  %v873_v26 = vrot.slane %v872_v48, 1 }
  0xf5   :  { %v886_v42 = vrot.slane %v885_v0, 1  ;;  %v950_v60 = vadd.f32 %v949_v15, %v948_v54  ;;  %v962_v30 = vrot.slane %v961_v55, 2  ;;  %v5521_v50 = vadd.f32 %v795_v9, %v794_v10  ;;  %v9228_v10 = vld [vmem:[#allocation85_spill] sm:$0xff]  ;;  %v9239_v9 = vld [vmem:[#allocation90_spill] sm:$0xff] }
  0xf6   :  { %v899_v4 = vrot.slane %v898_v16, 1  ;;  %v912_v12 = vrot.slane %v911_v17, 1  ;;  %v925_v39 = vrot.slane %v924_v13, 1  ;;  %v5523_v25 = vadd.f32 %v808_v11, %v807_v62 }
  0xf7   :  { %v5525_v41 = vadd.f32 %v821_v53, %v820_v1  ;;  %v938_v45 = vrot.slane %v937_v59, 1  ;;  %v974_v2 = vadd.f32 %v973_v63, %v972_v58  ;;  %v5527_v38 = vadd.f32 %v834_v32, %v833_v3  ;;  %v9231_v1 = vld [vmem:[#allocation15_spill] sm:$0xff]  ;;  %v9244_v32 = vld [vmem:[#allocation24_spill] sm:$0xff] }
  0xf8   :  { %9211 = vst [vmem:[#allocation150_spill] sm:$0xff] %v5523_v25  ;;  %v5529_v6 = vadd.f32 %v847_v29, %v846_v31  ;;  %v5531_v40 = vadd.f32 %v860_v46, %v859_v49  ;;  %v987_v20 = vadd.f32 %v986_v19, %v985_v37  ;;  %v5533_v34 = vadd.f32 %v873_v26, %v872_v48  ;;  %v9234_v31 = vld [vmem:[#allocation19_spill] sm:$0xff]  ;;  %v9235_v49 = vld [vmem:[#allocation88_spill] sm:$0xff]  ;;  %v9236_v48 = vld [vmem:[#allocation10_spill] sm:$0xff] }
  0xf9   :  { %9212 = vst [vmem:[#allocation151_spill] sm:$0xff] %v5525_v41  ;;  %9213 = vst [vmem:[#allocation152_spill] sm:$0xff] %v5527_v38  ;;  %v5535_v8 = vadd.f32 %v886_v42, %v885_v0  ;;  %v951_v35 = vrot.slane %v950_v60, 1  ;;  %v963_v43 = vadd.f32 %v962_v30, %v961_v55  ;;  %v5537_v7 = vadd.f32 %v899_v4, %v898_v16  ;;  %v9237_v0 = vld [vmem:[#allocation89_spill] sm:$0xff]  ;;  %v9238_v55 = vld [vmem:[#allocation7_spill] sm:$0xff] }
  0xfa   :  { %9214 = vst [vmem:[#allocation153_spill] sm:$0xff] %v5529_v6  ;;  %9215 = vst [vmem:[#allocation154_spill] sm:$0xff] %v5531_v40  ;;  %v5539_v56 = vadd.f32 %v912_v12, %v911_v17  ;;  %v5541_v28 = vadd.f32 %v925_v39, %v924_v13  ;;  %v992_v47 = vmul.f32 %v4777_v21, %v9221_v57  ;;  %v975_v24 = vrot.slane %v974_v2, 2  ;;  %v9240_v17 = vld [vmem:[#allocation8_spill] sm:$0xff]  ;;  %v9241_v13 = vld [vmem:[#allocation91_spill] sm:$0xff] }
  0xfb   :  { %9216 = vst [vmem:[#allocation155_spill] sm:$0xff] %v5533_v34  ;;  %9217 = vst [vmem:[#allocation156_spill] sm:$0xff] %v5535_v8  ;;  %v5545_v14 = vadd.f32 %v938_v45, %v937_v59  ;;  %v993_v33 = vmul.f32 %v9224_v61, %v9223_v22  ;;  %v994_v54 = vmul.f32 %v9226_v36, %v9225_v23  ;;  %v988_v44 = vrot.slane %v987_v20, 2  ;;  %v9242_v53 = vld [vmem:[#allocation35_spill] sm:$0xff]  ;;  %v9243_v59 = vld [vmem:[#allocation92_spill] sm:$0xff] }
  0xfc   :  { %9218 = vst [vmem:[#allocation157_spill] sm:$0xff] %v5537_v7  ;;  %9219 = vst [vmem:[#allocation158_spill] sm:$0xff] %v5539_v56  ;;  %v995_v5 = vmul.f32 %v9228_v10, %v9227_v27  ;;  %v996_v62 = vmul.f32 %v9230_v18, %v9229_v52  ;;  %v997_v58 = vmul.f32 %v9232_v51, %v9231_v1  ;;  %v964_v3 = vrot.slane %v963_v43, 1  ;;  %v9245_v29 = vld [vmem:[#allocation93_spill] sm:$0xff]  ;;  %v9246_v26 = vld [vmem:[#allocation28_spill] sm:$0xff] }
  0xfd   :  { %9220 = vst [vmem:[#allocation159_spill] sm:$0xff] %v5541_v28  ;;  %9222 = vst [vmem:[#allocation160_spill] sm:$0xff] %v5545_v14  ;;  %v5557_v21 = vadd.f32 %v951_v35, %v950_v60  ;;  %v998_v37 = vmul.f32 %v9235_v49, %v9234_v31  ;;  %v999_v15 = vmul.f32 %v9237_v0, %v9236_v48  ;;  %v9247_v42 = vld [vmem:[#allocation94_spill] sm:$0xff]  ;;  %v9248_v30 = vld [vmem:[#allocation32_spill] sm:$0xff]  ;;  %v1056_v51 = vsel %vm147_vm0, %v992_v47, 0.0 }
  0xfe   :  { %v1000_v16 = vmul.f32 %v9239_v9, %v9238_v55  ;;  %v1001_v11 = vmul.f32 %v9241_v13, %v9240_v17  ;;  %v1002_v63 = vmul.f32 %v9243_v59, %v9242_v53  ;;  %v5571_v46 = vmul.f32 %v9245_v29, %v9244_v32  ;;  %v9249_v4 = vld [vmem:[#allocation95_spill] sm:$0xff]  ;;  %v9250_v39 = vld [vmem:[#allocation36_spill] sm:$0xff]  ;;  %v9252_v36 = vld [vmem:[#allocation37_spill] sm:$0xff] }
  0xff   :  { %9233 = vst [vmem:[#allocation83_spill] sm:$0xff] %v5557_v21  ;;  %v976_v19 = vadd.f32 %v975_v24, %v974_v2  ;;  %v1004_v60 = vmul.f32 %v9247_v42, %v9246_v26  ;;  %v1005_v12 = vmul.f32 %v9249_v4, %v9248_v30  ;;  %v9251_v45 = vld [vmem:[#allocation96_spill] sm:$0xff]  ;;  %v989_v61 = vadd.f32 %v988_v44, %v987_v20  ;;  %v9253_v10 = vld [vmem:[#allocation97_spill] sm:$0xff]  ;;  %v9261_v20 = vld [vmem:[#allocation38_spill] sm:$0xff] }
 0x100   :  { %v1006_v35 = vmul.f32 %v9251_v45, %v9250_v39  ;;  %v5581_v18 = vmul.f32 %v9253_v10, %v9252_v36  ;;  %v1057_v49 = vsel %vm147_vm0, %v993_v33, 0.0  ;;  %v5585_v0 = vadd.f32 %v964_v3, %v963_v43  ;;  %v9255_v2 = vld [vmem:[#allocation41_spill] sm:$0xff]  ;;  %v9258_v59 = vld [vmem:[#allocation20_spill] sm:$0xff]  ;;  %v9263_v36 = vld [vmem:[#allocation42_spill] sm:$0xff] }
 0x101   :  { %v9256_v24 = vld [vmem:[#allocation13_spill] sm:$0xff]  ;;  %v9264_v47 = vld [vmem:[#allocation98_spill] sm:$0xff]  ;;  %v9266_v33 = vld [vmem:[#allocation99_spill] sm:$0xff]  ;;  %v1058_v32 = vadd.f32 %v1057_v49, %v1056_v51  ;;  %v1070_v53 = vsel %vm147_vm0, %v997_v58, 0.0 }
 0x102   :  { %9254 = vst [vmem:[#allocation84_spill] sm:$0xff] %v5585_v0  ;;  %v1008_v9 = vmul.f32 %v9256_v24, %v9255_v2  ;;  %v9257_v13 = vld [vmem:[#allocation45_spill] sm:$0xff]  ;;  %v5601_v39 = vmul.f32 %v9264_v47, %v9263_v36  ;;  %v9265_v43 = vld [vmem:[#allocation46_spill] sm:$0xff]  ;;  %v9268_v30 = vld [vmem:[#allocation100_spill] sm:$0xff] }
 0x103   :  { %v1009_v29 = vmul.f32 %v9258_v59, %v9257_v13  ;;  %v9259_v42 = vld [vmem:[#allocation49_spill] sm:$0xff]  ;;  %v5605_v3 = vmul.f32 %v9266_v33, %v9265_v43  ;;  %v9267_v24 = vld [vmem:[#allocation50_spill] sm:$0xff]  ;;  %v977_v59 = vrot.slane %v976_v19, 1  ;;  %v9269_v17 = vld [vmem:[#allocation39_spill] sm:$0xff]  ;;  %v1059_v33 = vsel %vm147_vm0, %v994_v54, 0.0 }
 0x104   :  { %v9260_v4 = vld [vmem:[#allocation21_spill] sm:$0xff]  ;;  %v5609_v26 = vmul.f32 %v9268_v30, %v9267_v24  ;;  %v9271_v47 = vld [vmem:[#allocation43_spill] sm:$0xff]  ;;  %v9272_v31 = vld [vmem:[#allocation102_spill] sm:$0xff] }
 0x105   :  { %v5593_v45 = vmul.f32 %v9260_v4, %v9259_v42  ;;  %v9262_v44 = vld [vmem:[#allocation29_spill] sm:$0xff]  ;;  %v1069_v4 = vsel %vm147_vm0, %v996_v62, 0.0  ;;  %v5619_v1 = vmul.f32 %v9272_v31, %v9271_v47  ;;  %v9273_v52 = vld [vmem:[#allocation47_spill] sm:$0xff]  ;;  %v9276_v49 = vld [vmem:[#allocation104_spill] sm:$0xff]  ;;  %v5644_v43 = vadd.f32 %v977_v59, %v976_v19 }
 0x106   :  { %v5597_v10 = vmul.f32 %v9262_v44, %v9261_v20  ;;  %v990_v44 = vrot.slane %v989_v61, 1  ;;  %v9270_v55 = vld [vmem:[#allocation101_spill] sm:$0xff]  ;;  %v9274_v30 = vld [vmem:[#allocation103_spill] sm:$0xff]  ;;  %v9277_v58 = vld [vmem:[#allocation40_spill] sm:$0xff]  ;;  %v1071_v54 = vadd.f32 %v1070_v53, %v1069_v4 }
 0x107   :  { %v5615_v48 = vmul.f32 %v9270_v55, %v9269_v17  ;;  %v5624_v27 = vmul.f32 %v9274_v30, %v9273_v52  ;;  %v9275_v51 = vld [vmem:[#allocation51_spill] sm:$0xff]  ;;  %v9278_v23 = vld [vmem:[#allocation105_spill] sm:$0xff]  ;;  %v9279_v55 = vld [vmem:[#allocation44_spill] sm:$0xff]  ;;  %v1082_v30 = vsel %vm147_vm0, %v1000_v16, 0.0  ;;  %v1083_v52 = vsel %vm147_vm0, %v1001_v11, 0.0  ;;  %9283 = vst [vmem:[#allocation85_spill] sm:$0xff] %v5644_v43 }
 0x108   :  { %v5628_v62 = vmul.f32 %v9276_v49, %v9275_v51  ;;  %v5632_v22 = vmul.f32 %v9278_v23, %v9277_v58  ;;  %v9280_v57 = vld [vmem:[#allocation106_spill] sm:$0xff]  ;;  %v9281_v31 = vld [vmem:[#allocation48_spill] sm:$0xff]  ;;  %v9282_v47 = vld [vmem:[#allocation107_spill] sm:$0xff]  ;;  %v1060_v23 = vadd.f32 %v1059_v33, %v1058_v32  ;;  %v1072_v58 = vsel %vm147_vm0, %v998_v37, 0.0 }
 0x109   :  { %v5636_v17 = vmul.f32 %v9280_v57, %v9279_v55  ;;  %v5640_v24 = vmul.f32 %v9282_v47, %v9281_v31  ;;  %v9284_v49 = vld [vmem:[#allocation52_spill] sm:$0xff]  ;;  %v5651_v57 = vadd.f32 %v990_v44, %v989_v61  ;;  %v9288_v20 = vld [vmem:[#allocation109_spill] sm:$0xff]  ;;  %v1061_v11 = vsel %vm147_vm0, %v995_v5, 0.0  ;;  %v9292_v59 = vld [vmem:[#allocation22_spill] sm:$0xff] }
 0x10a   :  { %v9285_v51 = vld [vmem:[#allocation108_spill] sm:$0xff]  ;;  %v9290_v4 = vld [vmem:[#allocation33_spill] sm:$0xff]  ;;  %v9294_v32 = vld [vmem:[#allocation26_spill] sm:$0xff]  ;;  %v1096_v5 = vsel %vm147_vm0, %v1005_v12, 0.0 }
 0x10b   :  { %v5648_v36 = vmul.f32 %v9285_v51, %v9284_v49  ;;  %9286 = vst [vmem:[#allocation86_spill] sm:$0xff] %v5651_v57  ;;  %v9287_v55 = vld [vmem:[#allocation60_spill] sm:$0xff]  ;;  %v9293_v51 = vld [vmem:[#allocation69_spill] sm:$0xff]  ;;  %v9295_v37 = vld [vmem:[#allocation70_spill] sm:$0xff]  ;;  %v1085_v49 = vsel %vm147_vm0, %v1002_v63, 0.0 }
 0x10c   :  { %v5655_v47 = vmul.f32 %v9288_v20, %v9287_v55  ;;  %v9289_v53 = vld [vmem:[#allocation64_spill] sm:$0xff]  ;;  %v5668_v33 = vmul.f32 %v9294_v32, %v9293_v51  ;;  %v9296_v61 = vld [vmem:[#allocation30_spill] sm:$0xff]  ;;  %v1084_v20 = vadd.f32 %v1083_v52, %v1082_v30  ;;  %v1073_v55 = vadd.f32 %v1072_v58, %v1071_v54  ;;  %v9300_v13 = vld [vmem:[#allocation111_spill] sm:$0xff] }
 0x10d   :  { %v5659_v16 = vmul.f32 %v9290_v4, %v9289_v53  ;;  %v9291_v19 = vld [vmem:[#allocation68_spill] sm:$0xff]  ;;  %v5672_v44 = vmul.f32 %v9296_v61, %v9295_v37  ;;  %v1095_v4 = vsel %vm147_vm0, %v1004_v60, 0.0  ;;  %v9297_v53 = vld [vmem:[#allocation71_spill] sm:$0xff]  ;;  %v9298_v42 = vld [vmem:[#allocation110_spill] sm:$0xff]  ;;  %v1062_v51 = vadd.f32 %v1061_v11, %v1060_v23 }
 0x10e   :  { %v5664_v31 = vmul.f32 %v9292_v59, %v9291_v19  ;;  %v5679_v59 = vmul.f32 %v9298_v42, %v9297_v53  ;;  %v9299_v19 = vld [vmem:[#allocation72_spill] sm:$0xff]  ;;  %v1074_v61 = vsel %vm147_vm0, %v999_v15, 0.0  ;;  %v9301_v37 = vld [vmem:[#allocation73_spill] sm:$0xff]  ;;  %v9303_v63 = vld [vmem:[#allocation74_spill] sm:$0xff]  ;;  %v1097_v43 = vadd.f32 %v1096_v5, %v1095_v4 }
 0x10f   :  { %v5683_v32 = vmul.f32 %v9300_v13, %v9299_v19  ;;  %v9302_v52 = vld [vmem:[#allocation112_spill] sm:$0xff]  ;;  %v9304_v54 = vld [vmem:[#allocation113_spill] sm:$0xff]  ;;  %v9305_v12 = vld [vmem:[#allocation75_spill] sm:$0xff]  ;;  %v1075_v21 = vadd.f32 %v1074_v61, %v1073_v55 }
 0x110   :  { %v5688_v58 = vmul.f32 %v9302_v52, %v9301_v37  ;;  %v5692_v60 = vmul.f32 %v9304_v54, %v9303_v63  ;;  %v9306_v30 = vld [vmem:[#allocation114_spill] sm:$0xff]  ;;  %v9307_v42 = vld [vmem:[#allocation76_spill] sm:$0xff]  ;;  %v9308_v53 = vld [vmem:[#allocation115_spill] sm:$0xff]  ;;  %v1086_v37 = vadd.f32 %v1085_v49, %v1084_v20 }
 0x111   :  { %v5696_v2 = vmul.f32 %v9306_v30, %v9305_v12  ;;  %v5700_v57 = vmul.f32 %v9308_v53, %v9307_v42  ;;  %v9309_v13 = vld [vmem:[#allocation77_spill] sm:$0xff]  ;;  %v9310_v23 = vld [vmem:[#allocation116_spill] sm:$0xff]  ;;  %v9311_v15 = vld [vmem:[#allocation78_spill] sm:$0xff]  ;;  %v1087_v30 = vsel %vm147_vm0, %v5571_v46, 0.0  ;;  %v1098_v53 = vsel %vm147_vm0, %v1006_v35, 0.0 }
 0x112   :  { %v5704_v11 = vmul.f32 %v9310_v23, %v9309_v13  ;;  %v9312_v19 = vld [vmem:[#allocation117_spill] sm:$0xff]  ;;  %v9313_v54 = vld [vmem:[#allocation79_spill] sm:$0xff]  ;;  %v9314_v63 = vld [vmem:[#allocation118_spill] sm:$0xff]  ;;  %v1063_v23 = vrot.slane %v1062_v51, 4  ;;  %v1108_v13 = vsel %vm147_vm0, %v1008_v9, 0.0  ;;  %v1099_v7 = vadd.f32 %v1098_v53, %v1097_v43 }
 0x113   :  { %v5708_v52 = vmul.f32 %v9312_v19, %v9311_v15  ;;  %v1036_v0 = vmul.f32 %v9314_v63, %v9313_v54  ;;  %v9315_v42 = vld [vmem:[#allocation80_spill] sm:$0xff]  ;;  %v9316_v12 = vld [vmem:[#allocation119_spill] sm:$0xff]  ;;  %v1109_v19 = vsel %vm147_vm0, %v1009_v29, 0.0  ;;  %v9317_v15 = vld [vmem:[#allocation81_spill] sm:$0xff] }
 0x114   :  { %v1037_v14 = vmul.f32 %v9316_v12, %v9315_v42  ;;  %v9318_v49 = vld [vmem:[#allocation120_spill] sm:$0xff]  ;;  %v9319_v4 = vld [vmem:[#allocation82_spill] sm:$0xff]  ;;  %v9320_v5 = vld [vmem:[#allocation121_spill] sm:$0xff] }
 0x115   :  { %v5721_v20 = vmul.f32 %v9318_v49, %v9317_v15  ;;  %v5725_v55 = vmul.f32 %v9320_v5, %v9319_v4  ;;  %v9321_v61 = vld [vmem:[#allocation53_spill] sm:$0xff]  ;;  %v9322_v46 = vld [vmem:[#allocation34_spill] sm:$0xff]  ;;  %v9323_v35 = vld [vmem:[#allocation16_spill] sm:$0xff]  ;;  %v1088_v15 = vadd.f32 %v1087_v30, %v1086_v37 }
 0x116   :  { %v5729_v63 = vmul.f32 %v9322_v46, %v9321_v61  ;;  %v9324_v54 = vld [vmem:[#allocation23_spill] sm:$0xff]  ;;  %v9325_v42 = vld [vmem:[#allocation54_spill] sm:$0xff]  ;;  %v9329_v5 = vld [vmem:[#allocation56_spill] sm:$0xff]  ;;  %v1076_v46 = vrot.slane %v1075_v21, 4  ;;  %v1100_v61 = vsel %vm147_vm0, %v5581_v18, 0.0 }
 0x117   :  { %v5733_v12 = vmul.f32 %v9324_v54, %v9323_v35  ;;  %v9326_v9 = vld [vmem:[#allocation27_spill] sm:$0xff]  ;;  %v9330_v4 = vld [vmem:[#allocation122_spill] sm:$0xff]  ;;  %v1110_v54 = vadd.f32 %v1109_v19, %v1108_v13  ;;  %v1064_v35 = vadd.f32 %v1063_v23, %v1062_v51  ;;  %v9331_v43 = vld [vmem:[#allocation57_spill] sm:$0xff]  ;;  %v5779_v6 = vadd.f32 %v1100_v61, %v1099_v7 }
 0x118   :  { %v5737_v28 = vmul.f32 %v9326_v9, %v9325_v42  ;;  %v9327_v29 = vld [vmem:[#allocation55_spill] sm:$0xff]  ;;  %v5745_v8 = vmul.f32 %v9330_v4, %v9329_v5  ;;  %v1111_v9 = vsel %vm147_vm0, %v5593_v45, 0.0  ;;  %v1121_v42 = vsel %vm147_vm0, %v5601_v39, 0.0  ;;  %v9334_v4 = vld [vmem:[#allocation124_spill] sm:$0xff]  ;;  %v9335_v18 = vld [vmem:[#allocation58_spill] sm:$0xff] }
 0x119   :  { %v9328_v56 = vld [vmem:[#allocation31_spill] sm:$0xff]  ;;  %v9336_v13 = vld [vmem:[#allocation125_spill] sm:$0xff]  ;;  %v9338_v45 = vld [vmem:[#allocation126_spill] sm:$0xff] }
 0x11a   :  { %v5741_v49 = vmul.f32 %v9328_v56, %v9327_v29  ;;  %v1122_v56 = vsel %vm147_vm0, %v5605_v3, 0.0  ;;  %v9332_v37 = vld [vmem:[#allocation123_spill] sm:$0xff]  ;;  %v5765_v51 = vmul.f32 %v9336_v13, %v9335_v18  ;;  %v9339_v39 = vld [vmem:[#allocation61_spill] sm:$0xff]  ;;  %v9342_v40 = vld [vmem:[#allocation128_spill] sm:$0xff]  ;;  %v1113_v13 = vsel %vm147_vm0, %v5597_v10, 0.0 }
 0x11b   :  { %v5757_v30 = vmul.f32 %v9332_v37, %v9331_v43  ;;  %v9333_v53 = vld [vmem:[#allocation11_spill] sm:$0xff]  ;;  %v9341_v3 = vld [vmem:[#allocation25_spill] sm:$0xff]  ;;  %v1089_v43 = vrot.slane %v1088_v15, 4  ;;  %v1123_v18 = vadd.f32 %v1122_v56, %v1121_v42  ;;  %v9349_v56 = vld [vmem:[#allocation66_spill] sm:$0xff] }
 0x11c   :  { %v5761_v5 = vmul.f32 %v9334_v4, %v9333_v53  ;;  %v9337_v23 = vld [vmem:[#allocation59_spill] sm:$0xff]  ;;  %v5777_v37 = vmul.f32 %v9342_v40, %v9341_v3  ;;  %v5781_v4 = vadd.f32 %v1076_v46, %v1075_v21  ;;  %v1112_v53 = vadd.f32 %v1111_v9, %v1110_v54  ;;  %v9343_v3 = vld [vmem:[#allocation62_spill] sm:$0xff]  ;;  %v9344_v7 = vld [vmem:[#allocation129_spill] sm:$0xff] }
 0x11d   :  { %v5769_v19 = vmul.f32 %v9338_v45, %v9337_v23  ;;  %v9340_v29 = vld [vmem:[#allocation127_spill] sm:$0xff]  ;;  %v1065_v45 = vrot.slane %v1064_v35, 2  ;;  %v1124_v23 = vsel %vm147_vm0, %v5609_v26, 0.0  ;;  %v1135_v40 = vsel %vm147_vm0, %v5624_v27, 0.0  ;;  %v9346_v46 = vld [vmem:[#allocation130_spill] sm:$0xff]  ;;  %v9347_v10 = vld [vmem:[#allocation65_spill] sm:$0xff] }
 0x11e   :  { %v5773_v34 = vmul.f32 %v9340_v29, %v9339_v39  ;;  %v1134_v29 = vsel %vm147_vm0, %v5619_v1, 0.0  ;;  %v5793_v61 = vmul.f32 %v9344_v7, %v9343_v3  ;;  %v9345_v21 = vld [vmem:[#allocation63_spill] sm:$0xff]  ;;  %v9350_v26 = vld [vmem:[#allocation132_spill] sm:$0xff]  ;;  %v9352_v38 = vld [vmem:[#allocation133_spill] sm:$0xff]  ;;  %v5811_v27 = vadd.f32 %v1089_v43, %v1088_v15 }
 0x11f   :  { %v5797_v54 = vmul.f32 %v9346_v46, %v9345_v21  ;;  %v9348_v42 = vld [vmem:[#allocation131_spill] sm:$0xff]  ;;  %v5805_v39 = vmul.f32 %v9350_v26, %v9349_v56  ;;  %v1102_v7 = vrot.slane %v5779_v6, 4  ;;  %v1126_v46 = vsel %vm147_vm0, %v5615_v48, 0.0 }
 0x120   :  { %v5801_v9 = vmul.f32 %v9348_v42, %v9347_v10  ;;  %v9351_v1 = vld [vmem:[#allocation67_spill] sm:$0xff]  ;;  %v1078_v21 = vrot.slane %v5781_v4, 2  ;;  %v1114_v3 = vadd.f32 %v1113_v13, %v1112_v53  ;;  %v1125_v42 = vadd.f32 %v1124_v23, %v1123_v18 }
 0x121   :  { %v5809_v41 = vmul.f32 %v9352_v38, %v9351_v1  ;;  %v1136_v10 = vadd.f32 %v1135_v40, %v1134_v29  ;;  %v5817_v25 = vadd.f32 %v1065_v45, %v1064_v35  ;;  %v1137_v26 = vsel %vm147_vm0, %v5628_v62, 0.0 }
 0x122   :  { %v1147_v38 = vsel %vm147_vm0, %v5636_v17, 0.0  ;;  %v1148_v15 = vsel %vm147_vm0, %v5640_v24, 0.0  ;;  %v1160_v43 = vsel %vm147_vm0, %v5659_v16, 0.0  ;;  %v1161_v48 = vsel %vm147_vm0, %v5664_v31, 0.0 }
 0x123   :  { %v1173_v53 = vsel %vm147_vm0, %v5679_v59, 0.0  ;;  %v1174_v35 = vsel %vm147_vm0, %v5683_v32, 0.0  ;;  %v1186_v62 = vsel %vm147_vm0, %v5696_v2, 0.0  ;;  %v1187_v17 = vsel %vm147_vm0, %v5700_v57, 0.0 }
 0x124   :  { %v1199_v24 = vsel %vm147_vm0, %v1036_v0, 0.0  ;;  %v1200_v18 = vsel %vm147_vm0, %v1037_v14, 0.0  ;;  %v1091_v16 = vrot.slane %v5811_v27, 2  ;;  %v1115_v23 = vrot.slane %v1114_v3, 4 }
 0x125   :  { %v1138_v31 = vadd.f32 %v1137_v26, %v1136_v10  ;;  %v1149_v13 = vadd.f32 %v1148_v15, %v1147_v38  ;;  %v1139_v59 = vsel %vm147_vm0, %v5632_v22, 0.0  ;;  %v1150_v32 = vsel %vm147_vm0, %v5648_v36, 0.0 }
 0x126   :  { %v1162_v45 = vadd.f32 %v1161_v48, %v1160_v43  ;;  %v1163_v2 = vsel %vm147_vm0, %v5668_v33, 0.0  ;;  %v1175_v57 = vadd.f32 %v1174_v35, %v1173_v53  ;;  %v1188_v29 = vadd.f32 %v1187_v17, %v1186_v62 }
 0x127   :  { %v1201_v0 = vadd.f32 %v1200_v18, %v1199_v24  ;;  %v1212_v14 = vsel %vm147_vm0, %v5729_v63, 0.0  ;;  %v1176_v40 = vsel %vm147_vm0, %v5688_v58, 0.0  ;;  %v1189_v10 = vsel %vm147_vm0, %v5704_v11, 0.0 }
 0x128   :  { %v1202_v22 = vsel %vm147_vm0, %v5721_v20, 0.0  ;;  %v1213_v36 = vsel %vm147_vm0, %v5733_v12, 0.0  ;;  %v1127_v26 = vadd.f32 %v1126_v46, %v1125_v42  ;;  %v1140_v33 = vadd.f32 %v1139_v59, %v1138_v31 }
 0x129   :  { %v1151_v38 = vadd.f32 %v1150_v32, %v1149_v13  ;;  %v1214_v15 = vadd.f32 %v1213_v36, %v1212_v14  ;;  %v1152_v43 = vsel %vm147_vm0, %v5655_v47, 0.0  ;;  %v1164_v63 = vadd.f32 %v1163_v2, %v1162_v45 }
 0x12a   :  { %v1215_v58 = vsel %vm147_vm0, %v5737_v28, 0.0  ;;  %v1225_v11 = vsel %vm147_vm0, %v5745_v8, 0.0  ;;  %v1165_v20 = vsel %vm147_vm0, %v5672_v44, 0.0  ;;  %v1177_v48 = vadd.f32 %v1176_v40, %v1175_v57 }
 0x12b   :  { %v1190_v53 = vadd.f32 %v1189_v10, %v1188_v29  ;;  %v1203_v12 = vadd.f32 %v1202_v22, %v1201_v0  ;;  %v1178_v46 = vsel %vm147_vm0, %v5692_v60, 0.0  ;;  %v1191_v42 = vsel %vm147_vm0, %v5708_v52, 0.0 }
 0x12c   :  { %v1204_v47 = vsel %vm147_vm0, %v5725_v55, 0.0  ;;  %v1226_v28 = vsel %vm147_vm0, %v5757_v30, 0.0  ;;  %v1153_v35 = vadd.f32 %v1152_v43, %v1151_v38  ;;  %v1216_v8 = vadd.f32 %v1215_v58, %v1214_v15 }
 0x12d   :  { %v1227_v62 = vadd.f32 %v1226_v28, %v1225_v11  ;;  %v1228_v44 = vsel %vm147_vm0, %v5761_v5, 0.0  ;;  %v1103_v17 = vadd.f32 %v1102_v7, %v5779_v6  ;;  %v1116_v24 = vadd.f32 %v1115_v23, %v1114_v3 }
 0x12e   :  { %v1166_v18 = vadd.f32 %v1165_v20, %v1164_v63  ;;  %v1217_v60 = vsel %vm147_vm0, %v5741_v49, 0.0  ;;  %v1179_v52 = vadd.f32 %v1178_v46, %v1177_v48  ;;  %v1192_v31 = vadd.f32 %v1191_v42, %v1190_v53 }
 0x12f   :  { %v1205_v13 = vadd.f32 %v1204_v47, %v1203_v12  ;;  %v1238_v55 = vsel %vm147_vm0, %v5769_v19, 0.0  ;;  %v1128_v30 = vrot.slane %v1127_v26, 4  ;;  %v1141_v59 = vrot.slane %v1140_v33, 4 }
 0x130   :  { %v1229_v32 = vadd.f32 %v1228_v44, %v1227_v62  ;;  %v1239_v45 = vsel %vm147_vm0, %v5773_v34, 0.0  ;;  %v1154_v5 = vrot.slane %v1153_v35, 4  ;;  %v1218_v2 = vadd.f32 %v1217_v60, %v1216_v8 }
 0x131   :  { %v1230_v6 = vsel %vm147_vm0, %v5765_v51, 0.0  ;;  %v1241_v49 = vsel %vm147_vm0, %v5777_v37, 0.0  ;;  %v1167_v3 = vrot.slane %v1166_v18, 4  ;;  %v1240_v7 = vadd.f32 %v1239_v45, %v1238_v55 }
 0x132   :  { %v1251_v23 = vsel %vm147_vm0, %v5797_v54, 0.0  ;;  %v1252_v19 = vsel %vm147_vm0, %v5801_v9, 0.0  ;;  %v1180_v57 = vrot.slane %v1179_v52, 4  ;;  %v1193_v29 = vrot.slane %v1192_v31, 4 }
 0x133   :  { %v1206_v0 = vrot.slane %v1205_v13, 4  ;;  %v1253_v34 = vadd.f32 %v1252_v19, %v1251_v23  ;;  %v1129_v14 = vadd.f32 %v1128_v30, %v1127_v26  ;;  %v1231_v40 = vadd.f32 %v1230_v6, %v1229_v32 }
 0x134   :  { %v1242_v10 = vadd.f32 %v1241_v49, %v1240_v7  ;;  %v1254_v51 = vsel %vm147_vm0, %v5805_v39, 0.0  ;;  %v1104_v22 = vrot.slane %v1103_v17, 2  ;;  %v1219_v37 = vrot.slane %v1218_v2, 4 }
 0x135   :  { %v1243_v36 = vsel %vm147_vm0, %v5793_v61, 0.0  ;;  %v1255_v38 = vadd.f32 %v1254_v51, %v1253_v34  ;;  %v1142_v54 = vadd.f32 %v1141_v59, %v1140_v33  ;;  %v1155_v15 = vadd.f32 %v1154_v5, %v1153_v35 }
 0x136   :  { %v1168_v43 = vadd.f32 %v1167_v3, %v1166_v18  ;;  %v1256_v9 = vsel %vm147_vm0, %v5809_v41, 0.0  ;;  %v1117_v63 = vrot.slane %v1116_v24, 2  ;;  %v1181_v58 = vadd.f32 %v1180_v57, %v1179_v52 }
 0x137   :  { %v1194_v26 = vadd.f32 %v1193_v29, %v1192_v31  ;;  %v1207_v11 = vadd.f32 %v1206_v0, %v1205_v13  ;;  %v1079_v39 = vadd.f32 %v1078_v21, %v5781_v4  ;;  %v1130_v20 = vrot.slane %v1129_v14, 2 }
 0x138   :  { %v1232_v48 = vrot.slane %v1231_v40, 4  ;;  %v1244_v53 = vadd.f32 %v1243_v36, %v1242_v10  ;;  %v1067_v61 = vrot.slane %v5817_v25, 1  ;;  %v1092_v33 = vadd.f32 %v1091_v16, %v5811_v27  ;;  %v9353_v36 = vld [vmem:[#allocation150_spill] sm:$0xff] }
 0x139   :  { %v1220_v12 = vadd.f32 %v1219_v37, %v1218_v2  ;;  %v1257_v46 = vadd.f32 %v1256_v9, %v1255_v38  ;;  %v1105_v41 = vadd.f32 %v1104_v22, %v1103_v17  ;;  %v1143_v42 = vrot.slane %v1142_v54, 2 }
 0x13a   :  { %v1156_v47 = vrot.slane %v1155_v15, 2  ;;  %v1169_v28 = vrot.slane %v1168_v43, 2  ;;  %v1118_v35 = vadd.f32 %v1117_v63, %v1116_v24  ;;  %v1182_v8 = vrot.slane %v1181_v58, 2 }
 0x13b   :  { %v1195_v62 = vrot.slane %v1194_v26, 2  ;;  %v1208_v44 = vrot.slane %v1207_v11, 2  ;;  %v1080_v4 = vrot.slane %v1079_v39, 1  ;;  %v1131_v21 = vadd.f32 %v1130_v20, %v1129_v14 }
 0x13c   :  { %v1233_v18 = vadd.f32 %v1232_v48, %v1231_v40  ;;  %v1245_v60 = vrot.slane %v1244_v53, 4  ;;  %v5903_v52 = vadd.f32 %v1067_v61, %v5817_v25  ;;  %v1093_v31 = vrot.slane %v1092_v33, 1 }
 0x13d   :  { %v1221_v13 = vrot.slane %v1220_v12, 2  ;;  %v1258_v27 = vrot.slane %v1257_v46, 4  ;;  %v1106_v16 = vrot.slane %v1105_v41, 1  ;;  %v1144_v55 = vadd.f32 %v1143_v42, %v1142_v54 }
 0x13e   :  { %v1157_v17 = vadd.f32 %v1156_v47, %v1155_v15  ;;  %v1170_v30 = vadd.f32 %v1169_v28, %v1168_v43  ;;  %v1119_v59 = vrot.slane %v1118_v35, 1  ;;  %v1183_v32 = vadd.f32 %v1182_v8, %v1181_v58  ;;  %v9354_v43 = vld [vmem:[#allocation151_spill] sm:$0xff]  ;;  %v9359_v8 = vld [vmem:[#allocation156_spill] sm:$0xff] }
 0x13f   :  { %v1196_v24 = vadd.f32 %v1195_v62, %v1194_v26  ;;  %v1209_v45 = vadd.f32 %v1208_v44, %v1207_v11  ;;  %v5905_v5 = vadd.f32 %v1080_v4, %v1079_v39  ;;  %v1132_v2 = vrot.slane %v1131_v21, 1  ;;  %v9355_v26 = vld [vmem:[#allocation152_spill] sm:$0xff]  ;;  %v9358_v28 = vld [vmem:[#allocation155_spill] sm:$0xff]  ;;  %v9360_v44 = vld [vmem:[#allocation157_spill] sm:$0xff] }
 0x140   :  { %v1234_v6 = vrot.slane %v1233_v18, 2  ;;  %v1246_v49 = vadd.f32 %v1245_v60, %v1244_v53  ;;  %v5907_v3 = vadd.f32 %v1093_v31, %v1092_v33  ;;  %v1222_v25 = vadd.f32 %v1221_v13, %v1220_v12  ;;  %v9356_v53 = vld [vmem:[#allocation153_spill] sm:$0xff]  ;;  %v9362_v60 = vld [vmem:[#allocation159_spill] sm:$0xff]  ;;  %v9363_v13 = vld [vmem:[#allocation160_spill] sm:$0xff] }
 0x141   :  { %v1259_v7 = vadd.f32 %v1258_v27, %v1257_v46  ;;  %v1264_v23 = vmax.f32 %v5521_v50, 9e-16  ;;  %v5910_v19 = vadd.f32 %v1106_v16, %v1105_v41  ;;  %v1145_v57 = vrot.slane %v1144_v55, 1  ;;  %v9357_v46 = vld [vmem:[#allocation154_spill] sm:$0xff]  ;;  %v9364_v16 = vld [vmem:[#allocation83_spill] sm:$0xff] }
 0x142   :  { %v1158_v29 = vrot.slane %v1157_v17, 1  ;;  %v1171_v0 = vrot.slane %v1170_v30, 1  ;;  %v5912_v34 = vadd.f32 %v1119_v59, %v1118_v35  ;;  %v1184_v14 = vrot.slane %v1183_v32, 1  ;;  %v9365_v59 = vld [vmem:[#allocation84_spill] sm:$0xff] }
 0x143   :  { %v1197_v40 = vrot.slane %v1196_v24, 1  ;;  %v1210_v10 = vrot.slane %v1209_v45, 1  ;;  %v5914_v51 = vadd.f32 %v1132_v2, %v1131_v21  ;;  %v1235_v22 = vadd.f32 %v1234_v6, %v1233_v18  ;;  %v9361_v21 = vld [vmem:[#allocation158_spill] sm:$0xff] }
 0x144   :  { %v1247_v37 = vrot.slane %v1246_v49, 2  ;;  %v1265_v38 = vmax.f32 %v9353_v36, 9e-16  ;;  %v1223_v54 = vrot.slane %v1222_v25, 1  ;;  %v1260_v15 = vrot.slane %v1259_v7, 2  ;;  %v9367_v6 = vld [vmem:[#allocation86_spill] sm:$0xff] }
 0x145   :  { %v1266_v50 = vmax.f32 %v9354_v43, 9e-16  ;;  %3194 = vrsqrt.f32 %v1264_v23  ;;  %v5918_v9 = vadd.f32 %v1145_v57, %v1144_v55  ;;  %v5920_v63 = vadd.f32 %v1158_v29, %v1157_v17  ;;  %v9371_v57 = vld [vmem:[#allocation45_spill] sm:$0xff]  ;;  %v9372_v29 = vld [vmem:[#allocation135_spill] sm:$0xff]  ;;  %v9382_v43 = vld [vmem:[#allocation46_spill] sm:$0xff] }
 0x146   :  { %v5922_v58 = vadd.f32 %v1171_v0, %v1170_v30  ;;  %v1267_v11 = vmax.f32 %v9355_v26, 9e-16  ;;  %v5925_v39 = vadd.f32 %v1184_v14, %v1183_v32  ;;  %v5927_v20 = vadd.f32 %v1197_v40, %v1196_v24  ;;  %v9374_v14 = vld [vmem:[#allocation49_spill] sm:$0xff]  ;;  %v9375_v40 = vld [vmem:[#allocation136_spill] sm:$0xff] }
 0x147   :  { %v5929_v48 = vadd.f32 %v1210_v10, %v1209_v45  ;;  %v1268_v61 = vmax.f32 %v9356_v53, 9e-16  ;;  %v1236_v33 = vrot.slane %v1235_v22, 1  ;;  %v1248_v12 = vadd.f32 %v1247_v37, %v1246_v49  ;;  %v9366_v45 = vld [vmem:[#allocation85_spill] sm:$0xff]  ;;  %v9377_v37 = vld [vmem:[#allocation38_spill] sm:$0xff] }
 0x148   :  { %v1269_v41 = vmax.f32 %v9357_v46, 9e-16  ;;  %3196 = vrsqrt.f32 %v1265_v38  ;;  %v5933_v42 = vadd.f32 %v1223_v54, %v1222_v25  ;;  %v1261_v47 = vadd.f32 %v1260_v15, %v1259_v7  ;;  %v9368_v25 = vld [vmem:[#allocation41_spill] sm:$0xff]  ;;  %v9369_v7 = vld [vmem:[#allocation134_spill] sm:$0xff] }
 0x149   :  { %v1270_v35 = vmax.f32 %v9358_v28, 9e-16  ;;  %3198 = vrsqrt.f32 %v1266_v50  ;;  %v1271_v62 = vmax.f32 %v9359_v8, 9e-16  ;;  %v1272_v4 = vmax.f32 %v9360_v44, 9e-16 }
 0x14a   :  { %v1273_v18 = vmax.f32 %v9361_v21, 9e-16  ;;  %3200 = vrsqrt.f32 %v1267_v11  ;;  %v1274_v31 = vmax.f32 %v9362_v60, 9e-16  ;;  %v1275_v27 = vmax.f32 %v9363_v13, 9e-16 }
 0x14b   :  { %v1276_v55 = vmax.f32 %v9364_v16, 9e-16  ;;  %3202 = vrsqrt.f32 %v1268_v61  ;;  %v5942_v17 = vadd.f32 %v1236_v33, %v1235_v22  ;;  %v1249_v30 = vrot.slane %v1248_v12, 1  ;;  %v9378_v36 = vld [vmem:[#allocation137_spill] sm:$0xff]  ;;  %v9380_v54 = vld [vmem:[#allocation42_spill] sm:$0xff]  ;;  %v9386_v61 = vld [vmem:[#allocation39_spill] sm:$0xff] }
 0x14c   :  { %v1277_v32 = vmax.f32 %v9365_v59, 9e-16  ;;  %3204 = vrsqrt.f32 %v1269_v41  ;;  %v1262_v24 = vrot.slane %v1261_v47, 1  ;;  %v1278_v2 = vmax.f32 %v9366_v45, 9e-16  ;;  %v9384_v11 = vld [vmem:[#allocation50_spill] sm:$0xff] }
 0x14d   :  { %v1279_v49 = vmax.f32 %v9367_v6, 9e-16  ;;  %3206 = vrsqrt.f32 %v1270_v35  ;;  %v5949_v23 = vmul.f32 %v9369_v7, %v9368_v25  ;;  %v5953_v0 = vmul.f32 %v9372_v29, %v9371_v57  ;;  %v9388_v41 = vld [vmem:[#allocation43_spill] sm:$0xff]  ;;  %v9397_v60 = vld [vmem:[#allocation44_spill] sm:$0xff] }
 0x14e   :  { %3208 = vrsqrt.f32 %v1271_v62  ;;  %v5957_v10 = vmul.f32 %v9375_v40, %v9374_v14  ;;  %v5961_v38 = vmul.f32 %v9378_v36, %v9377_v37  ;;  %v5965_v15 = vmul.f32 %v9369_v7, %v9380_v54  ;;  %v9390_v35 = vld [vmem:[#allocation47_spill] sm:$0xff]  ;;  %v9399_v13 = vld [vmem:[#allocation48_spill] sm:$0xff] }
 0x14f   :  { %9370 = vst [vmem:[#allocation87_spill] sm:$0xff] %v5949_v23  ;;  %9373 = vst [vmem:[#allocation88_spill] sm:$0xff] %v5953_v0  ;;  %v3195_v22 = vpop.eup %3194  ;;  %3210 = vrsqrt.f32 %v1272_v4  ;;  %v5969_v50 = vmul.f32 %v9372_v29, %v9382_v43  ;;  %v5971_v26 = vadd.f32 %v1249_v30, %v1248_v12  ;;  %v5975_v53 = vmul.f32 %v9375_v40, %v9384_v11  ;;  %v9393_v44 = vld [vmem:[#allocation51_spill] sm:$0xff]  ;;  %v9403_v59 = vld [vmem:[#allocation60_spill] sm:$0xff] }
 0x150   :  { %9376 = vst [vmem:[#allocation89_spill] sm:$0xff] %v5957_v10  ;;  %9379 = vst [vmem:[#allocation90_spill] sm:$0xff] %v5961_v38  ;;  %3212 = vrsqrt.f32 %v1273_v18  ;;  %v5979_v33 = vmul.f32 %v9378_v36, %v9386_v61  ;;  %v5981_v46 = vadd.f32 %v1262_v24, %v1261_v47  ;;  %v5985_v28 = vmul.f32 %v9369_v7, %v9388_v41  ;;  %v9395_v47 = vld [vmem:[#allocation40_spill] sm:$0xff]  ;;  %v9412_v38 = vld [vmem:[#allocation70_spill] sm:$0xff] }
 0x151   :  { %9381 = vst [vmem:[#allocation91_spill] sm:$0xff] %v5965_v15  ;;  %9383 = vst [vmem:[#allocation92_spill] sm:$0xff] %v5969_v50  ;;  %3214 = vrsqrt.f32 %v1274_v31  ;;  %v5989_v12 = vmul.f32 %v9372_v29, %v9390_v35  ;;  %v5992_v62 = vmul.f32 %v3195_v22, %v5903_v52  ;;  %v5996_v4 = vmul.f32 %v9375_v40, %v9393_v44  ;;  %v9401_v52 = vld [vmem:[#allocation52_spill] sm:$0xff]  ;;  %v9489_v44 = vld [vmem:[#allocation141_spill] sm:$0xff] }
 0x152   :  { %9385 = vst [vmem:[#allocation93_spill] sm:$0xff] %v5975_v53  ;;  %9387 = vst [vmem:[#allocation94_spill] sm:$0xff] %v5979_v33  ;;  %v3197_v8 = vpop.eup %3196  ;;  %3216 = vrsqrt.f32 %v1275_v27  ;;  %v6000_v21 = vmul.f32 %v9378_v36, %v9395_v47  ;;  %v6004_v31 = vmul.f32 %v9369_v7, %v9397_v60  ;;  %v6008_v27 = vmul.f32 %v9372_v29, %v9399_v13  ;;  %v9405_v45 = vld [vmem:[#allocation64_spill] sm:$0xff]  ;;  %v9410_v33 = vld [vmem:[#allocation69_spill] sm:$0xff] }
 0x153   :  { %9389 = vst [vmem:[#allocation95_spill] sm:$0xff] %v5985_v28  ;;  %9391 = vst [vmem:[#allocation96_spill] sm:$0xff] %v5989_v12  ;;  %v3199_v18 = vpop.eup %3198  ;;  %3218 = vrsqrt.f32 %v1276_v55  ;;  %v6012_v16 = vmul.f32 %v9375_v40, %v9401_v52  ;;  %v6016_v24 = vmul.f32 %v9378_v36, %v9403_v59  ;;  %v6020_v55 = vmul.f32 %v9369_v7, %v9405_v45  ;;  %v9407_v6 = vld [vmem:[#allocation68_spill] sm:$0xff]  ;;  %v9499_v41 = vld [vmem:[#allocation10_spill] sm:$0xff] }
 0x154   :  { %9392 = vst [vmem:[#allocation97_spill] sm:$0xff] %v5992_v62  ;;  %9394 = vst [vmem:[#allocation13_spill] sm:$0xff] %v5996_v4  ;;  %v3201_v30 = vpop.eup %3200  ;;  %3220 = vrsqrt.f32 %v1277_v32  ;;  %v6024_v22 = vmul.f32 %v9372_v29, %v9407_v6  ;;  %v6031_v32 = vmul.f32 %v9375_v40, %v9410_v33  ;;  %v9414_v4 = vld [vmem:[#allocation71_spill] sm:$0xff]  ;;  %v9416_v10 = vld [vmem:[#allocation72_spill] sm:$0xff] }
 0x155   :  { %9396 = vst [vmem:[#allocation20_spill] sm:$0xff] %v6000_v21  ;;  %9398 = vst [vmem:[#allocation21_spill] sm:$0xff] %v6004_v31  ;;  %v3203_v62 = vpop.eup %3202  ;;  %3222 = vrsqrt.f32 %v1278_v2  ;;  %v6027_v21 = vmul.f32 %v3197_v8, %v5905_v5  ;;  %v6039_v53 = vmul.f32 %v9369_v7, %v9414_v4  ;;  %v6043_v2 = vmul.f32 %v9372_v29, %v9416_v10  ;;  %v9418_v5 = vld [vmem:[#allocation73_spill] sm:$0xff]  ;;  %v9506_v61 = vld [vmem:[#allocation35_spill] sm:$0xff] }
 0x156   :  { %9400 = vst [vmem:[#allocation29_spill] sm:$0xff] %v6008_v27  ;;  %9402 = vst [vmem:[#allocation98_spill] sm:$0xff] %v6012_v16  ;;  %v3205_v16 = vpop.eup %3204  ;;  %3224 = vrsqrt.f32 %v1279_v49  ;;  %v6047_v8 = vmul.f32 %v9375_v40, %v9418_v5  ;;  %v9423_v49 = vld [vmem:[#allocation75_spill] sm:$0xff]  ;;  %v6065_v31 = vmul.f32 %v3201_v30, %v5910_v19  ;;  %v6080_v28 = vmul.f32 %v3203_v62, %v5912_v34  ;;  %v9436_v19 = vld [vmem:[#allocation80_spill] sm:$0xff] }
 0x157   :  { %9404 = vst [vmem:[#allocation99_spill] sm:$0xff] %v6016_v24  ;;  %9406 = vst [vmem:[#allocation100_spill] sm:$0xff] %v6020_v55  ;;  %v6035_v24 = vmul.f32 %v9378_v36, %v9412_v38  ;;  %v6058_v55 = vmul.f32 %v9369_v7, %v9423_v49  ;;  %v6087_v30 = vmul.f32 %v9372_v29, %v9436_v19  ;;  %v9443_v34 = vld [vmem:[#allocation53_spill] sm:$0xff]  ;;  %v9445_v62 = vld [vmem:[#allocation16_spill] sm:$0xff] }
 0x158   :  { %9408 = vst [vmem:[#allocation101_spill] sm:$0xff] %v6024_v22  ;;  %9409 = vst [vmem:[#allocation102_spill] sm:$0xff] %v6027_v21  ;;  %v3207_v21 = vpop.eup %3206  ;;  %v9421_v22 = vld [vmem:[#allocation74_spill] sm:$0xff] }
 0x159   :  { %9411 = vst [vmem:[#allocation103_spill] sm:$0xff] %v6031_v32  ;;  %9413 = vst [vmem:[#allocation104_spill] sm:$0xff] %v6035_v24  ;;  %v6050_v32 = vmul.f32 %v3199_v18, %v5907_v3  ;;  %v6054_v24 = vmul.f32 %v9378_v36, %v9421_v22  ;;  %v9430_v18 = vld [vmem:[#allocation78_spill] sm:$0xff]  ;;  %v6094_v50 = vmul.f32 %v3207_v21, %v5918_v9  ;;  %v9450_v21 = vld [vmem:[#allocation55_spill] sm:$0xff] }
 0x15a   :  { %9415 = vst [vmem:[#allocation105_spill] sm:$0xff] %v6039_v53  ;;  %9417 = vst [vmem:[#allocation106_spill] sm:$0xff] %v6043_v2  ;;  %v9425_v53 = vld [vmem:[#allocation76_spill] sm:$0xff]  ;;  %v3209_v2 = vpop.eup %3208 }
 0x15b   :  { %9419 = vst [vmem:[#allocation107_spill] sm:$0xff] %v6047_v8  ;;  %9420 = vst [vmem:[#allocation108_spill] sm:$0xff] %v6050_v32  ;;  %v6062_v27 = vmul.f32 %v9372_v29, %v9425_v53  ;;  %v9428_v8 = vld [vmem:[#allocation77_spill] sm:$0xff]  ;;  %v6073_v32 = vmul.f32 %v9378_v36, %v9430_v18 }
 0x15c   :  { %9422 = vst [vmem:[#allocation109_spill] sm:$0xff] %v6054_v24  ;;  %9424 = vst [vmem:[#allocation33_spill] sm:$0xff] %v6058_v55  ;;  %v6069_v3 = vmul.f32 %v9375_v40, %v9428_v8  ;;  %v9432_v24 = vld [vmem:[#allocation79_spill] sm:$0xff]  ;;  %v3211_v55 = vpop.eup %3210 }
 0x15d   :  { %9426 = vst [vmem:[#allocation22_spill] sm:$0xff] %v6062_v27  ;;  %9427 = vst [vmem:[#allocation26_spill] sm:$0xff] %v6065_v31  ;;  %v6077_v12 = vmul.f32 %v9369_v7, %v9432_v24  ;;  %v6083_v27 = vmul.f32 %v3205_v16, %v5914_v51  ;;  %v9438_v31 = vld [vmem:[#allocation81_spill] sm:$0xff]  ;;  %v6102_v51 = vmul.f32 %v9369_v7, %v9443_v34 }
 0x15e   :  { %9429 = vst [vmem:[#allocation30_spill] sm:$0xff] %v6069_v3  ;;  %9431 = vst [vmem:[#allocation110_spill] sm:$0xff] %v6073_v32  ;;  %v6091_v3 = vmul.f32 %v9375_v40, %v9438_v31  ;;  %v3213_v32 = vpop.eup %3212  ;;  %v6106_v16 = vmul.f32 %v9372_v29, %v9445_v62  ;;  %v6124_v0 = vmul.f32 %v3211_v55, %v5922_v58  ;;  %v9464_v55 = vld [vmem:[#allocation61_spill] sm:$0xff] }
 0x15f   :  { %9433 = vst [vmem:[#allocation111_spill] sm:$0xff] %v6077_v12  ;;  %9434 = vst [vmem:[#allocation112_spill] sm:$0xff] %v6080_v28  ;;  %v9441_v12 = vld [vmem:[#allocation82_spill] sm:$0xff]  ;;  %v6109_v28 = vmul.f32 %v3209_v2, %v5920_v63  ;;  %v9457_v2 = vld [vmem:[#allocation11_spill] sm:$0xff]  ;;  %v6139_v59 = vmul.f32 %v3213_v32, %v5925_v39 }
 0x160   :  { %9435 = vst [vmem:[#allocation113_spill] sm:$0xff] %v6083_v27  ;;  %9437 = vst [vmem:[#allocation114_spill] sm:$0xff] %v6087_v30  ;;  %v6098_v15 = vmul.f32 %v9378_v36, %v9441_v12  ;;  %v3215_v27 = vpop.eup %3214  ;;  %v9471_v32 = vld [vmem:[#allocation63_spill] sm:$0xff] }
 0x161   :  { %9439 = vst [vmem:[#allocation115_spill] sm:$0xff] %v6091_v3  ;;  %9440 = vst [vmem:[#allocation116_spill] sm:$0xff] %v6094_v50  ;;  %v9448_v3 = vld [vmem:[#allocation54_spill] sm:$0xff]  ;;  %v6117_v50 = vmul.f32 %v9378_v36, %v9450_v21  ;;  %v6154_v13 = vmul.f32 %v3215_v27, %v5927_v20  ;;  %v6173_v20 = vmul.f32 %v9375_v40, %v9349_v56 }
 0x162   :  { %9442 = vst [vmem:[#allocation117_spill] sm:$0xff] %v6098_v15  ;;  %9444 = vst [vmem:[#allocation118_spill] sm:$0xff] %v6102_v51  ;;  %v6113_v9 = vmul.f32 %v9375_v40, %v9448_v3  ;;  %v9452_v15 = vld [vmem:[#allocation56_spill] sm:$0xff]  ;;  %v3217_v51 = vpop.eup %3216  ;;  %v6177_v27 = vmul.f32 %v9378_v36, %v9351_v1 }
 0x163   :  { %9446 = vst [vmem:[#allocation119_spill] sm:$0xff] %v6106_v16  ;;  %9447 = vst [vmem:[#allocation120_spill] sm:$0xff] %v6109_v28  ;;  %v6121_v30 = vmul.f32 %v9369_v7, %v9452_v15  ;;  %v9455_v16 = vld [vmem:[#allocation57_spill] sm:$0xff]  ;;  %v6132_v28 = vmul.f32 %v9375_v40, %v9457_v2  ;;  %v6169_v47 = vmul.f32 %v3217_v51, %v5929_v48  ;;  %v9485_v51 = vld [vmem:[#allocation12_spill] sm:$0xff] }
 0x164   :  { %9449 = vst [vmem:[#allocation121_spill] sm:$0xff] %v6113_v9  ;;  %9451 = vst [vmem:[#allocation34_spill] sm:$0xff] %v6117_v50  ;;  %v6128_v63 = vmul.f32 %v9372_v29, %v9455_v16  ;;  %v9459_v9 = vld [vmem:[#allocation58_spill] sm:$0xff]  ;;  %v3219_v50 = vpop.eup %3218 }
 0x165   :  { %9453 = vst [vmem:[#allocation23_spill] sm:$0xff] %v6121_v30  ;;  %9454 = vst [vmem:[#allocation27_spill] sm:$0xff] %v6124_v0  ;;  %v6136_v23 = vmul.f32 %v9378_v36, %v9459_v9  ;;  %v9462_v30 = vld [vmem:[#allocation59_spill] sm:$0xff]  ;;  %v6147_v0 = vmul.f32 %v9372_v29, %v9464_v55 }
 0x166   :  { %9456 = vst [vmem:[#allocation31_spill] sm:$0xff] %v6128_v63  ;;  %9458 = vst [vmem:[#allocation122_spill] sm:$0xff] %v6132_v28  ;;  %v6143_v58 = vmul.f32 %v9369_v7, %v9462_v30  ;;  %v9466_v63 = vld [vmem:[#allocation25_spill] sm:$0xff]  ;;  %v3221_v28 = vpop.eup %3220 }
 0x167   :  { %9460 = vst [vmem:[#allocation123_spill] sm:$0xff] %v6136_v23  ;;  %9461 = vst [vmem:[#allocation124_spill] sm:$0xff] %v6139_v59  ;;  %v6151_v52 = vmul.f32 %v9375_v40, %v9466_v63  ;;  %v9469_v23 = vld [vmem:[#allocation62_spill] sm:$0xff]  ;;  %v6162_v59 = vmul.f32 %v9369_v7, %v9471_v32 }
 0x168   :  { %9463 = vst [vmem:[#allocation125_spill] sm:$0xff] %v6143_v58  ;;  %9465 = vst [vmem:[#allocation126_spill] sm:$0xff] %v6147_v0  ;;  %v6158_v39 = vmul.f32 %v9378_v36, %v9469_v23  ;;  %v9473_v58 = vld [vmem:[#allocation65_spill] sm:$0xff]  ;;  %v3223_v0 = vpop.eup %3222 }
 0x169   :  { %9467 = vst [vmem:[#allocation127_spill] sm:$0xff] %v6151_v52  ;;  %9468 = vst [vmem:[#allocation128_spill] sm:$0xff] %v6154_v13  ;;  %v6166_v60 = vmul.f32 %v9372_v29, %v9473_v58  ;;  %v9478_v13 = vld [vmem:[#allocation14_spill] sm:$0xff]  ;;  %v6184_v29 = vmul.f32 %v3219_v50, %v5933_v42  ;;  %v9483_v52 = vld [vmem:[#allocation139_spill] sm:$0xff] }
 0x16a   :  { %9470 = vst [vmem:[#allocation129_spill] sm:$0xff] %v6158_v39  ;;  %9472 = vst [vmem:[#allocation130_spill] sm:$0xff] %v6162_v59  ;;  %v9479_v39 = vld [vmem:[#allocation138_spill] sm:$0xff]  ;;  %v3225_v59 = vpop.eup %3224  ;;  %v9494_v42 = vld [vmem:[#allocation15_spill] sm:$0xff] }
 0x16b   :  { %9474 = vst [vmem:[#allocation131_spill] sm:$0xff] %v6166_v60  ;;  %9475 = vst [vmem:[#allocation66_spill] sm:$0xff] %v6169_v47  ;;  %v6181_v7 = vmul.f32 %v9479_v39, %v9478_v13  ;;  %v9482_v60 = vld [vmem:[#allocation9_spill] sm:$0xff]  ;;  %v9486_v47 = vld [vmem:[#allocation140_spill] sm:$0xff]  ;;  %v6207_v50 = vmul.f32 %v9483_v52, %v9494_v42 }
 0x16c   :  { %9476 = vst [vmem:[#allocation132_spill] sm:$0xff] %v6173_v20  ;;  %9477 = vst [vmem:[#allocation67_spill] sm:$0xff] %v6177_v27  ;;  %v6188_v48 = vmul.f32 %v9483_v52, %v9482_v60  ;;  %v6192_v40 = vmul.f32 %v9486_v47, %v9485_v51  ;;  %v9488_v20 = vld [vmem:[#allocation17_spill] sm:$0xff]  ;;  %v6199_v27 = vmul.f32 %v3221_v28, %v5942_v17  ;;  %v9501_v17 = vld [vmem:[#allocation7_spill] sm:$0xff] }
 0x16d   :  { %9480 = vst [vmem:[#allocation133_spill] sm:$0xff] %v6181_v7  ;;  %9481 = vst [vmem:[#allocation150_spill] sm:$0xff] %v6184_v29  ;;  %v6196_v36 = vmul.f32 %v9489_v44, %v9488_v20  ;;  %v9492_v7 = vld [vmem:[#allocation18_spill] sm:$0xff]  ;;  %v9496_v29 = vld [vmem:[#allocation19_spill] sm:$0xff]  ;;  %v6222_v28 = vmul.f32 %v9479_v39, %v9501_v17 }
 0x16e   :  { %9484 = vst [vmem:[#allocation151_spill] sm:$0xff] %v6188_v48  ;;  %9487 = vst [vmem:[#allocation152_spill] sm:$0xff] %v6192_v40  ;;  %v6203_v35 = vmul.f32 %v9479_v39, %v9492_v7  ;;  %v6211_v48 = vmul.f32 %v9486_v47, %v9496_v29  ;;  %v6214_v40 = vmul.f32 %v3223_v0, %v5971_v26  ;;  %v9508_v0 = vld [vmem:[#allocation24_spill] sm:$0xff] }
 0x16f   :  { %9490 = vst [vmem:[#allocation153_spill] sm:$0xff] %v6196_v36  ;;  %9491 = vst [vmem:[#allocation154_spill] sm:$0xff] %v6199_v27  ;;  %v6218_v36 = vmul.f32 %v9489_v44, %v9499_v41  ;;  %v9503_v27 = vld [vmem:[#allocation8_spill] sm:$0xff]  ;;  %v6237_v26 = vmul.f32 %v9489_v44, %v9508_v0 }
 0x170   :  { %9493 = vst [vmem:[#allocation155_spill] sm:$0xff] %v6203_v35  ;;  %9495 = vst [vmem:[#allocation156_spill] sm:$0xff] %v6207_v50  ;;  %v6226_v35 = vmul.f32 %v9483_v52, %v9503_v27  ;;  %v6229_v50 = vmul.f32 %v3225_v59, %v5981_v46  ;;  %v9516_v59 = vld [vmem:[#allocation37_spill] sm:$0xff] }
 0x171   :  { %9497 = vst [vmem:[#allocation157_spill] sm:$0xff] %v6211_v48  ;;  %9498 = vst [vmem:[#allocation158_spill] sm:$0xff] %v6214_v40  ;;  %v6233_v48 = vmul.f32 %v9486_v47, %v9506_v61  ;;  %v9510_v40 = vld [vmem:[#allocation28_spill] sm:$0xff] }
 0x172   :  { %9500 = vst [vmem:[#allocation159_spill] sm:$0xff] %v6218_v36  ;;  %9502 = vst [vmem:[#allocation160_spill] sm:$0xff] %v6222_v28  ;;  %v6241_v36 = vmul.f32 %v9479_v39, %v9510_v40  ;;  %v9512_v28 = vld [vmem:[#allocation32_spill] sm:$0xff] }
 0x173   :  { %9504 = vst [vmem:[#allocation83_spill] sm:$0xff] %v6226_v35  ;;  %9505 = vst [vmem:[#allocation84_spill] sm:$0xff] %v6229_v50  ;;  %v6245_v11 = vmul.f32 %v9483_v52, %v9512_v28  ;;  %v9514_v35 = vld [vmem:[#allocation36_spill] sm:$0xff]  ;;  %v6253_v50 = vmul.f32 %v9489_v44, %v9516_v59 }
 0x174   :  { %9507 = vst [vmem:[#allocation85_spill] sm:$0xff] %v6233_v48  ;;  %9509 = vst [vmem:[#allocation86_spill] sm:$0xff] %v6237_v26  ;;  %v6249_v46 = vmul.f32 %v9486_v47, %v9514_v35  ;;  %v6257_v48 = vmul.f32 %v9479_v39, %v9405_v45  ;;  %v6261_v26 = vmul.f32 %v9483_v52, %v9407_v6 }
 0x175   :  { %9511 = vst [vmem:[#allocation41_spill] sm:$0xff] %v6241_v36  ;;  %9513 = vst [vmem:[#allocation134_spill] sm:$0xff] %v6245_v11  ;;  %v6265_v36 = vmul.f32 %v9486_v47, %v9410_v33  ;;  %v6269_v11 = vmul.f32 %v9489_v44, %v9412_v38 }
 0x176   :  { %9515 = vst [vmem:[#allocation45_spill] sm:$0xff] %v6249_v46  ;;  %9517 = vst [vmem:[#allocation135_spill] sm:$0xff] %v6253_v50  ;;  %v6273_v46 = vmul.f32 %v9479_v39, %v9414_v4  ;;  %v6277_v50 = vmul.f32 %v9483_v52, %v9416_v10 }
 0x177   :  { %9518 = vst [vmem:[#allocation49_spill] sm:$0xff] %v6257_v48  ;;  %9519 = vst [vmem:[#allocation136_spill] sm:$0xff] %v6261_v26  ;;  %v6281_v48 = vmul.f32 %v9486_v47, %v9418_v5  ;;  %v6285_v26 = vmul.f32 %v9489_v44, %v9421_v22 }
 0x178   :  { %9520 = vst [vmem:[#allocation38_spill] sm:$0xff] %v6265_v36  ;;  %9521 = vst [vmem:[#allocation137_spill] sm:$0xff] %v6269_v11  ;;  %v6289_v36 = vmul.f32 %v9479_v39, %v9423_v49  ;;  %v6293_v11 = vmul.f32 %v9483_v52, %v9425_v53 }
 0x179   :  { %9522 = vst [vmem:[#allocation42_spill] sm:$0xff] %v6273_v46  ;;  %9523 = vst [vmem:[#allocation46_spill] sm:$0xff] %v6277_v50  ;;  %v6297_v46 = vmul.f32 %v9486_v47, %v9428_v8  ;;  %v6301_v50 = vmul.f32 %v9489_v44, %v9430_v18 }
 0x17a   :  { %9524 = vst [vmem:[#allocation64_spill] sm:$0xff] %v6281_v48  ;;  %9525 = vst [vmem:[#allocation68_spill] sm:$0xff] %v6285_v26  ;;  %v6305_v48 = vmul.f32 %v9479_v39, %v9432_v24  ;;  %v6309_v26 = vmul.f32 %v9483_v52, %v9436_v19 }
 0x17b   :  { %9526 = vst [vmem:[#allocation69_spill] sm:$0xff] %v6289_v36  ;;  %9527 = vst [vmem:[#allocation70_spill] sm:$0xff] %v6293_v11  ;;  %v6313_v36 = vmul.f32 %v9486_v47, %v9438_v31  ;;  %v6317_v11 = vmul.f32 %v9489_v44, %v9441_v12 }
 0x17c   :  { %9528 = vst [vmem:[#allocation71_spill] sm:$0xff] %v6297_v46  ;;  %9529 = vst [vmem:[#allocation72_spill] sm:$0xff] %v6301_v50  ;;  %v6321_v46 = vmul.f32 %v9479_v39, %v9443_v34  ;;  %v6325_v50 = vmul.f32 %v9483_v52, %v9445_v62 }
 0x17d   :  { %9530 = vst [vmem:[#allocation53_spill] sm:$0xff] %v6305_v48  ;;  %9531 = vst [vmem:[#allocation16_spill] sm:$0xff] %v6309_v26  ;;  %v6329_v48 = vmul.f32 %v9486_v47, %v9448_v3  ;;  %v6333_v26 = vmul.f32 %v9489_v44, %v9450_v21 }
 0x17e   :  { %9532 = vst [vmem:[#allocation54_spill] sm:$0xff] %v6313_v36  ;;  %9533 = vst [vmem:[#allocation55_spill] sm:$0xff] %v6317_v11  ;;  %v6337_v36 = vmul.f32 %v9479_v39, %v9452_v15  ;;  %v6341_v11 = vmul.f32 %v9483_v52, %v9455_v16 }
 0x17f   :  { %9534 = vst [vmem:[#allocation56_spill] sm:$0xff] %v6321_v46  ;;  %9535 = vst [vmem:[#allocation57_spill] sm:$0xff] %v6325_v50  ;;  %v6345_v46 = vmul.f32 %v9486_v47, %v9457_v2  ;;  %v6349_v50 = vmul.f32 %v9489_v44, %v9459_v9 }
 0x180   :  { %9536 = vst [vmem:[#allocation11_spill] sm:$0xff] %v6329_v48  ;;  %9537 = vst [vmem:[#allocation58_spill] sm:$0xff] %v6333_v26  ;;  %v6353_v48 = vmul.f32 %v9479_v39, %v9462_v30  ;;  %v6357_v26 = vmul.f32 %v9483_v52, %v9464_v55 }
 0x181   :  { %9538 = vst [vmem:[#allocation59_spill] sm:$0xff] %v6337_v36  ;;  %9539 = vst [vmem:[#allocation61_spill] sm:$0xff] %v6341_v11  ;;  %v6361_v36 = vmul.f32 %v9486_v47, %v9466_v63  ;;  %v6365_v11 = vmul.f32 %v9489_v44, %v9469_v23 }
 0x182   :  { %9540 = vst [vmem:[#allocation25_spill] sm:$0xff] %v6345_v46  ;;  %9541 = vst [vmem:[#allocation62_spill] sm:$0xff] %v6349_v50  ;;  %v6369_v46 = vmul.f32 %v9479_v39, %v9471_v32  ;;  %v6373_v50 = vmul.f32 %v9483_v52, %v9473_v58 }
 0x183   :  { %9542 = vst [vmem:[#allocation63_spill] sm:$0xff] %v6353_v48  ;;  %9543 = vst [vmem:[#allocation65_spill] sm:$0xff] %v6357_v26  ;;  %v6377_v48 = vmul.f32 %v9486_v47, %v9349_v56  ;;  %v6381_v26 = vmul.f32 %v9489_v44, %v9351_v1 }
 0x184   :  { %9544 = vst [vmem:[#allocation14_spill] sm:$0xff] %v6361_v36  ;;  %9545 = vst [vmem:[#allocation138_spill] sm:$0xff] %v6365_v11  ;;  %v9550_v36 = vld [vmem:[#allocation142_spill] sm:$0xff]  ;;  %v9552_v11 = vld [vmem:[#allocation143_spill] sm:$0xff] }
 0x185   :  { %9546 = vst [vmem:[#allocation9_spill] sm:$0xff] %v6369_v46  ;;  %9547 = vst [vmem:[#allocation139_spill] sm:$0xff] %v6373_v50  ;;  %v6385_v12 = vmul.f32 %v9550_v36, %v9478_v13  ;;  %v6389_v39 = vmul.f32 %v9552_v11, %v9482_v60  ;;  %v9554_v46 = vld [vmem:[#allocation144_spill] sm:$0xff]  ;;  %v9556_v50 = vld [vmem:[#allocation145_spill] sm:$0xff]  ;;  %v6401_v44 = vmul.f32 %v9550_v36, %v9492_v7 }
 0x186   :  { %9548 = vst [vmem:[#allocation12_spill] sm:$0xff] %v6377_v48  ;;  %9549 = vst [vmem:[#allocation140_spill] sm:$0xff] %v6381_v26  ;;  %v6393_v52 = vmul.f32 %v9554_v46, %v9485_v51  ;;  %v6397_v47 = vmul.f32 %v9556_v50, %v9488_v20  ;;  %v6405_v26 = vmul.f32 %v9552_v11, %v9494_v42 }
 0x187   :  { %9551 = vst [vmem:[#allocation17_spill] sm:$0xff] %v6385_v12  ;;  %9553 = vst [vmem:[#allocation141_spill] sm:$0xff] %v6389_v39  ;;  %v6409_v12 = vmul.f32 %v9554_v46, %v9496_v29  ;;  %v6413_v39 = vmul.f32 %v9556_v50, %v9499_v41 }
 0x188   :  { %9555 = vst [vmem:[#allocation18_spill] sm:$0xff] %v6393_v52  ;;  %9557 = vst [vmem:[#allocation15_spill] sm:$0xff] %v6397_v47  ;;  %v6417_v52 = vmul.f32 %v9550_v36, %v9501_v17  ;;  %v6421_v47 = vmul.f32 %v9552_v11, %v9503_v27 }
 0x189   :  { %9558 = vst [vmem:[#allocation19_spill] sm:$0xff] %v6401_v44  ;;  %9559 = vst [vmem:[#allocation10_spill] sm:$0xff] %v6405_v26  ;;  %v6425_v44 = vmul.f32 %v9554_v46, %v9506_v61  ;;  %v6429_v26 = vmul.f32 %v9556_v50, %v9508_v0 }
 0x18a   :  { %9560 = vst [vmem:[#allocation7_spill] sm:$0xff] %v6409_v12  ;;  %9561 = vst [vmem:[#allocation8_spill] sm:$0xff] %v6413_v39  ;;  %v6433_v12 = vmul.f32 %v9550_v36, %v9510_v40  ;;  %v6437_v39 = vmul.f32 %v9552_v11, %v9512_v28 }
 0x18b   :  { %9562 = vst [vmem:[#allocation35_spill] sm:$0xff] %v6417_v52  ;;  %9563 = vst [vmem:[#allocation24_spill] sm:$0xff] %v6421_v47  ;;  %v6441_v52 = vmul.f32 %v9554_v46, %v9514_v35  ;;  %v6445_v47 = vmul.f32 %v9556_v50, %v9516_v59 }
 0x18c   :  { %9564 = vst [vmem:[#allocation28_spill] sm:$0xff] %v6425_v44  ;;  %9565 = vst [vmem:[#allocation32_spill] sm:$0xff] %v6429_v26  ;;  %v6449_v44 = vmul.f32 %v9550_v36, %v9368_v25  ;;  %v6453_v26 = vmul.f32 %v9552_v11, %v9371_v57 }
 0x18d   :  { %9566 = vst [vmem:[#allocation36_spill] sm:$0xff] %v6433_v12  ;;  %9567 = vst [vmem:[#allocation37_spill] sm:$0xff] %v6437_v39  ;;  %v6457_v12 = vmul.f32 %v9554_v46, %v9374_v14  ;;  %v6461_v39 = vmul.f32 %v9556_v50, %v9377_v37 }
 0x18e   :  { %9568 = vst [vmem:[#allocation142_spill] sm:$0xff] %v6441_v52  ;;  %9569 = vst [vmem:[#allocation143_spill] sm:$0xff] %v6445_v47  ;;  %v6465_v52 = vmul.f32 %v9550_v36, %v9380_v54  ;;  %v6469_v47 = vmul.f32 %v9552_v11, %v9382_v43 }
 0x18f   :  { %9570 = vst [vmem:[#allocation144_spill] sm:$0xff] %v6449_v44  ;;  %9571 = vst [vmem:[#allocation145_spill] sm:$0xff] %v6453_v26  ;;  %v9576_v44 = vld [vmem:[#allocation50_spill] sm:$0xff]  ;;  %v9578_v26 = vld [vmem:[#allocation39_spill] sm:$0xff] }
 0x190   :  { %9572 = vst [vmem:[#allocation161_spill] sm:$0xff] %v6457_v12  ;;  %9573 = vst [vmem:[#allocation162_spill] sm:$0xff] %v6461_v39  ;;  %v6473_v48 = vmul.f32 %v9554_v46, %v9576_v44  ;;  %v6477_v31 = vmul.f32 %v9556_v50, %v9578_v26  ;;  %v9580_v12 = vld [vmem:[#allocation43_spill] sm:$0xff] }
 0x191   :  { %9574 = vst [vmem:[#allocation163_spill] sm:$0xff] %v6465_v52  ;;  %9575 = vst [vmem:[#allocation164_spill] sm:$0xff] %v6469_v47  ;;  %v6481_v19 = vmul.f32 %v9550_v36, %v9580_v12  ;;  %v9582_v39 = vld [vmem:[#allocation47_spill] sm:$0xff]  ;;  %v9586_v47 = vld [vmem:[#allocation40_spill] sm:$0xff] }
 0x192   :  { %9577 = vst [vmem:[#allocation50_spill] sm:$0xff] %v6473_v48  ;;  %9579 = vst [vmem:[#allocation39_spill] sm:$0xff] %v6477_v31  ;;  %v6485_v24 = vmul.f32 %v9552_v11, %v9582_v39  ;;  %v9584_v52 = vld [vmem:[#allocation51_spill] sm:$0xff]  ;;  %v6493_v8 = vmul.f32 %v9556_v50, %v9586_v47  ;;  %v9588_v48 = vld [vmem:[#allocation44_spill] sm:$0xff] }
 0x193   :  { %9581 = vst [vmem:[#allocation43_spill] sm:$0xff] %v6481_v19  ;;  %v6489_v18 = vmul.f32 %v9554_v46, %v9584_v52  ;;  %v6497_v53 = vmul.f32 %v9550_v36, %v9588_v48  ;;  %v9590_v31 = vld [vmem:[#allocation48_spill] sm:$0xff] }
 0x194   :  { %9583 = vst [vmem:[#allocation47_spill] sm:$0xff] %v6485_v24  ;;  %9587 = vst [vmem:[#allocation40_spill] sm:$0xff] %v6493_v8  ;;  %v6501_v49 = vmul.f32 %v9552_v11, %v9590_v31  ;;  %v9592_v19 = vld [vmem:[#allocation52_spill] sm:$0xff]  ;;  %v6517_v8 = vmul.f32 %v9552_v11, %v9445_v62  ;;  %v6537_v62 = vmul.f32 %v9554_v46, %v9457_v2 }
 0x195   :  { %9585 = vst [vmem:[#allocation51_spill] sm:$0xff] %v6489_v18  ;;  %9589 = vst [vmem:[#allocation44_spill] sm:$0xff] %v6497_v53  ;;  %v6505_v22 = vmul.f32 %v9554_v46, %v9592_v19  ;;  %v9594_v24 = vld [vmem:[#allocation60_spill] sm:$0xff]  ;;  %v6513_v18 = vmul.f32 %v9550_v36, %v9443_v34  ;;  %v6521_v53 = vmul.f32 %v9554_v46, %v9448_v3 }
 0x196   :  { %9591 = vst [vmem:[#allocation48_spill] sm:$0xff] %v6501_v49  ;;  %v6509_v5 = vmul.f32 %v9556_v50, %v9594_v24  ;;  %v6525_v49 = vmul.f32 %v9556_v50, %v9450_v21  ;;  %v6533_v34 = vmul.f32 %v9552_v11, %v9455_v16  ;;  %v6541_v3 = vmul.f32 %v9556_v50, %v9459_v9 }
 0x197   :  { %9593 = vst [vmem:[#allocation52_spill] sm:$0xff] %v6505_v22  ;;  %v6529_v22 = vmul.f32 %v9550_v36, %v9452_v15  ;;  %v6545_v21 = vmul.f32 %v9550_v36, %v9462_v30  ;;  %v6549_v15 = vmul.f32 %v9552_v11, %v9464_v55  ;;  %v6553_v16 = vmul.f32 %v9554_v46, %v9466_v63 }
 0x198   :  { %v6557_v2 = vmul.f32 %v9556_v50, %v9469_v23  ;;  %v6561_v9 = vmul.f32 %v9550_v36, %v9471_v32  ;;  %v6565_v30 = vmul.f32 %v9552_v11, %v9473_v58  ;;  %v6569_v55 = vmul.f32 %v9554_v46, %v9349_v56  ;;  %v9604_v36 = vld [vmem:[#allocation148_spill] sm:$0xff]  ;;  %v9606_v58 = vld [vmem:[#allocation149_spill] sm:$0xff] }
 0x199   :  { %9595 = vst [vmem:[#allocation60_spill] sm:$0xff] %v6553_v16  ;;  %v6573_v63 = vmul.f32 %v9556_v50, %v9351_v1  ;;  %v9600_v16 = vld [vmem:[#allocation146_spill] sm:$0xff]  ;;  %v6585_v11 = vmul.f32 %v9604_v36, %v9485_v51  ;;  %v6589_v56 = vmul.f32 %v9606_v58, %v9488_v20  ;;  %v6605_v51 = vmul.f32 %v9606_v58, %v9499_v41  ;;  %v9622_v46 = vld [vmem:[#allocation88_spill] sm:$0xff] }
 0x19a   :  { %9596 = vst [vmem:[#allocation165_spill] sm:$0xff] %v6557_v2  ;;  %9597 = vst [vmem:[#allocation166_spill] sm:$0xff] %v6565_v30  ;;  %v6577_v23 = vmul.f32 %v9600_v16, %v9478_v13  ;;  %v9602_v2 = vld [vmem:[#allocation147_spill] sm:$0xff]  ;;  %v6593_v1 = vmul.f32 %v9600_v16, %v9492_v7  ;;  %v6609_v20 = vmul.f32 %v9600_v16, %v9501_v17 }
 0x19b   :  { %9598 = vst [vmem:[#allocation167_spill] sm:$0xff] %v6569_v55  ;;  %9599 = vst [vmem:[#allocation168_spill] sm:$0xff] %v6573_v63  ;;  %v6581_v32 = vmul.f32 %v9602_v2, %v9482_v60  ;;  %v6597_v13 = vmul.f32 %v9602_v2, %v9494_v42  ;;  %v6601_v60 = vmul.f32 %v9604_v36, %v9496_v29  ;;  %v9638_v63 = vld [vmem:[#allocation98_spill] sm:$0xff] }
 0x19c   :  { %9601 = vst [vmem:[#allocation146_spill] sm:$0xff] %v6577_v23  ;;  %9605 = vst [vmem:[#allocation148_spill] sm:$0xff] %v6585_v11  ;;  %v6613_v7 = vmul.f32 %v9602_v2, %v9503_v27  ;;  %v6617_v42 = vmul.f32 %v9604_v36, %v9506_v61  ;;  %v6621_v29 = vmul.f32 %v9606_v58, %v9508_v0  ;;  %v9621_v0 = vld [vmem:[#allocation87_spill] sm:$0xff]  ;;  %v9637_v23 = vld [vmem:[#allocation13_spill] sm:$0xff] }
 0x19d   :  { %9603 = vst [vmem:[#allocation147_spill] sm:$0xff] %v6581_v32  ;;  %9607 = vst [vmem:[#allocation149_spill] sm:$0xff] %v6589_v56  ;;  %v6625_v41 = vmul.f32 %v9600_v16, %v9510_v40  ;;  %v6629_v50 = vmul.f32 %v9602_v2, %v9512_v28  ;;  %v6633_v27 = vmul.f32 %v9604_v36, %v9514_v35  ;;  %v1620_v40 = vsel %vm147_vm0, %v9621_v0, 0.0  ;;  %v9623_v28 = vld [vmem:[#allocation91_spill] sm:$0xff]  ;;  %v9632_v56 = vld [vmem:[#allocation106_spill] sm:$0xff] }
 0x19e   :  { %9608 = vst [vmem:[#allocation169_spill] sm:$0xff] %v6593_v1  ;;  %9609 = vst [vmem:[#allocation170_spill] sm:$0xff] %v6597_v13  ;;  %v6637_v61 = vmul.f32 %v9606_v58, %v9516_v59  ;;  %v6641_v17 = vmul.f32 %v9600_v16, %v9368_v25  ;;  %v9627_v25 = vld [vmem:[#allocation21_spill] sm:$0xff] }
 0x19f   :  { %9610 = vst [vmem:[#allocation171_spill] sm:$0xff] %v6601_v60  ;;  %9611 = vst [vmem:[#allocation172_spill] sm:$0xff] %v6605_v51  ;;  %v9624_v51 = vld [vmem:[#allocation92_spill] sm:$0xff]  ;;  %v9631_v60 = vld [vmem:[#allocation105_spill] sm:$0xff] }
 0x1a0   :  { %9612 = vst [vmem:[#allocation173_spill] sm:$0xff] %v6609_v20  ;;  %9613 = vst [vmem:[#allocation174_spill] sm:$0xff] %v6613_v7  ;;  %v1634_v35 = vsel %vm147_vm0, %v9624_v51, 0.0  ;;  %v9629_v7 = vld [vmem:[#allocation100_spill] sm:$0xff]  ;;  %v9630_v20 = vld [vmem:[#allocation101_spill] sm:$0xff]  ;;  %v1685_v51 = vsel %vm147_vm0, %v9631_v60, 0.0 }
 0x1a1   :  { %9614 = vst [vmem:[#allocation175_spill] sm:$0xff] %v6617_v42  ;;  %9615 = vst [vmem:[#allocation176_spill] sm:$0xff] %v6621_v29  ;;  %v1621_v29 = vsel %vm147_vm0, %v9622_v46, 0.0  ;;  %v1633_v42 = vsel %vm147_vm0, %v9623_v28, 0.0  ;;  %v1672_v46 = vsel %vm147_vm0, %v9629_v7, 0.0  ;;  %v1673_v28 = vsel %vm147_vm0, %v9630_v20, 0.0 }
 0x1a2   :  { %9616 = vst [vmem:[#allocation177_spill] sm:$0xff] %v6625_v41  ;;  %9617 = vst [vmem:[#allocation178_spill] sm:$0xff] %v6629_v50  ;;  %v9628_v41 = vld [vmem:[#allocation29_spill] sm:$0xff]  ;;  %v1635_v1 = vadd.f32 %v1634_v35, %v1633_v42 }
 0x1a3   :  { %9618 = vst [vmem:[#allocation179_spill] sm:$0xff] %v6633_v27  ;;  %9619 = vst [vmem:[#allocation180_spill] sm:$0xff] %v6637_v61  ;;  %v9625_v27 = vld [vmem:[#allocation95_spill] sm:$0xff]  ;;  %v9626_v61 = vld [vmem:[#allocation96_spill] sm:$0xff]  ;;  %v1660_v0 = vsel %vm147_vm0, %v9628_v41, 0.0  ;;  %v1622_v41 = vadd.f32 %v1621_v29, %v1620_v40 }
 0x1a4   :  { %9620 = vst [vmem:[#allocation181_spill] sm:$0xff] %v6641_v17  ;;  %v1646_v59 = vsel %vm147_vm0, %v9625_v27, 0.0  ;;  %v1647_v50 = vsel %vm147_vm0, %v9626_v61, 0.0  ;;  %v1659_v17 = vsel %vm147_vm0, %v9627_v25, 0.0  ;;  %v1686_v27 = vsel %vm147_vm0, %v9632_v56, 0.0  ;;  %v9635_v13 = vld [vmem:[#allocation89_spill] sm:$0xff] }
 0x1a5   :  { %v6669_v61 = vmul.f32 %v9602_v2, %v9371_v57  ;;  %v6673_v25 = vmul.f32 %v9604_v36, %v9374_v14  ;;  %v1623_v7 = vsel %vm147_vm0, %v9635_v13, 0.0  ;;  %v9636_v20 = vld [vmem:[#allocation93_spill] sm:$0xff]  ;;  %v1648_v60 = vadd.f32 %v1647_v50, %v1646_v59  ;;  %v9639_v14 = vld [vmem:[#allocation103_spill] sm:$0xff] }
 0x1a6   :  { %v1636_v11 = vsel %vm147_vm0, %v9636_v20, 0.0  ;;  %v1661_v32 = vadd.f32 %v1660_v0, %v1659_v17  ;;  %v1649_v56 = vsel %vm147_vm0, %v9637_v23, 0.0  ;;  %v1662_v57 = vsel %vm147_vm0, %v9638_v63, 0.0  ;;  %v9640_v40 = vld [vmem:[#allocation107_spill] sm:$0xff]  ;;  %v9641_v42 = vld [vmem:[#allocation33_spill] sm:$0xff]  ;;  %v9642_v20 = vld [vmem:[#allocation22_spill] sm:$0xff] }
 0x1a7   :  { %9633 = vst [vmem:[#allocation87_spill] sm:$0xff] %v6669_v61  ;;  %9634 = vst [vmem:[#allocation88_spill] sm:$0xff] %v6673_v25  ;;  %v1674_v61 = vadd.f32 %v1673_v28, %v1672_v46  ;;  %v1687_v55 = vadd.f32 %v1686_v27, %v1685_v51  ;;  %v1675_v29 = vsel %vm147_vm0, %v9639_v14, 0.0  ;;  %v1688_v13 = vsel %vm147_vm0, %v9640_v40, 0.0  ;;  %v9644_v63 = vld [vmem:[#allocation90_spill] sm:$0xff]  ;;  %v9646_v27 = vld [vmem:[#allocation20_spill] sm:$0xff] }
 0x1a8   :  { %v1698_v35 = vsel %vm147_vm0, %v9641_v42, 0.0  ;;  %v1699_v50 = vsel %vm147_vm0, %v9642_v20, 0.0  ;;  %v6693_v23 = vmul.f32 %v9606_v58, %v9377_v37  ;;  %v1624_v17 = vadd.f32 %v1623_v7, %v1622_v41  ;;  %v9645_v0 = vld [vmem:[#allocation94_spill] sm:$0xff]  ;;  %v9647_v42 = vld [vmem:[#allocation99_spill] sm:$0xff]  ;;  %v9648_v7 = vld [vmem:[#allocation104_spill] sm:$0xff] }
 0x1a9   :  { %v1625_v59 = vsel %vm147_vm0, %v9644_v63, 0.0  ;;  %v1638_v46 = vsel %vm147_vm0, %v9645_v0, 0.0  ;;  %v1637_v28 = vadd.f32 %v1636_v11, %v1635_v1  ;;  %v1650_v51 = vadd.f32 %v1649_v56, %v1648_v60  ;;  %v9649_v0 = vld [vmem:[#allocation109_spill] sm:$0xff]  ;;  %v9650_v1 = vld [vmem:[#allocation30_spill] sm:$0xff] }
 0x1aa   :  { %9643 = vst [vmem:[#allocation91_spill] sm:$0xff] %v6693_v23  ;;  %v1651_v14 = vsel %vm147_vm0, %v9646_v27, 0.0  ;;  %v1663_v40 = vadd.f32 %v1662_v57, %v1661_v32  ;;  %v1664_v20 = vsel %vm147_vm0, %v9647_v42, 0.0  ;;  %v1676_v25 = vadd.f32 %v1675_v29, %v1674_v61 }
 0x1ab   :  { %v1689_v30 = vadd.f32 %v1688_v13, %v1687_v55  ;;  %v1700_v37 = vadd.f32 %v1699_v50, %v1698_v35  ;;  %v6705_v41 = vmul.f32 %v9600_v16, %v9380_v54  ;;  %v1677_v63 = vsel %vm147_vm0, %v9648_v7, 0.0  ;;  %v9652_v13 = vld [vmem:[#allocation111_spill] sm:$0xff] }
 0x1ac   :  { %v1690_v11 = vsel %vm147_vm0, %v9649_v0, 0.0  ;;  %v1701_v60 = vsel %vm147_vm0, %v9650_v1, 0.0  ;;  %v6715_v32 = vmul.f32 %v9602_v2, %v9382_v43  ;;  %v6719_v55 = vmul.f32 %v9604_v36, %v9576_v44  ;;  %v9653_v43 = vld [vmem:[#allocation114_spill] sm:$0xff] }
 0x1ad   :  { %v6723_v54 = vmul.f32 %v9606_v58, %v9578_v26  ;;  %v1626_v61 = vadd.f32 %v1625_v59, %v1624_v17  ;;  %v1639_v56 = vadd.f32 %v1638_v46, %v1637_v28  ;;  %v1652_v57 = vadd.f32 %v1651_v14, %v1650_v51  ;;  %v9654_v59 = vld [vmem:[#allocation110_spill] sm:$0xff] }
 0x1ae   :  { %v1665_v29 = vadd.f32 %v1664_v20, %v1663_v40  ;;  %v1711_v35 = vsel %vm147_vm0, %v9652_v13, 0.0  ;;  %v1678_v50 = vadd.f32 %v1677_v63, %v1676_v25  ;;  %v1691_v27 = vadd.f32 %v1690_v11, %v1689_v30  ;;  %v9656_v40 = vld [vmem:[#allocation115_spill] sm:$0xff]  ;;  %v9661_v13 = vld [vmem:[#allocation118_spill] sm:$0xff] }
 0x1af   :  { %9651 = vst [vmem:[#allocation92_spill] sm:$0xff] %v6723_v54  ;;  %v1702_v42 = vadd.f32 %v1701_v60, %v1700_v37  ;;  %v1712_v7 = vsel %vm147_vm0, %v9653_v43, 0.0  ;;  %v6731_v44 = vmul.f32 %v9600_v16, %v9580_v12  ;;  %v6735_v26 = vmul.f32 %v9602_v2, %v9582_v39 }
 0x1b0   :  { %v6739_v17 = vmul.f32 %v9604_v36, %v9584_v52  ;;  %v1703_v25 = vsel %vm147_vm0, %v9654_v59, 0.0  ;;  %v6745_v30 = vmul.f32 %v9606_v58, %v9586_v47  ;;  %v6749_v46 = vmul.f32 %v9600_v16, %v9588_v48  ;;  %v9663_v59 = vld [vmem:[#allocation117_spill] sm:$0xff] }
 0x1b1   :  { %v1627_v12 = vrot.slane %v1626_v61, 4  ;;  %v1713_v28 = vadd.f32 %v1712_v7, %v1711_v35  ;;  %v1640_v51 = vrot.slane %v1639_v56, 4  ;;  %v1653_v39 = vrot.slane %v1652_v57, 4 }
 0x1b2   :  { %9655 = vst [vmem:[#allocation95_spill] sm:$0xff] %v6745_v30  ;;  %v1666_v14 = vrot.slane %v1665_v29, 4  ;;  %v1714_v52 = vsel %vm147_vm0, %v9656_v40, 0.0  ;;  %v6755_v20 = vmul.f32 %v9602_v2, %v9590_v31  ;;  %v1679_v37 = vrot.slane %v1678_v50, 4  ;;  %v9688_v30 = vld [vmem:[#allocation122_spill] sm:$0xff] }
 0x1b3   :  { %v1692_v63 = vrot.slane %v1691_v27, 4  ;;  %v1704_v47 = vadd.f32 %v1703_v25, %v1702_v42  ;;  %v6759_v0 = vmul.f32 %v9604_v36, %v9592_v19  ;;  %v6763_v48 = vmul.f32 %v9606_v58, %v9594_v24  ;;  %v9662_v42 = vld [vmem:[#allocation119_spill] sm:$0xff] }
 0x1b4   :  { %v6767_v11 = vmul.f32 %v9600_v16, %v9405_v45  ;;  %v6771_v1 = vmul.f32 %v9602_v2, %v9407_v6  ;;  %v1628_v31 = vadd.f32 %v1627_v12, %v1626_v61  ;;  %v1715_v60 = vadd.f32 %v1714_v52, %v1713_v28 }
 0x1b5   :  { %9657 = vst [vmem:[#allocation96_spill] sm:$0xff] %v6759_v0  ;;  %9658 = vst [vmem:[#allocation21_spill] sm:$0xff] %v6763_v48  ;;  %v1724_v35 = vsel %vm147_vm0, %v9661_v13, 0.0  ;;  %v1725_v19 = vsel %vm147_vm0, %v9662_v42, 0.0  ;;  %v1641_v43 = vadd.f32 %v1640_v51, %v1639_v56  ;;  %v1654_v7 = vadd.f32 %v1653_v39, %v1652_v57  ;;  %v9684_v48 = vld [vmem:[#allocation79_spill] sm:$0xff] }
 0x1b6   :  { %9659 = vst [vmem:[#allocation29_spill] sm:$0xff] %v6767_v11  ;;  %9660 = vst [vmem:[#allocation100_spill] sm:$0xff] %v6771_v1  ;;  %v1667_v24 = vadd.f32 %v1666_v14, %v1665_v29  ;;  %v1716_v25 = vsel %vm147_vm0, %v9663_v59, 0.0  ;;  %v6781_v45 = vmul.f32 %v9604_v36, %v9410_v33  ;;  %v1680_v6 = vadd.f32 %v1679_v37, %v1678_v50  ;;  %v9668_v29 = vld [vmem:[#allocation73_spill] sm:$0xff]  ;;  %v9670_v50 = vld [vmem:[#allocation74_spill] sm:$0xff] }
 0x1b7   :  { %v1693_v40 = vadd.f32 %v1692_v63, %v1691_v27  ;;  %v1705_v61 = vrot.slane %v1704_v47, 4  ;;  %v6785_v12 = vmul.f32 %v9606_v58, %v9412_v38  ;;  %v6789_v28 = vmul.f32 %v9600_v16, %v9414_v4  ;;  %v9672_v38 = vld [vmem:[#allocation121_spill] sm:$0xff]  ;;  %v9673_v63 = vld [vmem:[#allocation75_spill] sm:$0xff]  ;;  %v9738_v11 = vld [vmem:[#allocation72_spill] sm:$0xff] }
 0x1b8   :  { %9664 = vst [vmem:[#allocation101_spill] sm:$0xff] %v6781_v45  ;;  %v6793_v56 = vmul.f32 %v9602_v2, %v9416_v10  ;;  %v1726_v57 = vadd.f32 %v1725_v19, %v1724_v35  ;;  %v6797_v33 = vmul.f32 %v9604_v36, %v9668_v29  ;;  %v6801_v27 = vmul.f32 %v9606_v58, %v9670_v50  ;;  %v9675_v19 = vld [vmem:[#allocation76_spill] sm:$0xff]  ;;  %v9678_v50 = vld [vmem:[#allocation31_spill] sm:$0xff] }
 0x1b9   :  { %9665 = vst [vmem:[#allocation105_spill] sm:$0xff] %v6785_v12  ;;  %9666 = vst [vmem:[#allocation106_spill] sm:$0xff] %v6789_v28  ;;  %v1717_v51 = vadd.f32 %v1716_v25, %v1715_v60  ;;  %v1727_v39 = vsel %vm147_vm0, %v9672_v38, 0.0  ;;  %v1629_v14 = vrot.slane %v1628_v31, 2  ;;  %v1642_v4 = vrot.slane %v1641_v43, 2  ;;  %v9677_v60 = vld [vmem:[#allocation23_spill] sm:$0xff] }
 0x1ba   :  { %9667 = vst [vmem:[#allocation89_spill] sm:$0xff] %v6793_v56  ;;  %9669 = vst [vmem:[#allocation93_spill] sm:$0xff] %v6797_v33  ;;  %v1655_v52 = vrot.slane %v1654_v7, 2  ;;  %v1668_v37 = vrot.slane %v1667_v24, 2  ;;  %v6807_v10 = vmul.f32 %v9600_v16, %v9673_v63  ;;  %v1681_v13 = vrot.slane %v1680_v6, 2  ;;  %v9681_v63 = vld [vmem:[#allocation78_spill] sm:$0xff] }
 0x1bb   :  { %9671 = vst [vmem:[#allocation13_spill] sm:$0xff] %v6801_v27  ;;  %v1694_v35 = vrot.slane %v1693_v40, 2  ;;  %v1706_v42 = vadd.f32 %v1705_v61, %v1704_v47  ;;  %v6811_v59 = vmul.f32 %v9602_v2, %v9675_v19  ;;  %v1728_v29 = vadd.f32 %v1727_v39, %v1726_v57  ;;  %v9679_v27 = vld [vmem:[#allocation77_spill] sm:$0xff]  ;;  %v9683_v61 = vld [vmem:[#allocation34_spill] sm:$0xff]  ;;  %v9731_v45 = vld [vmem:[#allocation64_spill] sm:$0xff] }
 0x1bc   :  { %9674 = vst [vmem:[#allocation98_spill] sm:$0xff] %v6807_v10  ;;  %v1737_v25 = vsel %vm147_vm0, %v9677_v60, 0.0  ;;  %v1738_v38 = vsel %vm147_vm0, %v9678_v50, 0.0  ;;  %v6819_v12 = vmul.f32 %v9604_v36, %v9679_v27  ;;  %v6823_v10 = vmul.f32 %v9606_v58, %v9681_v63 }
 0x1bd   :  { %9676 = vst [vmem:[#allocation103_spill] sm:$0xff] %v6811_v59  ;;  %v1718_v47 = vrot.slane %v1717_v51, 4  ;;  %v1729_v19 = vsel %vm147_vm0, %v9683_v61, 0.0  ;;  %v1630_v59 = vadd.f32 %v1629_v14, %v1628_v31  ;;  %v1643_v57 = vadd.f32 %v1642_v4, %v1641_v43  ;;  %v9689_v31 = vld [vmem:[#allocation81_spill] sm:$0xff] }
 0x1be   :  { %9680 = vst [vmem:[#allocation107_spill] sm:$0xff] %v6819_v12  ;;  %9682 = vst [vmem:[#allocation33_spill] sm:$0xff] %v6823_v10  ;;  %v1656_v39 = vadd.f32 %v1655_v52, %v1654_v7  ;;  %v1669_v33 = vadd.f32 %v1668_v37, %v1667_v24  ;;  %v1682_v60 = vadd.f32 %v1681_v13, %v1680_v6  ;;  %v1707_v28 = vrot.slane %v1706_v42, 2  ;;  %v9686_v12 = vld [vmem:[#allocation80_spill] sm:$0xff]  ;;  %v9691_v24 = vld [vmem:[#allocation125_spill] sm:$0xff] }
 0x1bf   :  { %v1695_v56 = vadd.f32 %v1694_v35, %v1693_v40  ;;  %v1739_v50 = vadd.f32 %v1738_v38, %v1737_v25  ;;  %v6829_v27 = vmul.f32 %v9600_v16, %v9684_v48  ;;  %v6833_v63 = vmul.f32 %v9602_v2, %v9686_v12  ;;  %v9692_v40 = vld [vmem:[#allocation126_spill] sm:$0xff]  ;;  %v9695_v35 = vld [vmem:[#allocation123_spill] sm:$0xff] }
 0x1c0   :  { %v1730_v10 = vadd.f32 %v1729_v19, %v1728_v29  ;;  %v1740_v61 = vsel %vm147_vm0, %v9688_v30, 0.0  ;;  %v6839_v43 = vmul.f32 %v9604_v36, %v9689_v31  ;;  %v1719_v7 = vadd.f32 %v1718_v47, %v1717_v51  ;;  %v9693_v13 = vld [vmem:[#allocation82_spill] sm:$0xff]  ;;  %v9696_v47 = vld [vmem:[#allocation127_spill] sm:$0xff] }
 0x1c1   :  { %9685 = vst [vmem:[#allocation22_spill] sm:$0xff] %v6829_v27  ;;  %9687 = vst [vmem:[#allocation90_spill] sm:$0xff] %v6833_v63  ;;  %v1750_v6 = vsel %vm147_vm0, %v9691_v24, 0.0  ;;  %v1751_v16 = vsel %vm147_vm0, %v9692_v40, 0.0  ;;  %v1631_v48 = vrot.slane %v1630_v59, 1  ;;  %v1644_v14 = vrot.slane %v1643_v57, 1 }
 0x1c2   :  { %9690 = vst [vmem:[#allocation94_spill] sm:$0xff] %v6839_v43  ;;  %v1657_v4 = vrot.slane %v1656_v39, 1  ;;  %v1670_v2 = vrot.slane %v1669_v33, 1  ;;  %v1683_v12 = vrot.slane %v1682_v60, 1  ;;  %v1696_v52 = vrot.slane %v1695_v56, 1  ;;  %v9697_v31 = vld [vmem:[#allocation130_spill] sm:$0xff] }
 0x1c3   :  { %v6845_v37 = vadd.f32 %v1707_v28, %v1706_v42  ;;  %v1741_v30 = vadd.f32 %v1740_v61, %v1739_v50  ;;  %v6849_v36 = vmul.f32 %v9606_v58, %v9693_v13  ;;  %v1731_v51 = vrot.slane %v1730_v10, 4  ;;  %v9698_v40 = vld [vmem:[#allocation131_spill] sm:$0xff]  ;;  %v9728_v43 = vld [vmem:[#allocation70_spill] sm:$0xff] }
 0x1c4   :  { %v1742_v29 = vsel %vm147_vm0, %v9695_v35, 0.0  ;;  %v1752_v25 = vadd.f32 %v1751_v16, %v1750_v6  ;;  %v1720_v38 = vrot.slane %v1719_v7, 2  ;;  %v1753_v19 = vsel %vm147_vm0, %v9696_v47, 0.0  ;;  %v9730_v27 = vld [vmem:[#allocation38_spill] sm:$0xff] }
 0x1c5   :  { %9694 = vst [vmem:[#allocation20_spill] sm:$0xff] %v6849_v36  ;;  %v1763_v24 = vsel %vm147_vm0, %v9697_v31, 0.0  ;;  %v1764_v28 = vsel %vm147_vm0, %v9698_v40, 0.0  ;;  %v6859_v42 = vadd.f32 %v1631_v48, %v1630_v59  ;;  %v6861_v50 = vadd.f32 %v1644_v14, %v1643_v57  ;;  %v9705_v40 = vld [vmem:[#allocation129_spill] sm:$0xff]  ;;  %v9708_v14 = vld [vmem:[#allocation151_spill] sm:$0xff]  ;;  %v9727_v36 = vld [vmem:[#allocation86_spill] sm:$0xff] }
 0x1c6   :  { %v6863_v58 = vadd.f32 %v1657_v4, %v1656_v39  ;;  %v6865_v61 = vadd.f32 %v1670_v2, %v1669_v33  ;;  %v6867_v13 = vadd.f32 %v1683_v12, %v1682_v60  ;;  %v6869_v6 = vadd.f32 %v1696_v52, %v1695_v56  ;;  %v9706_v39 = vld [vmem:[#allocation132_spill] sm:$0xff]  ;;  %v9707_v60 = vld [vmem:[#allocation133_spill] sm:$0xff]  ;;  %v9709_v2 = vld [vmem:[#allocation155_spill] sm:$0xff] }
 0x1c7   :  { %9699 = vst [vmem:[#allocation99_spill] sm:$0xff] %v6859_v42  ;;  %9700 = vst [vmem:[#allocation104_spill] sm:$0xff] %v6861_v50  ;;  %v6872_v35 = vadd.f32 %v1742_v29, %v1741_v30  ;;  %v6874_v47 = vadd.f32 %v1731_v51, %v1730_v10  ;;  %v1754_v31 = vadd.f32 %v1753_v19, %v1752_v25  ;;  %v1755_v59 = vsel %vm147_vm0, %v9705_v40, 0.0  ;;  %v9710_v12 = vld [vmem:[#allocation156_spill] sm:$0xff]  ;;  %v9715_v40 = vld [vmem:[#allocation134_spill] sm:$0xff] }
 0x1c8   :  { %9701 = vst [vmem:[#allocation109_spill] sm:$0xff] %v6863_v58  ;;  %9702 = vst [vmem:[#allocation30_spill] sm:$0xff] %v6865_v61  ;;  %v1765_v57 = vadd.f32 %v1764_v28, %v1763_v24  ;;  %v6878_v48 = vadd.f32 %v1720_v38, %v1719_v7  ;;  %v1766_v33 = vsel %vm147_vm0, %v9706_v39, 0.0  ;;  %v1776_v56 = vsel %vm147_vm0, %v9707_v60, 0.0  ;;  %v9711_v30 = vld [vmem:[#allocation160_spill] sm:$0xff]  ;;  %v9712_v7 = vld [vmem:[#allocation83_spill] sm:$0xff] }
 0x1c9   :  { %9703 = vst [vmem:[#allocation111_spill] sm:$0xff] %v6867_v13  ;;  %9704 = vst [vmem:[#allocation114_spill] sm:$0xff] %v6869_v6  ;;  %v1777_v4 = vsel %vm147_vm0, %v9708_v14, 0.0  ;;  %v1789_v10 = vsel %vm147_vm0, %v9709_v2, 0.0  ;;  %v1790_v52 = vsel %vm147_vm0, %v9710_v12, 0.0  ;;  %v1802_v51 = vsel %vm147_vm0, %v9711_v30, 0.0 }
 0x1ca   :  { %v1803_v29 = vsel %vm147_vm0, %v9712_v7, 0.0  ;;  %v1744_v25 = vrot.slane %v6872_v35, 4  ;;  %v9713_v38 = vld [vmem:[#allocation67_spill] sm:$0xff]  ;;  %v9714_v24 = vld [vmem:[#allocation41_spill] sm:$0xff]  ;;  %v1816_v39 = vsel %vm147_vm0, %v9715_v40, 0.0  ;;  %v1733_v60 = vrot.slane %v6874_v47, 2 }
 0x1cb   :  { %v1768_v19 = vsel %vm147_vm0, %v9713_v38, 0.0  ;;  %v1815_v28 = vsel %vm147_vm0, %v9714_v24, 0.0  ;;  %v6902_v14 = vadd.f32 %v1755_v59, %v1754_v31  ;;  %v1767_v2 = vadd.f32 %v1766_v33, %v1765_v57  ;;  %v9716_v7 = vld [vmem:[#allocation152_spill] sm:$0xff]  ;;  %v9717_v38 = vld [vmem:[#allocation157_spill] sm:$0xff] }
 0x1cc   :  { %v1778_v12 = vadd.f32 %v1777_v4, %v1776_v56  ;;  %v1722_v30 = vrot.slane %v6878_v48, 1  ;;  %v1779_v16 = vsel %vm147_vm0, %v9716_v7, 0.0  ;;  %v1791_v6 = vadd.f32 %v1790_v52, %v1789_v10  ;;  %v9718_v24 = vld [vmem:[#allocation85_spill] sm:$0xff]  ;;  %v9721_v33 = vld [vmem:[#allocation136_spill] sm:$0xff]  ;;  %v9722_v4 = vld [vmem:[#allocation42_spill] sm:$0xff] }
 0x1cd   :  { %v1804_v13 = vadd.f32 %v1803_v29, %v1802_v51  ;;  %v1792_v61 = vsel %vm147_vm0, %v9717_v38, 0.0  ;;  %v1805_v58 = vsel %vm147_vm0, %v9718_v24, 0.0  ;;  %v1817_v40 = vadd.f32 %v1816_v39, %v1815_v28  ;;  %v9719_v50 = vld [vmem:[#allocation45_spill] sm:$0xff]  ;;  %v9723_v52 = vld [vmem:[#allocation46_spill] sm:$0xff]  ;;  %v9725_v28 = vld [vmem:[#allocation159_spill] sm:$0xff] }
 0x1ce   :  { %v1818_v31 = vsel %vm147_vm0, %v9719_v50, 0.0  ;;  %v9720_v59 = vld [vmem:[#allocation49_spill] sm:$0xff]  ;;  %v1881_v56 = vsel %vm147_vm0, %v9721_v33, 0.0  ;;  %v1893_v10 = vsel %vm147_vm0, %v9722_v4, 0.0  ;;  %v1894_v51 = vsel %vm147_vm0, %v9723_v52, 0.0  ;;  %v9729_v52 = vld [vmem:[#allocation135_spill] sm:$0xff] }
 0x1cf   :  { %v1880_v57 = vsel %vm147_vm0, %v9720_v59, 0.0  ;;  %v1780_v29 = vadd.f32 %v1779_v16, %v1778_v12  ;;  %v9724_v7 = vld [vmem:[#allocation153_spill] sm:$0xff]  ;;  %v1794_v39 = vsel %vm147_vm0, %v9725_v28, 0.0  ;;  %v1793_v59 = vadd.f32 %v1792_v61, %v1791_v6 }
 0x1d0   :  { %v1781_v38 = vsel %vm147_vm0, %v9724_v7, 0.0  ;;  %v9726_v50 = vld [vmem:[#allocation69_spill] sm:$0xff]  ;;  %v1806_v42 = vadd.f32 %v1805_v58, %v1804_v13  ;;  %v1807_v33 = vsel %vm147_vm0, %v9727_v36, 0.0  ;;  %v1907_v4 = vsel %vm147_vm0, %v9728_v43, 0.0  ;;  %v9733_v43 = vld [vmem:[#allocation71_spill] sm:$0xff] }
 0x1d1   :  { %v1906_v24 = vsel %vm147_vm0, %v9726_v50, 0.0  ;;  %v1819_v63 = vadd.f32 %v1818_v31, %v1817_v40  ;;  %v1820_v16 = vsel %vm147_vm0, %v9729_v52, 0.0  ;;  %v1882_v12 = vadd.f32 %v1881_v56, %v1880_v57  ;;  %v9732_v58 = vld [vmem:[#allocation53_spill] sm:$0xff]  ;;  %v9734_v31 = vld [vmem:[#allocation16_spill] sm:$0xff] }
 0x1d2   :  { %v1895_v7 = vadd.f32 %v1894_v51, %v1893_v10  ;;  %v1883_v28 = vsel %vm147_vm0, %v9730_v27, 0.0  ;;  %v1896_v50 = vsel %vm147_vm0, %v9731_v45, 0.0  ;;  %v1908_v61 = vadd.f32 %v1907_v4, %v1906_v24  ;;  %v9735_v27 = vld [vmem:[#allocation54_spill] sm:$0xff] }
 0x1d3   :  { %v1919_v13 = vsel %vm147_vm0, %v9732_v58, 0.0  ;;  %v1757_v36 = vrot.slane %v6902_v14, 4  ;;  %v1769_v6 = vadd.f32 %v1768_v19, %v1767_v2  ;;  %v1909_v40 = vsel %vm147_vm0, %v9733_v43, 0.0  ;;  %v9736_v58 = vld [vmem:[#allocation137_spill] sm:$0xff]  ;;  %v9737_v19 = vld [vmem:[#allocation68_spill] sm:$0xff] }
 0x1d4   :  { %v1920_v57 = vsel %vm147_vm0, %v9734_v31, 0.0  ;;  %v1782_v56 = vadd.f32 %v1781_v38, %v1780_v29  ;;  %v1795_v10 = vadd.f32 %v1794_v39, %v1793_v59  ;;  %v1922_v52 = vsel %vm147_vm0, %v9735_v27, 0.0  ;;  %v9739_v38 = vld [vmem:[#allocation55_spill] sm:$0xff]  ;;  %v9740_v59 = vld [vmem:[#allocation56_spill] sm:$0xff] }
 0x1d5   :  { %v1921_v51 = vadd.f32 %v1920_v57, %v1919_v13  ;;  %v1808_v45 = vadd.f32 %v1807_v33, %v1806_v42  ;;  %v1821_v24 = vadd.f32 %v1820_v16, %v1819_v63  ;;  %v1884_v4 = vadd.f32 %v1883_v28, %v1882_v12  ;;  %v9741_v63 = vld [vmem:[#allocation57_spill] sm:$0xff] }
 0x1d6   :  { %v1897_v1 = vadd.f32 %v1896_v50, %v1895_v7  ;;  %v1885_v54 = vsel %vm147_vm0, %v9736_v58, 0.0  ;;  %v1898_v2 = vsel %vm147_vm0, %v9737_v19, 0.0  ;;  %v1910_v43 = vadd.f32 %v1909_v40, %v1908_v61  ;;  %v9745_v19 = vld [vmem:[#allocation11_spill] sm:$0xff] }
 0x1d7   :  { %v1923_v23 = vadd.f32 %v1922_v52, %v1921_v51  ;;  %v1911_v29 = vsel %vm147_vm0, %v9738_v11, 0.0  ;;  %v1924_v39 = vsel %vm147_vm0, %v9739_v38, 0.0  ;;  %v1932_v42 = vsel %vm147_vm0, %v9740_v59, 0.0  ;;  %v9746_v59 = vld [vmem:[#allocation59_spill] sm:$0xff] }
 0x1d8   :  { %v1933_v33 = vsel %vm147_vm0, %v9741_v63, 0.0  ;;  %v9742_v16 = vrot.slane %v6845_v37, 1  ;;  %v1745_v7 = vadd.f32 %v1744_v25, %v6872_v35  ;;  %v1770_v28 = vrot.slane %v1769_v6, 4 }
 0x1d9   :  { %v1783_v50 = vrot.slane %v1782_v56, 4  ;;  %v6965_v11 = vadd.f32 %v1722_v30, %v6878_v48  ;;  %v1734_v61 = vadd.f32 %v1733_v60, %v6874_v47  ;;  %v1886_v13 = vadd.f32 %v1885_v54, %v1884_v4  ;;  %v9747_v30 = vld [vmem:[#allocation61_spill] sm:$0xff] }
 0x1da   :  { %v6961_v12 = vadd.f32 %v9742_v16, %v6845_v37  ;;  %v1899_v40 = vadd.f32 %v1898_v2, %v1897_v1  ;;  %v1796_v31 = vrot.slane %v1795_v10, 4  ;;  %v1912_v57 = vadd.f32 %v1911_v29, %v1910_v43  ;;  %v9749_v16 = vld [vmem:[#allocation25_spill] sm:$0xff] }
 0x1db   :  { %9744 = vst [vmem:[#allocation115_spill] sm:$0xff] %v6965_v11  ;;  %v1925_v51 = vadd.f32 %v1924_v39, %v1923_v23  ;;  %v1934_v27 = vadd.f32 %v1933_v33, %v1932_v42  ;;  %v1758_v52 = vadd.f32 %v1757_v36, %v6902_v14  ;;  %v1809_v58 = vrot.slane %v1808_v45, 4  ;;  %v9748_v39 = vld [vmem:[#allocation58_spill] sm:$0xff] }
 0x1dc   :  { %9743 = vst [vmem:[#allocation110_spill] sm:$0xff] %v6961_v12  ;;  %v1822_v37 = vrot.slane %v1821_v24, 4  ;;  %v1935_v35 = vsel %vm147_vm0, %v9745_v19, 0.0  ;;  %v1771_v25 = vadd.f32 %v1770_v28, %v1769_v6  ;;  %v1784_v38 = vadd.f32 %v1783_v50, %v1782_v56  ;;  %v9752_v12 = vld [vmem:[#allocation62_spill] sm:$0xff] }
 0x1dd   :  { %v1945_v48 = vsel %vm147_vm0, %v9746_v59, 0.0  ;;  %v1946_v54 = vsel %vm147_vm0, %v9747_v30, 0.0  ;;  %v1735_v1 = vrot.slane %v1734_v61, 1  ;;  %v1746_v47 = vrot.slane %v1745_v7, 2  ;;  %v9750_v59 = vld [vmem:[#allocation63_spill] sm:$0xff] }
 0x1de   :  { %v1887_v60 = vrot.slane %v1886_v13, 4  ;;  %v1900_v23 = vrot.slane %v1899_v40, 4  ;;  %v1797_v4 = vadd.f32 %v1796_v31, %v1795_v10  ;;  %v1913_v2 = vrot.slane %v1912_v57, 4  ;;  %v9751_v31 = vld [vmem:[#allocation65_spill] sm:$0xff] }
 0x1df   :  { %v1926_v14 = vrot.slane %v1925_v51, 4  ;;  %v1936_v36 = vadd.f32 %v1935_v35, %v1934_v27  ;;  %v1810_v43 = vadd.f32 %v1809_v58, %v1808_v45  ;;  %v1823_v29 = vadd.f32 %v1822_v37, %v1821_v24 }
 0x1e0   :  { %v1937_v6 = vsel %vm147_vm0, %v9748_v39, 0.0  ;;  %v1947_v56 = vadd.f32 %v1946_v54, %v1945_v48  ;;  %v1759_v42 = vrot.slane %v1758_v52, 2  ;;  %v1772_v63 = vrot.slane %v1771_v25, 2 }
 0x1e1   :  { %v1785_v33 = vrot.slane %v1784_v38, 2  ;;  %v1948_v28 = vsel %vm147_vm0, %v9749_v16, 0.0  ;;  %v1888_v50 = vadd.f32 %v1887_v60, %v1886_v13  ;;  %v1901_v19 = vadd.f32 %v1900_v23, %v1899_v40 }
 0x1e2   :  { %v1958_v10 = vsel %vm147_vm0, %v9750_v59, 0.0  ;;  %v1959_v27 = vsel %vm147_vm0, %v9751_v31, 0.0  ;;  %v1798_v45 = vrot.slane %v1797_v4, 2  ;;  %v1914_v24 = vadd.f32 %v1913_v2, %v1912_v57  ;;  %v9753_v59 = vld [vmem:[#allocation14_spill] sm:$0xff] }
 0x1e3   :  { %v1927_v58 = vadd.f32 %v1926_v14, %v1925_v51  ;;  %v1938_v37 = vadd.f32 %v1937_v6, %v1936_v36  ;;  %v1747_v35 = vadd.f32 %v1746_v47, %v1745_v7  ;;  %v1811_v48 = vrot.slane %v1810_v43, 2 }
 0x1e4   :  { %v1824_v30 = vrot.slane %v1823_v29, 2  ;;  %v1949_v54 = vadd.f32 %v1948_v28, %v1947_v56  ;;  %v1760_v39 = vadd.f32 %v1759_v42, %v1758_v52  ;;  %v1773_v11 = vadd.f32 %v1772_v63, %v1771_v25  ;;  %v9754_v63 = vld [vmem:[#allocation138_spill] sm:$0xff] }
 0x1e5   :  { %v1950_v13 = vsel %vm147_vm0, %v9752_v12, 0.0  ;;  %v1960_v40 = vadd.f32 %v1959_v27, %v1958_v10  ;;  %v1786_v60 = vadd.f32 %v1785_v33, %v1784_v38  ;;  %v1889_v23 = vrot.slane %v1888_v50, 2 }
 0x1e6   :  { %v1902_v16 = vrot.slane %v1901_v19, 2  ;;  %v1961_v31 = vsel %vm147_vm0, %v9753_v59, 0.0  ;;  %v1799_v0 = vadd.f32 %v1798_v45, %v1797_v4  ;;  %v1915_v57 = vrot.slane %v1914_v24, 2 }
 0x1e7   :  { %v1928_v51 = vrot.slane %v1927_v58, 2  ;;  %v1939_v2 = vrot.slane %v1938_v37, 4  ;;  %v1748_v7 = vrot.slane %v1747_v35, 1  ;;  %v1812_v47 = vadd.f32 %v1811_v48, %v1810_v43 }
 0x1e8   :  { %v1825_v14 = vadd.f32 %v1824_v30, %v1823_v29  ;;  %v1951_v36 = vadd.f32 %v1950_v13, %v1949_v54  ;;  %v6987_v52 = vadd.f32 %v1735_v1, %v1734_v61  ;;  %v1761_v25 = vrot.slane %v1760_v39, 1  ;;  %v9755_v30 = vld [vmem:[#allocation9_spill] sm:$0xff] }
 0x1e9   :  { %v1774_v6 = vrot.slane %v1773_v11, 1  ;;  %v1962_v12 = vadd.f32 %v1961_v31, %v1960_v40  ;;  %v1787_v56 = vrot.slane %v1786_v60, 1  ;;  %v1890_v38 = vadd.f32 %v1889_v23, %v1888_v50  ;;  %v9756_v50 = vld [vmem:[#allocation139_spill] sm:$0xff] }
 0x1ea   :  { %v1903_v42 = vadd.f32 %v1902_v16, %v1901_v19  ;;  %v1963_v33 = vsel %vm147_vm0, %v9754_v63, 0.0  ;;  %v1800_v28 = vrot.slane %v1799_v0, 1  ;;  %v1916_v4 = vadd.f32 %v1915_v57, %v1914_v24 }
 0x1eb   :  { %v1929_v10 = vadd.f32 %v1928_v51, %v1927_v58  ;;  %v1940_v27 = vadd.f32 %v1939_v2, %v1938_v37  ;;  %v6991_v45 = vadd.f32 %v1748_v7, %v1747_v35  ;;  %v1813_v43 = vrot.slane %v1812_v47, 1  ;;  %v9758_v2 = vld [vmem:[#allocation12_spill] sm:$0xff]  ;;  %v9759_v7 = vld [vmem:[#allocation17_spill] sm:$0xff] }
 0x1ec   :  { %v1826_v29 = vrot.slane %v1825_v14, 1  ;;  %v1952_v48 = vrot.slane %v1951_v36, 4  ;;  %v6993_v61 = vadd.f32 %v1761_v25, %v1760_v39  ;;  %v1964_v1 = vadd.f32 %v1963_v33, %v1962_v12  ;;  %v9760_v25 = vld [vmem:[#allocation141_spill] sm:$0xff] }
 0x1ed   :  { %v1971_v54 = vsel %vm147_vm0, %v9755_v30, 0.0  ;;  %v1972_v19 = vsel %vm147_vm0, %v9756_v50, 0.0  ;;  %v6999_v13 = vadd.f32 %v1774_v6, %v1773_v11  ;;  %v7001_v40 = vadd.f32 %v1787_v56, %v1786_v60  ;;  %v9764_v56 = vld [vmem:[#allocation10_spill] sm:$0xff] }
 0x1ee   :  { %v1891_v24 = vrot.slane %v1890_v38, 1  ;;  %v1904_v58 = vrot.slane %v1903_v42, 1  ;;  %v7003_v37 = vadd.f32 %v1800_v28, %v1799_v0  ;;  %v1917_v35 = vrot.slane %v1916_v4, 1 }
 0x1ef   :  { %v1930_v23 = vrot.slane %v1929_v10, 1  ;;  %v1941_v16 = vrot.slane %v1940_v27, 2  ;;  %v7005_v39 = vadd.f32 %v1813_v43, %v1812_v47  ;;  %v7007_v59 = vadd.f32 %v1826_v29, %v1825_v14  ;;  %v9763_v47 = vld [vmem:[#allocation19_spill] sm:$0xff]  ;;  %v9767_v43 = vld [vmem:[#allocation140_spill] sm:$0xff] }
 0x1f0   :  { %v1953_v31 = vadd.f32 %v1952_v48, %v1951_v36  ;;  %v1973_v57 = vadd.f32 %v1972_v19, %v1971_v54  ;;  %v1965_v51 = vrot.slane %v1964_v1, 4  ;;  %v1974_v11 = vsel %vm147_vm0, %v9758_v2, 0.0  ;;  %v9769_v19 = vld [vmem:[#allocation15_spill] sm:$0xff] }
 0x1f1   :  { %9757 = vst [vmem:[#allocation118_spill] sm:$0xff] %v7007_v59  ;;  %v1984_v60 = vsel %vm147_vm0, %v9759_v7, 0.0  ;;  %v1985_v0 = vsel %vm147_vm0, %v9760_v25, 0.0  ;;  %v7015_v6 = vadd.f32 %v1891_v24, %v1890_v38  ;;  %v7017_v12 = vadd.f32 %v1904_v58, %v1903_v42  ;;  %v9768_v42 = vld [vmem:[#allocation18_spill] sm:$0xff]  ;;  %v9770_v58 = vld [vmem:[#allocation7_spill] sm:$0xff] }
 0x1f2   :  { %v1997_v14 = vsel %vm147_vm0, %v9763_v47, 0.0  ;;  %v1998_v36 = vsel %vm147_vm0, %v9764_v56, 0.0  ;;  %v7023_v63 = vadd.f32 %v1917_v35, %v1916_v4  ;;  %v7025_v33 = vadd.f32 %v1930_v23, %v1929_v10  ;;  %v9772_v23 = vld [vmem:[#allocation24_spill] sm:$0xff] }
 0x1f3   :  { %9761 = vst [vmem:[#allocation119_spill] sm:$0xff] %v7015_v6  ;;  %9762 = vst [vmem:[#allocation117_spill] sm:$0xff] %v7017_v12  ;;  %v7027_v28 = vadd.f32 %v1941_v16, %v1940_v27  ;;  %v1976_v29 = vsel %vm147_vm0, %v9767_v43, 0.0  ;;  %v1954_v48 = vrot.slane %v1953_v31, 2  ;;  %v1975_v38 = vadd.f32 %v1974_v11, %v1973_v57  ;;  %v9771_v27 = vld [vmem:[#allocation35_spill] sm:$0xff]  ;;  %v9773_v57 = vld [vmem:[#allocation36_spill] sm:$0xff] }
 0x1f4   :  { %9765 = vst [vmem:[#allocation73_spill] sm:$0xff] %v7023_v63  ;;  %9766 = vst [vmem:[#allocation74_spill] sm:$0xff] %v7025_v33  ;;  %v1986_v30 = vadd.f32 %v1985_v0, %v1984_v60  ;;  %v1987_v54 = vsel %vm147_vm0, %v9768_v42, 0.0  ;;  %v7033_v50 = vadd.f32 %v1965_v51, %v1964_v1  ;;  %v1989_v24 = vsel %vm147_vm0, %v9769_v19, 0.0  ;;  %v9774_v11 = vld [vmem:[#allocation37_spill] sm:$0xff]  ;;  %v9775_v51 = vld [vmem:[#allocation144_spill] sm:$0xff] }
 0x1f5   :  { %v1999_v4 = vadd.f32 %v1998_v36, %v1997_v14  ;;  %v2000_v10 = vsel %vm147_vm0, %v9770_v58, 0.0  ;;  %v2010_v35 = vsel %vm147_vm0, %v9771_v27, 0.0  ;;  %v2011_v16 = vsel %vm147_vm0, %v9772_v23, 0.0  ;;  %v9776_v60 = vld [vmem:[#allocation145_spill] sm:$0xff]  ;;  %v9777_v0 = vld [vmem:[#allocation163_spill] sm:$0xff]  ;;  %v9778_v14 = vld [vmem:[#allocation164_spill] sm:$0xff] }
 0x1f6   :  { %v2023_v2 = vsel %vm147_vm0, %v9773_v57, 0.0  ;;  %v2024_v1 = vsel %vm147_vm0, %v9774_v11, 0.0  ;;  %v2036_v7 = vsel %vm147_vm0, %v9775_v51, 0.0  ;;  %v2037_v25 = vsel %vm147_vm0, %v9776_v60, 0.0  ;;  %v9779_v43 = vld [vmem:[#allocation8_spill] sm:$0xff]  ;;  %v9780_v19 = vld [vmem:[#allocation43_spill] sm:$0xff] }
 0x1f7   :  { %v2049_v47 = vsel %vm147_vm0, %v9777_v0, 0.0  ;;  %v2050_v56 = vsel %vm147_vm0, %v9778_v14, 0.0  ;;  %v1988_v36 = vadd.f32 %v1987_v54, %v1986_v30  ;;  %v2002_v42 = vsel %vm147_vm0, %v9779_v43, 0.0  ;;  %v9781_v27 = vld [vmem:[#allocation47_spill] sm:$0xff]  ;;  %v9782_v51 = vld [vmem:[#allocation28_spill] sm:$0xff]  ;;  %v9783_v0 = vld [vmem:[#allocation142_spill] sm:$0xff] }
 0x1f8   :  { %v2062_v58 = vsel %vm147_vm0, %v9780_v19, 0.0  ;;  %v2063_v23 = vsel %vm147_vm0, %v9781_v27, 0.0  ;;  %v2001_v57 = vadd.f32 %v2000_v10, %v1999_v4  ;;  %v2012_v11 = vadd.f32 %v2011_v16, %v2010_v35  ;;  %v9784_v43 = vld [vmem:[#allocation161_spill] sm:$0xff]  ;;  %v9785_v19 = vld [vmem:[#allocation50_spill] sm:$0xff]  ;;  %v9786_v27 = vld [vmem:[#allocation51_spill] sm:$0xff] }
 0x1f9   :  { %v2013_v60 = vsel %vm147_vm0, %v9782_v51, 0.0  ;;  %v2025_v33 = vadd.f32 %v2024_v1, %v2023_v2  ;;  %v2026_v63 = vsel %vm147_vm0, %v9783_v0, 0.0  ;;  %v2038_v14 = vadd.f32 %v2037_v25, %v2036_v7  ;;  %v9787_v16 = vld [vmem:[#allocation44_spill] sm:$0xff] }
 0x1fa   :  { %v2051_v30 = vadd.f32 %v2050_v56, %v2049_v47  ;;  %v2064_v54 = vadd.f32 %v2063_v23, %v2062_v58  ;;  %v1977_v12 = vadd.f32 %v1976_v29, %v1975_v38  ;;  %v2039_v6 = vsel %vm147_vm0, %v9784_v43, 0.0  ;;  %v9788_v1 = vld [vmem:[#allocation48_spill] sm:$0xff]  ;;  %v9790_v58 = vld [vmem:[#allocation143_spill] sm:$0xff] }
 0x1fb   :  { %v2052_v59 = vsel %vm147_vm0, %v9785_v19, 0.0  ;;  %v2065_v4 = vsel %vm147_vm0, %v9786_v27, 0.0  ;;  %v1955_v10 = vadd.f32 %v1954_v48, %v1953_v31  ;;  %v1990_v35 = vadd.f32 %v1989_v24, %v1988_v36  ;;  %v9789_v29 = vld [vmem:[#allocation32_spill] sm:$0xff]  ;;  %v9791_v31 = vld [vmem:[#allocation162_spill] sm:$0xff]  ;;  %v9792_v24 = vld [vmem:[#allocation39_spill] sm:$0xff] }
 0x1fc   :  { %v2075_v2 = vsel %vm147_vm0, %v9787_v16, 0.0  ;;  %v2076_v7 = vsel %vm147_vm0, %v9788_v1, 0.0  ;;  %v2003_v25 = vadd.f32 %v2002_v42, %v2001_v57  ;;  %v2014_v47 = vadd.f32 %v2013_v60, %v2012_v11  ;;  %v9793_v19 = vld [vmem:[#allocation40_spill] sm:$0xff] }
 0x1fd   :  { %v2015_v38 = vsel %vm147_vm0, %v9789_v29, 0.0  ;;  %v2027_v56 = vadd.f32 %v2026_v63, %v2025_v33  ;;  %v2028_v23 = vsel %vm147_vm0, %v9790_v58, 0.0  ;;  %v2040_v51 = vadd.f32 %v2039_v6, %v2038_v14  ;;  %v9794_v60 = vld [vmem:[#allocation52_spill] sm:$0xff] }
 0x1fe   :  { %v2053_v0 = vadd.f32 %v2052_v59, %v2051_v30  ;;  %v2066_v43 = vadd.f32 %v2065_v4, %v2064_v54  ;;  %v2041_v48 = vsel %vm147_vm0, %v9791_v31, 0.0  ;;  %v2054_v36 = vsel %vm147_vm0, %v9792_v24, 0.0 }
 0x1ff   :  { %v2067_v42 = vsel %vm147_vm0, %v9793_v19, 0.0  ;;  %v2077_v57 = vadd.f32 %v2076_v7, %v2075_v2  ;;  %v1943_v11 = vrot.slane %v7027_v28, 1  ;;  %v2078_v63 = vsel %vm147_vm0, %v9794_v60, 0.0 }
 0x200   :  { %v2140_v6 = vsel %vm147_vm0, %v6513_v18, 0.0  ;;  %v2141_v59 = vsel %vm147_vm0, %v6517_v8, 0.0  ;;  %v1967_v33 = vrot.slane %v7033_v50, 2  ;;  %v1978_v14 = vrot.slane %v1977_v12, 4 }
 0x201   :  { %v2016_v30 = vadd.f32 %v2015_v38, %v2014_v47  ;;  %v2029_v54 = vadd.f32 %v2028_v23, %v2027_v56  ;;  %v1956_v27 = vrot.slane %v1955_v10, 1  ;;  %v2042_v4 = vadd.f32 %v2041_v48, %v2040_v51 }
 0x202   :  { %v2055_v16 = vadd.f32 %v2054_v36, %v2053_v0  ;;  %v2068_v2 = vadd.f32 %v2067_v42, %v2066_v43  ;;  %v1991_v1 = vrot.slane %v1990_v35, 4  ;;  %v2004_v7 = vrot.slane %v2003_v25, 4 }
 0x203   :  { %v2079_v29 = vadd.f32 %v2078_v63, %v2077_v57  ;;  %v2142_v58 = vadd.f32 %v2141_v59, %v2140_v6  ;;  %v2080_v31 = vsel %vm147_vm0, %v6509_v5, 0.0  ;;  %v2143_v18 = vsel %vm147_vm0, %v6521_v53, 0.0 }
 0x204   :  { %v2153_v8 = vsel %vm147_vm0, %v6529_v22, 0.0  ;;  %v2154_v47 = vsel %vm147_vm0, %v6533_v34, 0.0  ;;  %v7102_v38 = vadd.f32 %v1943_v11, %v7027_v28  ;;  %v7105_v56 = vadd.f32 %v1967_v33, %v7033_v50 }
 0x205   :  { %v2017_v23 = vrot.slane %v2016_v30, 4  ;;  %v2030_v51 = vrot.slane %v2029_v54, 4  ;;  %v1979_v0 = vadd.f32 %v1978_v14, %v1977_v12  ;;  %v2043_v43 = vrot.slane %v2042_v4, 4 }
 0x206   :  { %v2056_v5 = vrot.slane %v2055_v16, 4  ;;  %v2069_v48 = vrot.slane %v2068_v2, 4  ;;  %v1992_v24 = vadd.f32 %v1991_v1, %v1990_v35  ;;  %v2081_v53 = vadd.f32 %v2080_v31, %v2079_v29 }
 0x207   :  { %v2144_v36 = vadd.f32 %v2143_v18, %v2142_v58  ;;  %v2155_v19 = vadd.f32 %v2154_v47, %v2153_v8  ;;  %v7107_v22 = vadd.f32 %v1956_v27, %v1955_v10  ;;  %v2005_v42 = vadd.f32 %v2004_v7, %v2003_v25 }
 0x208   :  { %v2145_v34 = vsel %vm147_vm0, %v6525_v49, 0.0  ;;  %v2156_v28 = vsel %vm147_vm0, %v6537_v62, 0.0  ;;  %v2018_v50 = vadd.f32 %v2017_v23, %v2016_v30  ;;  %v2031_v57 = vadd.f32 %v2030_v51, %v2029_v54  ;;  %v9795_v30 = vld [vmem:[#allocation166_spill] sm:$0xff]  ;;  %v9797_v23 = vld [vmem:[#allocation167_spill] sm:$0xff] }
 0x209   :  { %v2166_v12 = vsel %vm147_vm0, %v6545_v21, 0.0  ;;  %v2167_v35 = vsel %vm147_vm0, %v6549_v15, 0.0  ;;  %v1980_v11 = vrot.slane %v1979_v0, 2  ;;  %v2044_v60 = vadd.f32 %v2043_v43, %v2042_v4  ;;  %v9796_v4 = vld [vmem:[#allocation60_spill] sm:$0xff] }
 0x20a   :  { %v2057_v63 = vadd.f32 %v2056_v5, %v2055_v16  ;;  %v2070_v10 = vadd.f32 %v2069_v48, %v2068_v2  ;;  %v1993_v6 = vrot.slane %v1992_v24, 2  ;;  %v2082_v25 = vrot.slane %v2081_v53, 4 }
 0x20b   :  { %v2146_v59 = vadd.f32 %v2145_v34, %v2144_v36  ;;  %v2157_v33 = vadd.f32 %v2156_v28, %v2155_v19  ;;  %v2158_v49 = vsel %vm147_vm0, %v6541_v3, 0.0  ;;  %v2168_v62 = vadd.f32 %v2167_v35, %v2166_v12  ;;  %v9798_v36 = vld [vmem:[#allocation165_spill] sm:$0xff] }
 0x20c   :  { %v2179_v14 = vsel %vm147_vm0, %v6561_v9, 0.0  ;;  %v2180_v21 = vsel %vm147_vm0, %v9795_v30, 0.0  ;;  %v2006_v54 = vrot.slane %v2005_v42, 2  ;;  %v2019_v15 = vrot.slane %v2018_v50, 2 }
 0x20d   :  { %v2032_v27 = vrot.slane %v2031_v57, 2  ;;  %v2169_v16 = vsel %vm147_vm0, %v9796_v4, 0.0  ;;  %v1981_v2 = vadd.f32 %v1980_v11, %v1979_v0  ;;  %v2045_v1 = vrot.slane %v2044_v60, 2 }
 0x20e   :  { %v2058_v7 = vrot.slane %v2057_v63, 2  ;;  %v2071_v29 = vrot.slane %v2070_v10, 2  ;;  %v2083_v58 = vadd.f32 %v2082_v25, %v2081_v53  ;;  %v2147_v31 = vrot.slane %v2146_v59, 4 }
 0x20f   :  { %v2159_v3 = vadd.f32 %v2158_v49, %v2157_v33  ;;  %v2181_v18 = vadd.f32 %v2180_v21, %v2179_v14  ;;  %v1969_v8 = vrot.slane %v7105_v56, 1  ;;  %v1994_v9 = vadd.f32 %v1993_v6, %v1992_v24  ;;  %v9799_v24 = vld [vmem:[#allocation168_spill] sm:$0xff]  ;;  %v9800_v49 = vld [vmem:[#allocation146_spill] sm:$0xff] }
 0x210   :  { %v2170_v47 = vadd.f32 %v2169_v16, %v2168_v62  ;;  %v2182_v51 = vsel %vm147_vm0, %v9797_v23, 0.0  ;;  %v2007_v43 = vadd.f32 %v2006_v54, %v2005_v42  ;;  %v2020_v5 = vadd.f32 %v2019_v15, %v2018_v50  ;;  %v9801_v50 = vld [vmem:[#allocation147_spill] sm:$0xff]  ;;  %v9803_v23 = vld [vmem:[#allocation169_spill] sm:$0xff] }
 0x211   :  { %v2033_v48 = vadd.f32 %v2032_v27, %v2031_v57  ;;  %v2171_v0 = vsel %vm147_vm0, %v9798_v36, 0.0  ;;  %v1982_v19 = vrot.slane %v1981_v2, 1  ;;  %v2046_v34 = vadd.f32 %v2045_v1, %v2044_v60 }
 0x212   :  { %v2059_v28 = vadd.f32 %v2058_v7, %v2057_v63  ;;  %v2072_v53 = vadd.f32 %v2071_v29, %v2070_v10  ;;  %v2084_v12 = vrot.slane %v2083_v58, 2  ;;  %v2148_v35 = vadd.f32 %v2147_v31, %v2146_v59  ;;  %v9802_v29 = vld [vmem:[#allocation148_spill] sm:$0xff] }
 0x213   :  { %v2160_v11 = vrot.slane %v2159_v3, 4  ;;  %v2183_v25 = vadd.f32 %v2182_v51, %v2181_v18  ;;  %v2172_v33 = vadd.f32 %v2171_v0, %v2170_v47  ;;  %v2184_v6 = vsel %vm147_vm0, %v9799_v24, 0.0  ;;  %v9804_v51 = vld [vmem:[#allocation170_spill] sm:$0xff] }
 0x214   :  { %v2192_v42 = vsel %vm147_vm0, %v9800_v49, 0.0  ;;  %v2193_v57 = vsel %vm147_vm0, %v9801_v50, 0.0  ;;  %v1995_v62 = vrot.slane %v1994_v9, 1  ;;  %v2008_v14 = vrot.slane %v2007_v43, 1  ;;  %v9808_v49 = vld [vmem:[#allocation174_spill] sm:$0xff]  ;;  %v9809_v50 = vld [vmem:[#allocation177_spill] sm:$0xff] }
 0x215   :  { %v2021_v30 = vrot.slane %v2020_v5, 1  ;;  %v2034_v60 = vrot.slane %v2033_v48, 1  ;;  %v7137_v63 = vadd.f32 %v1969_v8, %v7105_v56  ;;  %v7139_v10 = vadd.f32 %v1982_v19, %v1981_v2 }
 0x216   :  { %v2047_v59 = vrot.slane %v2046_v34, 1  ;;  %v2060_v21 = vrot.slane %v2059_v28, 1  ;;  %v2073_v54 = vrot.slane %v2072_v53, 1  ;;  %v7141_v15 = vadd.f32 %v2084_v12, %v2083_v58 }
 0x217   :  { %v2185_v27 = vadd.f32 %v2184_v6, %v2183_v25  ;;  %v2194_v4 = vadd.f32 %v2193_v57, %v2192_v42  ;;  %v2149_v16 = vrot.slane %v2148_v35, 2  ;;  %v7143_v1 = vadd.f32 %v2160_v11, %v2159_v3  ;;  %v9806_v25 = vld [vmem:[#allocation171_spill] sm:$0xff]  ;;  %v9807_v6 = vld [vmem:[#allocation173_spill] sm:$0xff]  ;;  %v9810_v57 = vld [vmem:[#allocation178_spill] sm:$0xff] }
 0x218   :  { %v2173_v7 = vrot.slane %v2172_v33, 4  ;;  %v2195_v31 = vsel %vm147_vm0, %v9802_v29, 0.0  ;;  %v7147_v18 = vadd.f32 %v1995_v62, %v1994_v9  ;;  %v7149_v56 = vadd.f32 %v2008_v14, %v2007_v43  ;;  %v9811_v62 = vld [vmem:[#allocation181_spill] sm:$0xff] }
 0x219   :  { %v7151_v2 = vadd.f32 %v2021_v30, %v2020_v5  ;;  %v7153_v8 = vadd.f32 %v2034_v60, %v2033_v48  ;;  %v7155_v47 = vadd.f32 %v2047_v59, %v2046_v34  ;;  %v7157_v58 = vadd.f32 %v2060_v21, %v2059_v28  ;;  %v9805_v28 = vld [vmem:[#allocation149_spill] sm:$0xff]  ;;  %v9812_v30 = vld [vmem:[#allocation87_spill] sm:$0xff] }
 0x21a   :  { %v2205_v3 = vsel %vm147_vm0, %v9803_v23, 0.0  ;;  %v2206_v36 = vsel %vm147_vm0, %v9804_v51, 0.0  ;;  %v7163_v0 = vadd.f32 %v2073_v54, %v2072_v53  ;;  %v2086_v9 = vrot.slane %v7141_v15, 1 }
 0x21b   :  { %v2186_v43 = vrot.slane %v2185_v27, 4  ;;  %v2196_v19 = vadd.f32 %v2195_v31, %v2194_v4  ;;  %v7166_v5 = vadd.f32 %v2149_v16, %v2148_v35  ;;  %v7169_v34 = vadd.f32 %v2173_v7, %v2172_v33  ;;  %v9813_v16 = vld [vmem:[#allocation172_spill] sm:$0xff] }
 0x21c   :  { %v2197_v12 = vsel %vm147_vm0, %v9805_v28, 0.0  ;;  %v2207_v11 = vadd.f32 %v2206_v36, %v2205_v3  ;;  %v2208_v24 = vsel %vm147_vm0, %v9806_v25, 0.0  ;;  %v2218_v53 = vsel %vm147_vm0, %v9807_v6, 0.0  ;;  %v9815_v36 = vld [vmem:[#allocation179_spill] sm:$0xff] }
 0x21d   :  { %v2219_v42 = vsel %vm147_vm0, %v9808_v49, 0.0  ;;  %v2231_v35 = vsel %vm147_vm0, %v9809_v50, 0.0  ;;  %v2232_v33 = vsel %vm147_vm0, %v9810_v57, 0.0  ;;  %v2244_v14 = vsel %vm147_vm0, %v9811_v62, 0.0  ;;  %v9818_v57 = vld [vmem:[#allocation96_spill] sm:$0xff] }
 0x21e   :  { %v2245_v60 = vsel %vm147_vm0, %v9812_v30, 0.0  ;;  %v7187_v59 = vadd.f32 %v2186_v43, %v2185_v27  ;;  %v7189_v21 = vadd.f32 %v2197_v12, %v2196_v19  ;;  %v2257_v54 = vsel %vm147_vm0, %v6705_v41, 0.0  ;;  %v9814_v27 = vld [vmem:[#allocation175_spill] sm:$0xff]  ;;  %v9816_v19 = vld [vmem:[#allocation88_spill] sm:$0xff] }
 0x21f   :  { %v2258_v4 = vsel %vm147_vm0, %v6715_v32, 0.0  ;;  %v2210_v7 = vsel %vm147_vm0, %v9813_v16, 0.0  ;;  %v2220_v29 = vadd.f32 %v2219_v42, %v2218_v53  ;;  %v2270_v31 = vsel %vm147_vm0, %v6731_v44, 0.0  ;;  %v9817_v42 = vld [vmem:[#allocation176_spill] sm:$0xff] }
 0x220   :  { %v2271_v23 = vsel %vm147_vm0, %v6735_v26, 0.0  ;;  %v2221_v3 = vsel %vm147_vm0, %v9814_v27, 0.0  ;;  %v2233_v51 = vadd.f32 %v2232_v33, %v2231_v35  ;;  %v2234_v41 = vsel %vm147_vm0, %v9815_v36, 0.0  ;;  %v9819_v62 = vld [vmem:[#allocation180_spill] sm:$0xff]  ;;  %v9824_v27 = vld [vmem:[#allocation101_spill] sm:$0xff]  ;;  %v9825_v36 = vld [vmem:[#allocation95_spill] sm:$0xff] }
 0x221   :  { %v2246_v43 = vadd.f32 %v2245_v60, %v2244_v14  ;;  %v2247_v32 = vsel %vm147_vm0, %v9816_v19, 0.0  ;;  %v2259_v28 = vadd.f32 %v2258_v4, %v2257_v54  ;;  %v2283_v12 = vsel %vm147_vm0, %v6749_v46, 0.0  ;;  %v9821_v14 = vld [vmem:[#allocation91_spill] sm:$0xff]  ;;  %v9822_v54 = vld [vmem:[#allocation92_spill] sm:$0xff] }
 0x222   :  { %v2284_v44 = vsel %vm147_vm0, %v6755_v20, 0.0  ;;  %v2209_v25 = vadd.f32 %v2208_v24, %v2207_v11  ;;  %v2260_v26 = vsel %vm147_vm0, %v6719_v55, 0.0  ;;  %v2272_v6 = vadd.f32 %v2271_v23, %v2270_v31  ;;  %v9820_v24 = vld [vmem:[#allocation29_spill] sm:$0xff]  ;;  %v9823_v16 = vld [vmem:[#allocation100_spill] sm:$0xff] }
 0x223   :  { %v2285_v53 = vadd.f32 %v2284_v44, %v2283_v12  ;;  %v2222_v49 = vadd.f32 %v2221_v3, %v2220_v29  ;;  %v2223_v50 = vsel %vm147_vm0, %v9817_v42, 0.0  ;;  %v2273_v35 = vsel %vm147_vm0, %v6739_v17, 0.0  ;;  %v9828_v42 = vld [vmem:[#allocation89_spill] sm:$0xff] }
 0x224   :  { %v2286_v33 = vsel %vm147_vm0, %v9818_v57, 0.0  ;;  %v2235_v46 = vadd.f32 %v2234_v41, %v2233_v51  ;;  %v2236_v20 = vsel %vm147_vm0, %v9819_v62, 0.0  ;;  %v2248_v11 = vadd.f32 %v2247_v32, %v2246_v43  ;;  %v9826_v43 = vld [vmem:[#allocation21_spill] sm:$0xff]  ;;  %v9827_v32 = vld [vmem:[#allocation106_spill] sm:$0xff] }
 0x225   :  { %v2296_v55 = vsel %vm147_vm0, %v9820_v24, 0.0  ;;  %v2249_v30 = vsel %vm147_vm0, %v9821_v14, 0.0  ;;  %v2261_v60 = vadd.f32 %v2260_v26, %v2259_v28  ;;  %v2262_v4 = vsel %vm147_vm0, %v9822_v54, 0.0 }
 0x226   :  { %v2297_v17 = vsel %vm147_vm0, %v9823_v16, 0.0  ;;  %v2274_v29 = vadd.f32 %v2273_v35, %v2272_v6  ;;  %v2287_v31 = vadd.f32 %v2286_v33, %v2285_v53  ;;  %v2299_v3 = vsel %vm147_vm0, %v9824_v27, 0.0  ;;  %v9829_v33 = vld [vmem:[#allocation93_spill] sm:$0xff]  ;;  %v9834_v27 = vld [vmem:[#allocation107_spill] sm:$0xff] }
 0x227   :  { %v2298_v23 = vadd.f32 %v2297_v17, %v2296_v55  ;;  %v2211_v51 = vadd.f32 %v2210_v7, %v2209_v25  ;;  %v2275_v41 = vsel %vm147_vm0, %v9825_v36, 0.0  ;;  %v2288_v19 = vsel %vm147_vm0, %v9826_v43, 0.0  ;;  %v9830_v55 = vld [vmem:[#allocation105_spill] sm:$0xff] }
 0x228   :  { %v2309_v28 = vsel %vm147_vm0, %v9827_v32, 0.0  ;;  %v2224_v12 = vadd.f32 %v2223_v50, %v2222_v49  ;;  %v2237_v44 = vadd.f32 %v2236_v20, %v2235_v46  ;;  %v2250_v26 = vadd.f32 %v2249_v30, %v2248_v11  ;;  %v9831_v50 = vld [vmem:[#allocation98_spill] sm:$0xff]  ;;  %v9832_v20 = vld [vmem:[#allocation103_spill] sm:$0xff] }
 0x229   :  { %v2310_v6 = vsel %vm147_vm0, %v9828_v42, 0.0  ;;  %v2263_v53 = vadd.f32 %v2262_v4, %v2261_v60  ;;  %v2300_v35 = vadd.f32 %v2299_v3, %v2298_v23  ;;  %v2312_v7 = vsel %vm147_vm0, %v9829_v33, 0.0  ;;  %v9833_v4 = vld [vmem:[#allocation13_spill] sm:$0xff] }
 0x22a   :  { %v2311_v57 = vadd.f32 %v2310_v6, %v2309_v28  ;;  %v2199_v25 = vrot.slane %v7189_v21, 4  ;;  %v2276_v62 = vadd.f32 %v2275_v41, %v2274_v29  ;;  %v2289_v24 = vadd.f32 %v2288_v19, %v2287_v31  ;;  %v9835_v19 = vld [vmem:[#allocation22_spill] sm:$0xff]  ;;  %v9836_v42 = vld [vmem:[#allocation33_spill] sm:$0xff] }
 0x22b   :  { %v2301_v14 = vsel %vm147_vm0, %v9830_v55, 0.0  ;;  %v2212_v54 = vrot.slane %v2211_v51, 4  ;;  %v2322_v46 = vsel %vm147_vm0, %v9831_v50, 0.0  ;;  %v2323_v11 = vsel %vm147_vm0, %v9832_v20, 0.0 }
 0x22c   :  { %v2313_v49 = vadd.f32 %v2312_v7, %v2311_v57  ;;  %v2225_v30 = vrot.slane %v2224_v12, 4  ;;  %v2238_v60 = vrot.slane %v2237_v44, 4  ;;  %v2314_v16 = vsel %vm147_vm0, %v9833_v4, 0.0  ;;  %v9837_v57 = vld [vmem:[#allocation90_spill] sm:$0xff] }
 0x22d   :  { %v2324_v17 = vadd.f32 %v2323_v11, %v2322_v46  ;;  %v2251_v23 = vrot.slane %v2250_v26, 4  ;;  %v2264_v29 = vrot.slane %v2263_v53, 4  ;;  %v2302_v31 = vadd.f32 %v2301_v14, %v2300_v35  ;;  %v9838_v7 = vld [vmem:[#allocation94_spill] sm:$0xff] }
 0x22e   :  { %v2325_v3 = vsel %vm147_vm0, %v9834_v27, 0.0  ;;  %v2277_v36 = vrot.slane %v2276_v62, 4  ;;  %v2290_v41 = vrot.slane %v2289_v24, 4  ;;  %v2335_v32 = vsel %vm147_vm0, %v9835_v19, 0.0 }
 0x22f   :  { %v2326_v43 = vadd.f32 %v2325_v3, %v2324_v17  ;;  %v2315_v28 = vadd.f32 %v2314_v16, %v2313_v49  ;;  %v2327_v6 = vsel %vm147_vm0, %v9836_v42, 0.0  ;;  %v2336_v33 = vsel %vm147_vm0, %v9837_v57, 0.0  ;;  %v9839_v3 = vld [vmem:[#allocation20_spill] sm:$0xff] }
 0x230   :  { %v2338_v55 = vsel %vm147_vm0, %v9838_v7, 0.0  ;;  %v2200_v35 = vadd.f32 %v2199_v25, %v7189_v21  ;;  %v2213_v14 = vadd.f32 %v2212_v54, %v2211_v51  ;;  %v2226_v50 = vadd.f32 %v2225_v30, %v2224_v12 }
 0x231   :  { %v2337_v46 = vadd.f32 %v2336_v33, %v2335_v32  ;;  %v2239_v20 = vadd.f32 %v2238_v60, %v2237_v44  ;;  %v2252_v11 = vadd.f32 %v2251_v23, %v2250_v26  ;;  %v2265_v4 = vadd.f32 %v2264_v29, %v2263_v53 }
 0x232   :  { %v2303_v17 = vrot.slane %v2302_v31, 4  ;;  %v2278_v27 = vadd.f32 %v2277_v36, %v2276_v62  ;;  %v2328_v49 = vadd.f32 %v2327_v6, %v2326_v43  ;;  %v2340_v19 = vsel %vm147_vm0, %v9839_v3, 0.0 }
 0x233   :  { %v2339_v16 = vadd.f32 %v2338_v55, %v2337_v46  ;;  %v2175_v42 = vrot.slane %v7169_v34, 2  ;;  %v2188_v57 = vrot.slane %v7187_v59, 2  ;;  %v2291_v7 = vadd.f32 %v2290_v41, %v2289_v24 }
 0x234   :  { %v2316_v48 = vrot.slane %v2315_v28, 4  ;;  %v7268_v21 = vadd.f32 %v2086_v9, %v7141_v15  ;;  %v2201_v51 = vrot.slane %v2200_v35, 2  ;;  %v2214_v12 = vrot.slane %v2213_v14, 2 }
 0x235   :  { %v2227_v44 = vrot.slane %v2226_v50, 2  ;;  %v2240_v26 = vrot.slane %v2239_v20, 2  ;;  %v2253_v53 = vrot.slane %v2252_v11, 2  ;;  %v2304_v25 = vadd.f32 %v2303_v17, %v2302_v31 }
 0x236   :  { %v2341_v62 = vadd.f32 %v2340_v19, %v2339_v16  ;;  %v9840_v54 = vrot.slane %v7143_v1, 2  ;;  %v2266_v60 = vrot.slane %v2265_v4, 2  ;;  %v2279_v23 = vrot.slane %v2278_v27, 2 }
 0x237   :  { %v2329_v24 = vrot.slane %v2328_v49, 4  ;;  %v2176_v29 = vadd.f32 %v2175_v42, %v7169_v34  ;;  %v2189_v36 = vadd.f32 %v2188_v57, %v7187_v59  ;;  %v2292_v15 = vrot.slane %v2291_v7, 2 }
 0x238   :  { %v2163_v30 = vadd.f32 %v9840_v54, %v7143_v1  ;;  %v2317_v9 = vadd.f32 %v2316_v48, %v2315_v28  ;;  %v2151_v41 = vrot.slane %v7166_v5, 1  ;;  %v2202_v43 = vadd.f32 %v2201_v51, %v2200_v35 }
 0x239   :  { %v2215_v32 = vadd.f32 %v2214_v12, %v2213_v14  ;;  %v2228_v6 = vadd.f32 %v2227_v44, %v2226_v50  ;;  %v2241_v31 = vadd.f32 %v2240_v26, %v2239_v20  ;;  %v2254_v33 = vadd.f32 %v2253_v53, %v2252_v11 }
 0x23a   :  { %v2305_v55 = vrot.slane %v2304_v25, 2  ;;  %v2342_v46 = vrot.slane %v2341_v62, 4  ;;  %v2164_v17 = vrot.slane %v2163_v30, 1  ;;  %v2267_v1 = vadd.f32 %v2266_v60, %v2265_v4 }
 0x23b   :  { %v2280_v16 = vadd.f32 %v2279_v23, %v2278_v27  ;;  %v2330_v3 = vadd.f32 %v2329_v24, %v2328_v49  ;;  %v2177_v19 = vrot.slane %v2176_v29, 1  ;;  %v2190_v54 = vrot.slane %v2189_v36, 1 }
 0x23c   :  { %v2293_v34 = vadd.f32 %v2292_v15, %v2291_v7  ;;  %v2318_v42 = vrot.slane %v2317_v9, 2  ;;  %v7277_v59 = vadd.f32 %v2151_v41, %v7166_v5  ;;  %v2203_v48 = vrot.slane %v2202_v43, 1 }
 0x23d   :  { %v2216_v28 = vrot.slane %v2215_v32, 1  ;;  %v2229_v35 = vrot.slane %v2228_v6, 1  ;;  %v2242_v14 = vrot.slane %v2241_v31, 1  ;;  %v2255_v50 = vrot.slane %v2254_v33, 1 }
 0x23e   :  { %v2306_v20 = vadd.f32 %v2305_v55, %v2304_v25  ;;  %v2343_v11 = vadd.f32 %v2342_v46, %v2341_v62  ;;  %v7279_v57 = vadd.f32 %v2164_v17, %v2163_v30  ;;  %v2268_v51 = vrot.slane %v2267_v1, 1  ;;  %v9844_v46 = vld [vmem:[#allocation26_spill] sm:$0xff] }
 0x23f   :  { %v2281_v4 = vrot.slane %v2280_v16, 1  ;;  %v2331_v27 = vrot.slane %v2330_v3, 2  ;;  %v7281_v49 = vadd.f32 %v2177_v19, %v2176_v29  ;;  %v7283_v12 = vadd.f32 %v2190_v54, %v2189_v36 }
 0x240   :  { %v2294_v7 = vrot.slane %v2293_v34, 1  ;;  %v2319_v44 = vadd.f32 %v2318_v42, %v2317_v9  ;;  %v7285_v5 = vadd.f32 %v2203_v48, %v2202_v43  ;;  %v7287_v26 = vadd.f32 %v2216_v28, %v2215_v32  ;;  %v9841_v43 = vld [vmem:[#allocation97_spill] sm:$0xff]  ;;  %v9848_v28 = vld [vmem:[#allocation30_spill] sm:$0xff] }
 0x241   :  { %v7289_v53 = vadd.f32 %v2229_v35, %v2228_v6  ;;  %v7294_v25 = vstv %s8498_s0  ;;  %v7296_v62 = vadd.f32 %v2242_v14, %v2241_v31  ;;  %v7298_v30 = vadd.f32 %v2255_v50, %v2254_v33  ;;  %v9842_v6 = vld [vmem:[#allocation102_spill] sm:$0xff]  ;;  %v9843_v33 = vld [vmem:[#allocation108_spill] sm:$0xff]  ;;  %v9847_v42 = vld [vmem:[#allocation109_spill] sm:$0xff]  ;;  %s3474_s0 = smov [#allocation4]  }
 0x242   :  { %v2307_v60 = vrot.slane %v2306_v20, 1  ;;  %v2344_v23 = vrot.slane %v2343_v11, 2  ;;  %v7300_v24 = vadd.f32 %v2268_v51, %v2267_v1  ;;  %v7302_v29 = vadd.f32 %v2281_v4, %v2280_v16  ;;  %v9845_v1 = vld [vmem:[#allocation99_spill] sm:$0xff]  ;;  %v9850_v4 = vld [vmem:[#allocation114_spill] sm:$0xff] }
 0x243   :  { %v2332_v36 = vadd.f32 %v2331_v27, %v2330_v3  ;;  %v7307_v15 = vstv %s8499_s1  ;;  %v7309_v9 = vadd.f32 %v2294_v7, %v2293_v34  ;;  %v2320_v41 = vrot.slane %v2319_v44, 1  ;;  %v9846_v3 = vld [vmem:[#allocation104_spill] sm:$0xff]  ;;  %v9849_v50 = vld [vmem:[#allocation111_spill] sm:$0xff]  ;;  %v9851_v7 = vld [vmem:[#allocation110_spill] sm:$0xff]  ;;  %s3145_s1 = sshll.u32 %s3474_s0, 4  ;;  %s3146_s1 = int_to_ptr.vmem [resolvable:$true] %s3145_s1 }
 0x244   :  { %v7313_v32 = vmul.f32 %v7294_v25, %v9841_v43  ;;  %v7317_v31 = vmul.f32 %v7294_v25, %v9842_v6  ;;  %v7321_v55 = vmul.f32 %v7294_v25, %v9843_v33  ;;  %v7325_v17 = vmul.f32 %v7294_v25, %v9844_v46  ;;  %s3450_s28 = scalar_lea.vmem %s3146_s1, 16  ;;  %s3454_s29 = scalar_lea.vmem %s3146_s1, 32 }
 0x245   :  { %v7329_v16 = vmul.f32 %v7294_v25, %v9845_v1  ;;  %v7333_v19 = vmul.f32 %v7294_v25, %v9846_v3  ;;  %v2308_v54 = vadd.f32 %v2307_v60, %v2306_v20  ;;  %v2345_v34 = vadd.f32 %v2344_v23, %v2343_v11  ;;  %v9852_v60 = vld [vmem:[#allocation115_spill] sm:$0xff]  ;;  %v9853_v1 = vld [vmem:[#allocation118_spill] sm:$0xff]  ;;  %v9854_v3 = vld [vmem:[#allocation112_spill] sm:$0xff]  ;;  %p3451_p0 = scmp.ne.s32.totalorder %s3146_s1, %s3450_s28  ;;  %p3455_p1 = scmp.lt.s32.totalorder %s3146_s1, %s3146_s1 }
 0x246   :  { %v7337_v48 = vmul.f32 %v7294_v25, %v9847_v42  ;;  %v7341_v35 = vmul.f32 %v7294_v25, %v9848_v28  ;;  %v2333_v14 = vrot.slane %v2332_v36, 1  ;;  %v7345_v51 = vmul.f32 %v7294_v25, %v9849_v50  ;;  %p3456_p2 = scmp.lt.s32.totalorder %s3454_s29, %s3450_s28 }
 0x247   :  { %v7349_v27 = vmul.f32 %v7294_v25, %v9850_v4  ;;  %v7353_v20 = vmul.f32 %v7294_v25, %v9851_v7  ;;  %v2321_v11 = vadd.f32 %v2320_v41, %v2319_v44  ;;  %v7357_v23 = vmul.f32 %v7294_v25, %v9852_v60  ;;  %v9857_v4 = vld [vmem:[#allocation120_spill] sm:$0xff]  ;;  %v9858_v7 = vld [vmem:[#allocation119_spill] sm:$0xff] }
 0x248   :  { %v7361_v43 = vmul.f32 %v7294_v25, %v6987_v52  ;;  %v7365_v6 = vmul.f32 %v7294_v25, %v6991_v45  ;;  %v7369_v33 = vmul.f32 %v7294_v25, %v6993_v61  ;;  %v7373_v46 = vmul.f32 %v7294_v25, %v6999_v13  ;;  %p3457_p3 = por %p3456_p2, %p3455_p1 }
 0x249   :  { %v7377_v44 = vmul.f32 %v7294_v25, %v7001_v40  ;;  %v7381_v52 = vmul.f32 %v7294_v25, %v7003_v37  ;;  %v2346_v41 = vrot.slane %v2345_v34, 1  ;;  %v7385_v45 = vmul.f32 %v7294_v25, %v7005_v39  ;;  %v9855_v40 = vld [vmem:[#allocation113_spill] sm:$0xff]  ;;  %v9856_v37 = vld [vmem:[#allocation116_spill] sm:$0xff] }
 0x24a   :  { %v7389_v61 = vmul.f32 %v7294_v25, %v9853_v1  ;;  %v7393_v13 = vmul.f32 %v7294_v25, %v9854_v3  ;;  %v2334_v42 = vadd.f32 %v2333_v14, %v2332_v36  ;;  %v7397_v28 = vmul.f32 %v7294_v25, %v9855_v40  ;;  %v9859_v1 = vld [vmem:[#allocation117_spill] sm:$0xff]  ;;  %v9862_v40 = vld [vmem:[#allocation74_spill] sm:$0xff]  ;;  %p3458_p4 = pnand %p3457_p3, %p3451_p0 }
 0x24b   :  { %v7401_v50 = vmul.f32 %v7294_v25, %v9856_v37  ;;  %v7405_v39 = vmul.f32 %v7294_v25, %v9857_v4  ;;  %v7409_v60 = vmul.f32 %v7294_v25, %v9858_v7  ;;  %v7413_v3 = vmul.f32 %v7294_v25, %v9859_v1  ;;  %v9860_v36 = vld [vmem:[#allocation73_spill] sm:$0xff] }
 0x24c   :  { %v7417_v14 = vmul.f32 %v7294_v25, %v9860_v36  ;;  %v7421_v37 = vmul.f32 %v7294_v25, %v9862_v40  ;;  %v7425_v4 = vmul.f32 %v7294_v25, %v7102_v38  ;;  %v7429_v7 = vmul.f32 %v7294_v25, %v7107_v22 }
 0x24d   :  { %v7433_v1 = vmul.f32 %v7294_v25, %v7137_v63  ;;  %v7437_v36 = vmul.f32 %v7294_v25, %v7139_v10  ;;  %v7441_v40 = vmul.f32 %v7294_v25, %v7147_v18  ;;  %v7445_v38 = vmul.f32 %v7294_v25, %v7149_v56 }
 0x24e   :  { %9861 = vst [vmem:[#allocation121_spill] sm:$0xff] %v7417_v14  ;;  %v2347_v14 = vadd.f32 %v2346_v41, %v2345_v34  ;;  %v7449_v22 = vmul.f32 %v7294_v25, %v7151_v2  ;;  %v7453_v63 = vmul.f32 %v7294_v25, %v7153_v8  ;;  %v7457_v10 = vmul.f32 %v7294_v25, %v7155_v47  ;;  %v9865_v34 = vld [vmem:[#allocation27_spill] sm:$0xff]  ;;  %v9866_v41 = vld [vmem:[#allocation124_spill] sm:$0xff] }
 0x24f   :  { %v7461_v18 = vmul.f32 %v7294_v25, %v7157_v58  ;;  %v7465_v56 = vmul.f32 %v7294_v25, %v7163_v0  ;;  %v7469_v2 = vmul.f32 %v7294_v25, %v7268_v21  ;;  %v7473_v8 = vmul.f32 %v7294_v25, %v9865_v34 }
 0x250   :  { %9863 = vst [vmem:[#allocation75_spill] sm:$0xff] %v7457_v10  ;;  %v7477_v47 = vmul.f32 %v7294_v25, %v9866_v41  ;;  %v9867_v10 = vld [vmem:[#allocation128_spill] sm:$0xff]  ;;  %v7489_v21 = vmul.f32 %v7294_v25, %v7277_v59  ;;  %v7493_v34 = vmul.f32 %v7294_v25, %v7279_v57  ;;  %v7497_v41 = vmul.f32 %v7294_v25, %v7281_v49 }
 0x251   :  { %9864 = vst [vmem:[#allocation76_spill] sm:$0xff] %v7461_v18  ;;  %v7481_v58 = vmul.f32 %v7294_v25, %v9867_v10  ;;  %v9868_v18 = vld [vmem:[#allocation66_spill] sm:$0xff]  ;;  %v7501_v10 = vmul.f32 %v7294_v25, %v7283_v12  ;;  %v7509_v59 = vmul.f32 %v7294_v25, %v7287_v26  ;;  %v7513_v57 = vmul.f32 %v7294_v25, %v7289_v53 }
 0x252   :  { %v7485_v0 = vmul.f32 %v7294_v25, %v9868_v18  ;;  %v7505_v18 = vmul.f32 %v7294_v25, %v7285_v5  ;;  %v7517_v49 = vmul.f32 %v7294_v25, %v7296_v62  ;;  %v7521_v12 = vmul.f32 %v7294_v25, %v7298_v30 }
 0x253   :  { %9869 = vst [vmem:[#allocation23_spill] sm:$0xff] %v7513_v57  ;;  %v7525_v5 = vmul.f32 %v7294_v25, %v7300_v24  ;;  %v7529_v26 = vmul.f32 %v7294_v25, %v7302_v29  ;;  %v7533_v53 = vmul.f32 %v7294_v25, %v7309_v9  ;;  %v7536_v57 = vmul.f32 %v7294_v25, %v2308_v54 }
 0x254   :  { %v7539_v62 = vmul.f32 %v7294_v25, %v2321_v11  ;;  %v7542_v30 = vmul.f32 %v7294_v25, %v2334_v42  ;;  %v7545_v24 = vmul.f32 %v7294_v25, %v2347_v14  ;;  %v9877_v11 = vld [vmem:[#allocation84_spill] sm:$0xff]  ;;  %v7565_v42 = vadd.f32 %v7307_v15, %v7313_v32 }
 0x255   :  { %9870 = vst [vmem:[#allocation31_spill] sm:$0xff] %v7525_v5  ;;  %9871 = vst [vmem:[#allocation77_spill] sm:$0xff] %v7529_v26  ;;  %v9874_v5 = vld [vmem:[#allocation150_spill] sm:$0xff]  ;;  %v7569_v14 = vadd.f32 %v7307_v15, %v7317_v31  ;;  %v7585_v32 = vadd.f32 %v7307_v15, %v7333_v19  ;;  %v7589_v31 = vadd.f32 %v7307_v15, %v7337_v48 }
 0x256   :  { %9872 = vst [vmem:[#allocation78_spill] sm:$0xff] %v7533_v53  ;;  %9873 = vst [vmem:[#allocation34_spill] sm:$0xff] %v7539_v62  ;;  %v7549_v29 = vmul.f32 %v7294_v25, %v9874_v5  ;;  %v9875_v26 = vld [vmem:[#allocation154_spill] sm:$0xff]  ;;  %v7561_v62 = vmul.f32 %v7294_v25, %v9877_v11  ;;  %v7573_v5 = vadd.f32 %v7307_v15, %v7321_v55 }
 0x257   :  { %v7553_v9 = vmul.f32 %v7294_v25, %v9875_v26  ;;  %v9876_v53 = vld [vmem:[#allocation158_spill] sm:$0xff]  ;;  %9878 = vst [vmem:[#allocation79_spill] sm:$0xff] %v7565_v42  ;;  %9879 = vst [vmem:[#allocation80_spill] sm:$0xff] %v7569_v14  ;;  %v7577_v26 = vadd.f32 %v7307_v15, %v7325_v17  ;;  %v7593_v55 = vadd.f32 %v7307_v15, %v7341_v35 }
 0x258   :  { %v7557_v54 = vmul.f32 %v7294_v25, %v9876_v53  ;;  %9880 = vst [vmem:[#allocation122_spill] sm:$0xff] %v7573_v5  ;;  %v7581_v25 = vadd.f32 %v7307_v15, %v7329_v16  ;;  %9882 = vst [vmem:[#allocation125_spill] sm:$0xff] %v7585_v32  ;;  %v7597_v17 = vadd.f32 %v7307_v15, %v7345_v51  ;;  %v9893_v53 = vld [vmem:[#allocation121_spill] sm:$0xff] }
 0x259   :  { %9881 = vst [vmem:[#allocation81_spill] sm:$0xff] %v7577_v26  ;;  %9883 = vst [vmem:[#allocation126_spill] sm:$0xff] %v7589_v31  ;;  %v7601_v16 = vadd.f32 %v7307_v15, %v7349_v27  ;;  %v7605_v19 = vadd.f32 %v7307_v15, %v7353_v20  ;;  %v7609_v48 = vadd.f32 %v7307_v15, %v7357_v23 }
 0x25a   :  { %v7613_v35 = vadd.f32 %v7307_v15, %v7361_v43  ;;  %v7617_v51 = vadd.f32 %v7307_v15, %v7365_v6  ;;  %v7621_v27 = vadd.f32 %v7307_v15, %v7369_v33  ;;  %v7625_v20 = vadd.f32 %v7307_v15, %v7373_v46 }
 0x25b   :  { %v7629_v23 = vadd.f32 %v7307_v15, %v7377_v44  ;;  %v7633_v43 = vadd.f32 %v7307_v15, %v7381_v52  ;;  %v7637_v6 = vadd.f32 %v7307_v15, %v7385_v45  ;;  %v7641_v33 = vadd.f32 %v7307_v15, %v7389_v61 }
 0x25c   :  { %9884 = vst [vmem:[#allocation82_spill] sm:$0xff] %v7625_v20  ;;  %v7645_v46 = vadd.f32 %v7307_v15, %v7393_v13  ;;  %v7649_v44 = vadd.f32 %v7307_v15, %v7397_v28  ;;  %v7653_v52 = vadd.f32 %v7307_v15, %v7401_v50  ;;  %v7657_v45 = vadd.f32 %v7307_v15, %v7405_v39 }
 0x25d   :  { %9885 = vst [vmem:[#allocation123_spill] sm:$0xff] %v7629_v23  ;;  %9886 = vst [vmem:[#allocation127_spill] sm:$0xff] %v7633_v43  ;;  %v7661_v61 = vadd.f32 %v7307_v15, %v7409_v60  ;;  %v7665_v13 = vadd.f32 %v7307_v15, %v7413_v3  ;;  %v7669_v28 = vadd.f32 %v7307_v15, %v9893_v53  ;;  %v9899_v53 = vld [vmem:[#allocation75_spill] sm:$0xff]  ;;  %v2595_v20 = vsel %vm147_vm0, %v7629_v23, -inf }
 0x25e   :  { %9887 = vst [vmem:[#allocation130_spill] sm:$0xff] %v7637_v6  ;;  %9888 = vst [vmem:[#allocation131_spill] sm:$0xff] %v7641_v33  ;;  %v7673_v50 = vadd.f32 %v7307_v15, %v7421_v37  ;;  %v7677_v39 = vadd.f32 %v7307_v15, %v7425_v4  ;;  %v7681_v60 = vadd.f32 %v7307_v15, %v7429_v7  ;;  %v2609_v23 = vsel %vm147_vm0, %v7637_v6, -inf }
 0x25f   :  { %9889 = vst [vmem:[#allocation129_spill] sm:$0xff] %v7645_v46  ;;  %9890 = vst [vmem:[#allocation132_spill] sm:$0xff] %v7649_v44  ;;  %v7685_v3 = vadd.f32 %v7307_v15, %v7433_v1  ;;  %v7689_v11 = vadd.f32 %v7307_v15, %v7437_v36  ;;  %v7693_v37 = vadd.f32 %v7307_v15, %v7441_v40 }
 0x260   :  { %9891 = vst [vmem:[#allocation133_spill] sm:$0xff] %v7653_v52  ;;  %9892 = vst [vmem:[#allocation151_spill] sm:$0xff] %v7657_v45  ;;  %v7697_v4 = vadd.f32 %v7307_v15, %v7445_v38  ;;  %v7701_v7 = vadd.f32 %v7307_v15, %v7449_v22  ;;  %v7705_v1 = vadd.f32 %v7307_v15, %v7453_v63 }
 0x261   :  { %9894 = vst [vmem:[#allocation155_spill] sm:$0xff] %v7689_v11  ;;  %9895 = vst [vmem:[#allocation156_spill] sm:$0xff] %v7693_v37  ;;  %v7709_v36 = vadd.f32 %v7307_v15, %v9899_v53  ;;  %v9900_v11 = vld [vmem:[#allocation76_spill] sm:$0xff]  ;;  %v7717_v38 = vadd.f32 %v7307_v15, %v7465_v56  ;;  %v7721_v22 = vadd.f32 %v7307_v15, %v7469_v2 }
 0x262   :  { %9896 = vst [vmem:[#allocation160_spill] sm:$0xff] %v7697_v4  ;;  %9897 = vst [vmem:[#allocation83_spill] sm:$0xff] %v7701_v7  ;;  %v7713_v40 = vadd.f32 %v7307_v15, %v9900_v11  ;;  %v7725_v63 = vadd.f32 %v7307_v15, %v7473_v8  ;;  %v7729_v53 = vadd.f32 %v7307_v15, %v7477_v47  ;;  %v2604_v6 = vsel %vm147_vm0, %v7697_v4, -inf }
 0x263   :  { %9898 = vst [vmem:[#allocation67_spill] sm:$0xff] %v7705_v1  ;;  %9901 = vst [vmem:[#allocation41_spill] sm:$0xff] %v7721_v22  ;;  %v7733_v11 = vadd.f32 %v7307_v15, %v7481_v58  ;;  %v7737_v56 = vadd.f32 %v7307_v15, %v7485_v0  ;;  %v7741_v2 = vadd.f32 %v7307_v15, %v7489_v21  ;;  %v2637_v4 = vsel %vm147_vm0, %v7653_v52, -inf }
 0x264   :  { %9902 = vst [vmem:[#allocation134_spill] sm:$0xff] %v7725_v63  ;;  %9903 = vst [vmem:[#allocation152_spill] sm:$0xff] %v7729_v53  ;;  %v7745_v8 = vadd.f32 %v7307_v15, %v7493_v34  ;;  %v7749_v47 = vadd.f32 %v7307_v15, %v7497_v41  ;;  %v7753_v58 = vadd.f32 %v7307_v15, %v7501_v10  ;;  %v2632_v52 = vsel %vm147_vm0, %v7713_v40, -inf }
 0x265   :  { %9904 = vst [vmem:[#allocation157_spill] sm:$0xff] %v7733_v11  ;;  %9905 = vst [vmem:[#allocation85_spill] sm:$0xff] %v7737_v56  ;;  %v7757_v0 = vadd.f32 %v7307_v15, %v7505_v18  ;;  %v7761_v21 = vadd.f32 %v7307_v15, %v7509_v59  ;;  %v7769_v41 = vadd.f32 %v7307_v15, %v7517_v49 }
 0x266   :  { %9906 = vst [vmem:[#allocation45_spill] sm:$0xff] %v7741_v2  ;;  %9907 = vst [vmem:[#allocation49_spill] sm:$0xff] %v7745_v8  ;;  %v9912_v2 = vld [vmem:[#allocation23_spill] sm:$0xff]  ;;  %v7773_v10 = vadd.f32 %v7307_v15, %v7521_v12  ;;  %v9920_v8 = vld [vmem:[#allocation78_spill] sm:$0xff]  ;;  %v7789_v49 = vadd.f32 %v7307_v15, %v7536_v57  ;;  %v2594_v12 = vsel %vm147_vm0, %v7565_v42, -inf  ;;  %v2602_v57 = vsel %vm147_vm0, %v7633_v43, -inf }
 0x267   :  { %9908 = vst [vmem:[#allocation136_spill] sm:$0xff] %v7749_v47  ;;  %9909 = vst [vmem:[#allocation42_spill] sm:$0xff] %v7753_v58  ;;  %v7765_v34 = vadd.f32 %v7307_v15, %v9912_v2  ;;  %v9916_v58 = vld [vmem:[#allocation31_spill] sm:$0xff]  ;;  %v9918_v47 = vld [vmem:[#allocation77_spill] sm:$0xff]  ;;  %v7785_v2 = vadd.f32 %v7307_v15, %v9920_v8  ;;  %v2601_v8 = vsel %vm147_vm0, %v7569_v14, -inf  ;;  %v2608_v42 = vsel %vm147_vm0, %v7573_v5, -inf }
 0x268   :  { %9910 = vst [vmem:[#allocation46_spill] sm:$0xff] %v7757_v0  ;;  %9911 = vst [vmem:[#allocation153_spill] sm:$0xff] %v7761_v21  ;;  %v7777_v18 = vadd.f32 %v7307_v15, %v9916_v58  ;;  %v7781_v59 = vadd.f32 %v7307_v15, %v9918_v47  ;;  %v9923_v58 = vld [vmem:[#allocation34_spill] sm:$0xff]  ;;  %v7801_v47 = vadd.f32 %v7307_v15, %v7542_v30  ;;  %v2597_v5 = vsel %vm147_vm0, %v7693_v37, -inf }
 0x269   :  { %9913 = vst [vmem:[#allocation159_spill] sm:$0xff] %v7765_v34  ;;  %9914 = vst [vmem:[#allocation69_spill] sm:$0xff] %v7769_v41  ;;  %v7797_v56 = vadd.f32 %v7307_v15, %v9923_v58  ;;  %v2615_v58 = vsel %vm147_vm0, %v7577_v26, -inf  ;;  %v7817_v30 = vadd.f32 %v7307_v15, %v7545_v24  ;;  %v7821_v14 = vadd.f32 %v7307_v15, %v7549_v29 }
 0x26a   :  { %9915 = vst [vmem:[#allocation86_spill] sm:$0xff] %v7773_v10  ;;  %9917 = vst [vmem:[#allocation70_spill] sm:$0xff] %v7777_v18  ;;  %v2596_v43 = vmax.f32 %v2594_v12, %v2595_v20  ;;  %v2622_v26 = vsel %vm147_vm0, %v7581_v25, -inf  ;;  %v2610_v24 = vmax.f32 %v2608_v42, %v2609_v23  ;;  %v2629_v29 = vsel %vm147_vm0, %v7585_v32, -inf }
 0x26b   :  { %9919 = vst [vmem:[#allocation135_spill] sm:$0xff] %v7781_v59  ;;  %9921 = vst [vmem:[#allocation38_spill] sm:$0xff] %v7785_v2  ;;  %v2630_v20 = vsel %vm147_vm0, %v7649_v44, -inf  ;;  %v2611_v12 = vsel %vm147_vm0, %v7701_v7, -inf  ;;  %v7845_v42 = vadd.f32 %v7307_v15, %v7553_v9  ;;  %v2599_v23 = vsel %vm147_vm0, %v7757_v0, -inf }
 0x26c   :  { %9922 = vst [vmem:[#allocation64_spill] sm:$0xff] %v7789_v49  ;;  %9924 = vst [vmem:[#allocation53_spill] sm:$0xff] %v7797_v56  ;;  %v2616_v56 = vsel %vm147_vm0, %v7641_v33, -inf  ;;  %v2623_v33 = vsel %vm147_vm0, %v7645_v46, -inf  ;;  %v2598_v7 = vmax.f32 %v2596_v43, %v2597_v5  ;;  %v2631_v44 = vmax.f32 %v2629_v29, %v2630_v20 }
 0x26d   :  { %9925 = vst [vmem:[#allocation71_spill] sm:$0xff] %v7801_v47  ;;  %9926 = vst [vmem:[#allocation16_spill] sm:$0xff] %v7817_v30  ;;  %v2603_v47 = vmax.f32 %v2601_v8, %v2602_v57  ;;  %v2617_v30 = vmax.f32 %v2615_v58, %v2616_v56  ;;  %v2618_v8 = vsel %vm147_vm0, %v7705_v1, -inf  ;;  %v2636_v57 = vsel %vm147_vm0, %v7589_v31, -inf  ;;  %v9941_v0 = vld [vmem:[#allocation45_spill] sm:$0xff] }
 0x26e   :  { %9927 = vst [vmem:[#allocation54_spill] sm:$0xff] %v7821_v14  ;;  %9928 = vst [vmem:[#allocation137_spill] sm:$0xff] %v7845_v42  ;;  %v2606_v56 = vsel %vm147_vm0, %v7761_v21, -inf  ;;  %v2624_v58 = vmax.f32 %v2622_v26, %v2623_v33  ;;  %v2625_v1 = vsel %vm147_vm0, %v7709_v36, -inf  ;;  %v2612_v46 = vmax.f32 %v2610_v24, %v2611_v12 }
 0x26f   :  { %v2605_v37 = vmax.f32 %v2603_v47, %v2604_v6  ;;  %v2619_v31 = vmax.f32 %v2617_v30, %v2618_v8  ;;  %v2638_v9 = vmax.f32 %v2636_v57, %v2637_v4  ;;  %v7857_v32 = vadd.f32 %v7307_v15, %v7557_v54 }
 0x270   :  { %v2613_v21 = vsel %vm147_vm0, %v7765_v34, -inf  ;;  %v2620_v5 = vsel %vm147_vm0, %v7769_v41, -inf  ;;  %v2639_v26 = vsel %vm147_vm0, %v7717_v38, -inf  ;;  %v7867_v43 = vadd.f32 %v7307_v15, %v7561_v62 }
 0x271   :  { %9929 = vst [vmem:[#allocation68_spill] sm:$0xff] %v7857_v32  ;;  %v2626_v6 = vmax.f32 %v2624_v58, %v2625_v1  ;;  %v2643_v33 = vsel %vm147_vm0, %v7593_v55, -inf  ;;  %v2644_v54 = vsel %vm147_vm0, %v7657_v45, -inf  ;;  %v7873_v4 = vmax.f32 %v2598_v7, %v2599_v23 }
 0x272   :  { %9930 = vst [vmem:[#allocation72_spill] sm:$0xff] %v7867_v43  ;;  %v7875_v47 = vmax.f32 %v2605_v37, %v2606_v56  ;;  %v2627_v30 = vsel %vm147_vm0, %v7773_v10, -inf  ;;  %v2633_v24 = vmax.f32 %v2631_v44, %v2632_v52  ;;  %v7879_v29 = vmax.f32 %v2612_v46, %v2613_v21  ;;  %v9939_v10 = vld [vmem:[#allocation82_spill] sm:$0xff] }
 0x273   :  { %9931 = vst [vmem:[#allocation55_spill] sm:$0xff] %v7873_v4  ;;  %v7881_v20 = vmax.f32 %v2619_v31, %v2620_v5  ;;  %v2634_v15 = vsel %vm147_vm0, %v7777_v18, -inf  ;;  %v2640_v62 = vmax.f32 %v2638_v9, %v2639_v26  ;;  %v2641_v1 = vsel %vm147_vm0, %v7781_v59, -inf }
 0x274   :  { %9932 = vst [vmem:[#allocation56_spill] sm:$0xff] %v7875_v47  ;;  %9933 = vst [vmem:[#allocation57_spill] sm:$0xff] %v7879_v29  ;;  %v2645_v12 = vmax.f32 %v2643_v33, %v2644_v54  ;;  %v2650_v37 = vsel %vm147_vm0, %v7597_v17, -inf  ;;  %v2651_v7 = vsel %vm147_vm0, %v7661_v61, -inf  ;;  %v7891_v8 = vmax.f32 %v2626_v6, %v2627_v30 }
 0x275   :  { %9934 = vst [vmem:[#allocation11_spill] sm:$0xff] %v7881_v20  ;;  %v2646_v31 = vsel %vm147_vm0, %v7721_v22, -inf  ;;  %v2657_v46 = vsel %vm147_vm0, %v7601_v16, -inf  ;;  %v2658_v44 = vsel %vm147_vm0, %v7665_v13, -inf  ;;  %v7899_v52 = vmax.f32 %v2633_v24, %v2634_v15  ;;  %v9948_v22 = vld [vmem:[#allocation16_spill] sm:$0xff] }
 0x276   :  { %9935 = vst [vmem:[#allocation59_spill] sm:$0xff] %v7891_v8  ;;  %v2648_v21 = vsel %vm147_vm0, %v7785_v2, -inf  ;;  %v2653_v57 = vsel %vm147_vm0, %v7725_v63, -inf  ;;  %v2655_v23 = vsel %vm147_vm0, %v7789_v49, -inf  ;;  %v7907_v56 = vmax.f32 %v2640_v62, %v2641_v1  ;;  %v9938_v49 = vld [vmem:[#allocation85_spill] sm:$0xff]  ;;  %v9947_v63 = vld [vmem:[#allocation71_spill] sm:$0xff] }
 0x277   :  { %9936 = vst [vmem:[#allocation61_spill] sm:$0xff] %v7899_v52  ;;  %v2652_v58 = vmax.f32 %v2650_v37, %v2651_v7  ;;  %v2664_v9 = vsel %vm147_vm0, %v7605_v19, -inf  ;;  %v2665_v5 = vsel %vm147_vm0, %v7669_v28, -inf  ;;  %v2647_v26 = vmax.f32 %v2645_v12, %v2646_v31 }
 0x278   :  { %9937 = vst [vmem:[#allocation58_spill] sm:$0xff] %v7907_v56  ;;  %v2659_v6 = vmax.f32 %v2657_v46, %v2658_v44  ;;  %v2671_v33 = vsel %vm147_vm0, %v7609_v48, -inf  ;;  %v2672_v54 = vsel %vm147_vm0, %v7673_v50, -inf  ;;  %v2678_v30 = vsel %vm147_vm0, %v7613_v35, -inf }
 0x279   :  { %v2679_v24 = vsel %vm147_vm0, %v7677_v39, -inf  ;;  %v2685_v15 = vsel %vm147_vm0, %v7617_v51, -inf  ;;  %v2686_v62 = vsel %vm147_vm0, %v7681_v60, -inf  ;;  %v2660_v1 = vsel %vm147_vm0, %v7729_v53, -inf }
 0x27a   :  { %v2666_v12 = vmax.f32 %v2664_v9, %v2665_v5  ;;  %v2692_v37 = vsel %vm147_vm0, %v7621_v27, -inf  ;;  %v2693_v7 = vsel %vm147_vm0, %v7685_v3, -inf  ;;  %v2654_v31 = vmax.f32 %v2652_v58, %v2653_v57  ;;  %v9940_v9 = vld [vmem:[#allocation155_spill] sm:$0xff]  ;;  %v9942_v57 = vld [vmem:[#allocation49_spill] sm:$0xff] }
 0x27b   :  { %v2667_v46 = vsel %vm147_vm0, %v7733_v11, -inf  ;;  %v2673_v44 = vmax.f32 %v2671_v33, %v2672_v54  ;;  %v2674_v2 = vsel %vm147_vm0, %v9938_v49, -inf  ;;  %v2680_v59 = vmax.f32 %v2678_v30, %v2679_v24  ;;  %v9944_v54 = vld [vmem:[#allocation53_spill] sm:$0xff] }
 0x27c   :  { %v2687_v18 = vmax.f32 %v2685_v15, %v2686_v62  ;;  %v2699_v41 = vsel %vm147_vm0, %v9939_v10, -inf  ;;  %v2700_v5 = vsel %vm147_vm0, %v9940_v9, -inf  ;;  %v2661_v34 = vmax.f32 %v2659_v6, %v2660_v1  ;;  %v9945_v15 = vld [vmem:[#allocation136_spill] sm:$0xff] }
 0x27d   :  { %v2681_v53 = vsel %vm147_vm0, %v9941_v0, -inf  ;;  %v2688_v58 = vsel %vm147_vm0, %v9942_v57, -inf  ;;  %v2694_v11 = vmax.f32 %v2692_v37, %v2693_v7  ;;  %v7943_v33 = vmax.f32 %v2647_v26, %v2648_v21  ;;  %v9949_v26 = vld [vmem:[#allocation42_spill] sm:$0xff] }
 0x27e   :  { %v2662_v30 = vsel %vm147_vm0, %v9944_v54, -inf  ;;  %v2668_v24 = vmax.f32 %v2666_v12, %v2667_v46  ;;  %v2695_v62 = vsel %vm147_vm0, %v9945_v15, -inf  ;;  %v7949_v49 = vmax.f32 %v2654_v31, %v2655_v23 }
 0x27f   :  { %9943 = vst [vmem:[#allocation25_spill] sm:$0xff] %v7943_v33  ;;  %v2669_v6 = vsel %vm147_vm0, %v9947_v63, -inf  ;;  %v2675_v1 = vmax.f32 %v2673_v44, %v2674_v2  ;;  %v2701_v0 = vmax.f32 %v2699_v41, %v2700_v5  ;;  %v2676_v57 = vsel %vm147_vm0, %v9948_v22, -inf  ;;  %v9955_v5 = vld [vmem:[#allocation122_spill] sm:$0xff] }
 0x280   :  { %9946 = vst [vmem:[#allocation63_spill] sm:$0xff] %v7949_v49  ;;  %v2682_v37 = vmax.f32 %v2680_v59, %v2681_v53  ;;  %v2689_v21 = vmax.f32 %v2687_v18, %v2688_v58  ;;  %v2702_v7 = vsel %vm147_vm0, %v9949_v26, -inf  ;;  %v7957_v54 = vmax.f32 %v2661_v34, %v2662_v30  ;;  %v9952_v53 = vld [vmem:[#allocation79_spill] sm:$0xff]  ;;  %v9953_v59 = vld [vmem:[#allocation80_spill] sm:$0xff]  ;;  %v9956_v30 = vld [vmem:[#allocation81_spill] sm:$0xff] }
 0x281   :  { %v2683_v12 = vsel %vm147_vm0, %v7821_v14, -inf  ;;  %v2690_v23 = vsel %vm147_vm0, %v7845_v42, -inf  ;;  %v2696_v31 = vmax.f32 %v2694_v11, %v2695_v62  ;;  %v7963_v46 = vmax.f32 %v2668_v24, %v2669_v6 }
 0x282   :  { %9950 = vst [vmem:[#allocation65_spill] sm:$0xff] %v7957_v54  ;;  %v2697_v41 = vsel %vm147_vm0, %v7857_v32, -inf  ;;  %v2706_v18 = vsub.f32 %v9952_v53, %v7873_v4  ;;  %v2707_v2 = vsub.f32 %v9953_v59, %v7875_v47  ;;  %v7971_v34 = vmax.f32 %v2675_v1, %v2676_v57  ;;  %v9961_v1 = vld [vmem:[#allocation126_spill] sm:$0xff] }
 0x283   :  { %9951 = vst [vmem:[#allocation62_spill] sm:$0xff] %v7963_v46  ;;  %v2703_v44 = vmax.f32 %v2701_v0, %v2702_v7  ;;  %v2708_v58 = vsub.f32 %v9955_v5, %v7879_v29  ;;  %v2709_v11 = vsub.f32 %v9956_v30, %v7881_v20  ;;  %v7977_v24 = vmax.f32 %v2682_v37, %v2683_v12  ;;  %v9960_v0 = vld [vmem:[#allocation125_spill] sm:$0xff] }
 0x284   :  { %9954 = vst [vmem:[#allocation14_spill] sm:$0xff] %v7971_v34  ;;  %v7979_v62 = vmax.f32 %v2689_v21, %v2690_v23  ;;  %v2704_v6 = vsel %vm147_vm0, %v7867_v43, -inf  ;;  %v2710_v53 = vsub.f32 %v7581_v25, %v7891_v8  ;;  %v7985_v59 = vmax.f32 %v2696_v31, %v2697_v41 }
 0x285   :  { %9957 = vst [vmem:[#allocation138_spill] sm:$0xff] %v7977_v24  ;;  %v2711_v57 = vsub.f32 %v9960_v0, %v7899_v52  ;;  %v2712_v7 = vsub.f32 %v9961_v1, %v7907_v56  ;;  %v2713_v37 = vsub.f32 %v7593_v55, %v7943_v33  ;;  %v2714_v21 = vsub.f32 %v7597_v17, %v7949_v49 }
 0x286   :  { %9958 = vst [vmem:[#allocation9_spill] sm:$0xff] %v7979_v62  ;;  %9959 = vst [vmem:[#allocation139_spill] sm:$0xff] %v7985_v59  ;;  %v2715_v12 = vsub.f32 %v7601_v16, %v7957_v54  ;;  %v2770_v23 = vmul.f32 1.442695, %v2706_v18  ;;  %v2772_v30 = vmul.f32 1.442695, %v2707_v2  ;;  %v7997_v25 = vmax.f32 %v2703_v44, %v2704_v6 }
 0x287   :  { %v2716_v31 = vsub.f32 %v7605_v19, %v7963_v46  ;;  %v2774_v41 = vmul.f32 1.442695, %v2708_v58  ;;  %v2776_v0 = vmul.f32 1.442695, %v2709_v11  ;;  %v2717_v1 = vsub.f32 %v7609_v48, %v7971_v34  ;;  %v9963_v19 = vld [vmem:[#allocation123_spill] sm:$0xff] }
 0x288   :  { %9962 = vst [vmem:[#allocation12_spill] sm:$0xff] %v7997_v25  ;;  %v2718_v55 = vsub.f32 %v7613_v35, %v7977_v24  ;;  %3226 = vpow2.f32 %v2770_v23  ;;  %v2778_v17 = vmul.f32 1.442695, %v2710_v53  ;;  %v2719_v16 = vsub.f32 %v7617_v51, %v7979_v62  ;;  %v9964_v58 = vld [vmem:[#allocation127_spill] sm:$0xff]  ;;  %v9965_v53 = vld [vmem:[#allocation130_spill] sm:$0xff] }
 0x289   :  { %v2720_v18 = vsub.f32 %v7621_v27, %v7985_v59  ;;  %3228 = vpow2.f32 %v2772_v30  ;;  %v2780_v2 = vmul.f32 1.442695, %v2711_v57  ;;  %v2722_v44 = vsub.f32 %v9963_v19, %v7873_v4  ;;  %v9966_v27 = vld [vmem:[#allocation131_spill] sm:$0xff]  ;;  %v9967_v57 = vld [vmem:[#allocation129_spill] sm:$0xff] }
 0x28a   :  { %v2723_v11 = vsub.f32 %v9964_v58, %v7875_v47  ;;  %3230 = vpow2.f32 %v2774_v41  ;;  %v2782_v48 = vmul.f32 1.442695, %v2712_v7  ;;  %v2721_v35 = vsub.f32 %v9939_v10, %v7997_v25  ;;  %v9968_v58 = vld [vmem:[#allocation132_spill] sm:$0xff]  ;;  %v9969_v7 = vld [vmem:[#allocation133_spill] sm:$0xff] }
 0x28b   :  { %v2724_v6 = vsub.f32 %v9965_v53, %v7879_v29  ;;  %3232 = vpow2.f32 %v2776_v0  ;;  %v2784_v51 = vmul.f32 1.442695, %v2713_v37  ;;  %v2725_v30 = vsub.f32 %v9966_v27, %v7881_v20 }
 0x28c   :  { %v2726_v23 = vsub.f32 %v9967_v57, %v7891_v8  ;;  %3234 = vpow2.f32 %v2778_v17  ;;  %v2786_v19 = vmul.f32 1.442695, %v2714_v21  ;;  %v2727_v41 = vsub.f32 %v9968_v58, %v7899_v52  ;;  %v9974_v21 = vld [vmem:[#allocation83_spill] sm:$0xff]  ;;  %v9979_v58 = vld [vmem:[#allocation41_spill] sm:$0xff]  ;;  %v9980_v57 = vld [vmem:[#allocation134_spill] sm:$0xff] }
 0x28d   :  { %v2728_v5 = vsub.f32 %v9969_v7, %v7907_v56  ;;  %3236 = vpow2.f32 %v2780_v2  ;;  %v2788_v10 = vmul.f32 1.442695, %v2715_v12  ;;  %v2790_v53 = vmul.f32 1.442695, %v2716_v31  ;;  %v9976_v7 = vld [vmem:[#allocation67_spill] sm:$0xff] }
 0x28e   :  { %3238 = vpow2.f32 %v2782_v48  ;;  %v2792_v27 = vmul.f32 1.442695, %v2717_v1  ;;  %v2794_v0 = vmul.f32 1.442695, %v2718_v55  ;;  %v2796_v17 = vmul.f32 1.442695, %v2719_v16 }
 0x28f   :  { %3240 = vpow2.f32 %v2784_v51  ;;  %v9971_v51 = vld [vmem:[#allocation156_spill] sm:$0xff]  ;;  %v2798_v12 = vmul.f32 1.442695, %v2720_v18  ;;  %v2800_v16 = vmul.f32 1.442695, %v2721_v35  ;;  %v9998_v48 = vsub.f32 %v7661_v61, %v7949_v49 }
 0x290   :  { %3242 = vpow2.f32 %v2786_v19  ;;  %v9973_v55 = vld [vmem:[#allocation160_spill] sm:$0xff]  ;;  %v2802_v18 = vmul.f32 1.442695, %v2722_v44  ;;  %v2804_v35 = vmul.f32 1.442695, %v2723_v11  ;;  %v10002_v2 = vsub.f32 %v7665_v13, %v7957_v54 }
 0x291   :  { %3244 = vpow2.f32 %v2788_v10  ;;  %v2806_v44 = vmul.f32 1.442695, %v2724_v6  ;;  %v2808_v11 = vmul.f32 1.442695, %v2725_v30  ;;  %v2810_v6 = vmul.f32 1.442695, %v2726_v23 }
 0x292   :  { %v8041_v37 = vpop.eup %3226  ;;  %3246 = vpow2.f32 %v2790_v53  ;;  %v2812_v30 = vmul.f32 1.442695, %v2727_v41  ;;  %v2814_v23 = vmul.f32 1.442695, %v2728_v5  ;;  %v9994_v41 = vsub.f32 %v7657_v45, %v7943_v33  ;;  %v9997_v5 = vld [vmem:[#allocation86_spill] sm:$0xff]  ;;  %v10005_v61 = vld [vmem:[#allocation64_spill] sm:$0xff] }
 0x293   :  { %9970 = vst [vmem:[#allocation17_spill] sm:$0xff] %v8041_v37  ;;  %v8047_v19 = vpop.eup %3228  ;;  %3248 = vpow2.f32 %v2792_v27  ;;  %v9993_v37 = vld [vmem:[#allocation159_spill] sm:$0xff]  ;;  %v10006_v31 = vsub.f32 %v7669_v28, %v7963_v46  ;;  %v2764_v13 = vsub.f32 %v9947_v63, %v7963_v46  ;;  %v2766_v28 = vsub.f32 %v7821_v14, %v7977_v24 }
 0x294   :  { %9972 = vst [vmem:[#allocation141_spill] sm:$0xff] %v8047_v19  ;;  %v8053_v10 = vpop.eup %3230  ;;  %3250 = vpow2.f32 %v2794_v0  ;;  %v9986_v19 = vld [vmem:[#allocation45_spill] sm:$0xff]  ;;  %v2767_v63 = vsub.f32 %v7845_v42, %v7979_v62  ;;  %v10012_v42 = vsub.f32 %v9940_v9, %v7997_v25 }
 0x295   :  { %9975 = vst [vmem:[#allocation19_spill] sm:$0xff] %v8053_v10  ;;  %v8059_v53 = vpop.eup %3232  ;;  %3252 = vpow2.f32 %v2796_v17  ;;  %v9983_v10 = vld [vmem:[#allocation157_spill] sm:$0xff] }
 0x296   :  { %9977 = vst [vmem:[#allocation10_spill] sm:$0xff] %v8059_v53  ;;  %v8065_v27 = vpop.eup %3234  ;;  %3254 = vpow2.f32 %v2798_v12  ;;  %v9982_v53 = vld [vmem:[#allocation152_spill] sm:$0xff]  ;;  %v2832_v14 = vmul.f32 1.442695, %v10012_v42  ;;  %v10016_v42 = vsub.f32 %v9976_v7, %v7881_v20 }
 0x297   :  { %9978 = vst [vmem:[#allocation140_spill] sm:$0xff] %v8065_v27  ;;  %v8071_v0 = vpop.eup %3236  ;;  %3256 = vpow2.f32 %v2800_v16  ;;  %v9985_v27 = vld [vmem:[#allocation85_spill] sm:$0xff] }
 0x298   :  { %9981 = vst [vmem:[#allocation18_spill] sm:$0xff] %v8071_v0  ;;  %v8077_v17 = vpop.eup %3238  ;;  %3258 = vpow2.f32 %v2802_v18  ;;  %v9988_v0 = vld [vmem:[#allocation49_spill] sm:$0xff]  ;;  %v2840_v9 = vmul.f32 1.442695, %v10016_v42  ;;  %v10021_v42 = vsub.f32 %v9980_v57, %v7949_v49 }
 0x299   :  { %9984 = vst [vmem:[#allocation15_spill] sm:$0xff] %v8077_v17  ;;  %v8083_v12 = vpop.eup %3240  ;;  %3260 = vpow2.f32 %v2804_v35  ;;  %v9990_v17 = vld [vmem:[#allocation46_spill] sm:$0xff]  ;;  %v2816_v35 = vmul.f32 1.442695, %v9994_v41  ;;  %v10001_v41 = vld [vmem:[#allocation135_spill] sm:$0xff] }
 0x29a   :  { %9987 = vst [vmem:[#allocation7_spill] sm:$0xff] %v8083_v12  ;;  %v8089_v16 = vpop.eup %3242  ;;  %3262 = vpow2.f32 %v2806_v44 }
 0x29b   :  { %9989 = vst [vmem:[#allocation35_spill] sm:$0xff] %v8089_v16  ;;  %v8095_v18 = vpop.eup %3244  ;;  %3264 = vpow2.f32 %v2808_v11 }
 0x29c   :  { %9991 = vst [vmem:[#allocation24_spill] sm:$0xff] %v8095_v18  ;;  %v8104_v16 = vpop.eup %3246  ;;  %3266 = vpow2.f32 %v2810_v6  ;;  %v2818_v18 = vmul.f32 1.442695, %v9998_v48  ;;  %v10004_v6 = vld [vmem:[#allocation38_spill] sm:$0xff] }
 0x29d   :  { %9995 = vst [vmem:[#allocation36_spill] sm:$0xff] %v8104_v16  ;;  %v8113_v12 = vpop.eup %3248  ;;  %3268 = vpow2.f32 %v2812_v30  ;;  %v2820_v16 = vmul.f32 1.442695, %v10002_v2  ;;  %v2761_v44 = vsub.f32 %v10004_v6, %v7943_v33  ;;  %v10007_v30 = vld [vmem:[#allocation53_spill] sm:$0xff]  ;;  %v10008_v2 = vsub.f32 %v7673_v50, %v7971_v34 }
 0x29e   :  { %9999 = vst [vmem:[#allocation37_spill] sm:$0xff] %v8113_v12  ;;  %v8122_v1 = vpop.eup %3250  ;;  %3270 = vpow2.f32 %v2814_v23  ;;  %v2822_v12 = vmul.f32 1.442695, %v10006_v31  ;;  %v2763_v45 = vsub.f32 %v10007_v30, %v7957_v54  ;;  %v2765_v23 = vsub.f32 %v9948_v22, %v7971_v34 }
 0x29f   :  { %10003 = vst [vmem:[#allocation144_spill] sm:$0xff] %v8122_v1  ;;  %v8131_v11 = vpop.eup %3252  ;;  %3272 = vpow2.f32 %v2816_v35  ;;  %v2824_v6 = vmul.f32 1.442695, %v10008_v2  ;;  %v10009_v31 = vsub.f32 %v7677_v39, %v7977_v24  ;;  %v2768_v50 = vsub.f32 %v7857_v32, %v7985_v59 }
 0x2a0   :  { %v8140_v1 = vpop.eup %3254  ;;  %3274 = vpow2.f32 %v2818_v18  ;;  %v10010_v22 = vsub.f32 %v7681_v60, %v7979_v62  ;;  %v2769_v18 = vsub.f32 %v7867_v43, %v7997_v25  ;;  %v10011_v39 = vsub.f32 %v7685_v3, %v7985_v59 }
 0x2a1   :  { %v2826_v30 = vmul.f32 1.442695, %v10009_v31  ;;  %v8149_v48 = vpop.eup %3256  ;;  %3276 = vpow2.f32 %v2820_v16  ;;  %v10013_v60 = vsub.f32 %v9971_v51, %v7873_v4 }
 0x2a2   :  { %v2828_v35 = vmul.f32 1.442695, %v10010_v22  ;;  %v8158_v2 = vpop.eup %3258  ;;  %3278 = vpow2.f32 %v2822_v12  ;;  %v2830_v31 = vmul.f32 1.442695, %v10011_v39  ;;  %v10014_v22 = vsub.f32 %v9973_v55, %v7875_v47 }
 0x2a3   :  { %v8168_v32 = vpop.eup %3260  ;;  %3280 = vpow2.f32 %v2824_v6  ;;  %v2834_v16 = vmul.f32 1.442695, %v10013_v60  ;;  %v10015_v12 = vsub.f32 %v9974_v21, %v7879_v29  ;;  %v10017_v6 = vsub.f32 %v7709_v36, %v7891_v8 }
 0x2a4   :  { %v2836_v43 = vmul.f32 1.442695, %v10014_v22  ;;  %v8179_v39 = vpop.eup %3262  ;;  %3282 = vpow2.f32 %v2826_v30  ;;  %v10018_v60 = vsub.f32 %v7713_v40, %v7899_v52  ;;  %v10019_v21 = vsub.f32 %v7717_v38, %v7907_v56 }
 0x2a5   :  { %v2838_v3 = vmul.f32 1.442695, %v10015_v12  ;;  %v2842_v51 = vmul.f32 1.442695, %v10017_v6  ;;  %v8190_v22 = vpop.eup %3264  ;;  %3284 = vpow2.f32 %v2828_v35  ;;  %v10020_v30 = vsub.f32 %v9979_v58, %v7943_v33 }
 0x2a6   :  { %v2844_v55 = vmul.f32 1.442695, %v10018_v60  ;;  %v2846_v12 = vmul.f32 1.442695, %v10019_v21  ;;  %v2850_v36 = vmul.f32 1.442695, %v10021_v42  ;;  %v8201_v6 = vpop.eup %3266  ;;  %3286 = vpow2.f32 %v2830_v31 }
 0x2a7   :  { %v2848_v7 = vmul.f32 1.442695, %v10020_v30  ;;  %v10022_v40 = vsub.f32 %v9982_v53, %v7957_v54  ;;  %v10023_v35 = vsub.f32 %v9983_v10, %v7963_v46  ;;  %v10024_v21 = vsub.f32 %v9985_v27, %v7971_v34  ;;  %v8212_v30 = vpop.eup %3268  ;;  %v10042_v53 = vld [vmem:[#allocation141_spill] sm:$0xff]  ;;  %v10044_v34 = vld [vmem:[#allocation10_spill] sm:$0xff] }
 0x2a8   :  { %3288 = vpow2.f32 %v2832_v14  ;;  %v10025_v42 = vsub.f32 %v9986_v19, %v7977_v24  ;;  %v10026_v31 = vsub.f32 %v9988_v0, %v7979_v62  ;;  %v8229_v27 = vpop.eup %3270  ;;  %v10028_v14 = vsub.f32 %v9949_v26, %v7997_v25  ;;  %v10030_v0 = vld [vmem:[#allocation153_spill] sm:$0xff] }
 0x2a9   :  { %v2852_v60 = vmul.f32 1.442695, %v10022_v40  ;;  %v2854_v38 = vmul.f32 1.442695, %v10023_v35  ;;  %v2856_v58 = vmul.f32 1.442695, %v10024_v21  ;;  %v10027_v35 = vsub.f32 %v9945_v15, %v7985_v59  ;;  %v8246_v15 = vpop.eup %3272 }
 0x2aa   :  { %v8217_v57 = vmul.f32 1.442695, %v10025_v42  ;;  %v8222_v40 = vmul.f32 1.442695, %v10026_v31  ;;  %3290 = vpow2.f32 %v2834_v16  ;;  %v8234_v21 = vmul.f32 1.442695, %v10028_v14 }
 0x2ab   :  { %v8227_v10 = vmul.f32 1.442695, %v10027_v35  ;;  %v10029_v19 = vsub.f32 %v9990_v17, %v7873_v4  ;;  %v10031_v31 = vsub.f32 %v10030_v0, %v7875_v47  ;;  %3292 = vpow2.f32 %v2836_v43  ;;  %v10033_v26 = vld [vmem:[#allocation69_spill] sm:$0xff]  ;;  %v8263_v0 = vpop.eup %3274 }
 0x2ac   :  { %v10032_v16 = vsub.f32 %v9993_v37, %v7879_v29  ;;  %v10034_v14 = vsub.f32 %v10033_v26, %v7881_v20  ;;  %v10035_v17 = vsub.f32 %v9997_v5, %v7891_v8  ;;  %3294 = vpow2.f32 %v2838_v3 }
 0x2ad   :  { %v8239_v42 = vmul.f32 1.442695, %v10029_v19  ;;  %v8244_v62 = vmul.f32 1.442695, %v10031_v31  ;;  %v10036_v31 = vld [vmem:[#allocation70_spill] sm:$0xff]  ;;  %v10038_v37 = vsub.f32 %v10001_v41, %v7907_v56  ;;  %3296 = vpow2.f32 %v2840_v9 }
 0x2ae   :  { %v8251_v35 = vmul.f32 1.442695, %v10032_v16  ;;  %v8256_v25 = vmul.f32 1.442695, %v10034_v14  ;;  %v8261_v19 = vmul.f32 1.442695, %v10035_v17  ;;  %v10037_v43 = vsub.f32 %v10036_v31, %v7899_v52  ;;  %v8277_v14 = vpop.eup %3276 }
 0x2af   :  { %v8273_v16 = vmul.f32 1.442695, %v10038_v37  ;;  %v8275_v26 = vmul.f32 1.442695, %v2761_v44  ;;  %v10039_v5 = vsub.f32 %v10005_v61, %v7949_v49  ;;  %v8284_v3 = vmul.f32 1.442695, %v2763_v45 }
 0x2b0   :  { %v8268_v59 = vmul.f32 1.442695, %v10037_v43  ;;  %v8286_v31 = vmul.f32 1.442695, %v2764_v13  ;;  %v8288_v43 = vpop.eup %3278  ;;  %3298 = vpow2.f32 %v2842_v51  ;;  %v8290_v41 = vmul.f32 1.442695, %v2765_v23 }
 0x2b1   :  { %v8282_v17 = vmul.f32 1.442695, %v10039_v5  ;;  %v8292_v37 = vmul.f32 1.442695, %v2766_v28  ;;  %v8294_v44 = vmul.f32 1.442695, %v2767_v63  ;;  %v3281_v24 = vpop.eup %3280  ;;  %3300 = vpow2.f32 %v2844_v55 }
 0x2b2   :  { %v8296_v9 = vmul.f32 1.442695, %v2768_v50  ;;  %v8298_v61 = vmul.f32 1.442695, %v2769_v18  ;;  %v10041_v5 = vld [vmem:[#allocation17_spill] sm:$0xff]  ;;  %v3283_v13 = vpop.eup %3282  ;;  %3302 = vpow2.f32 %v2846_v12  ;;  %v2905_v51 = vsel %vm147_vm0, %v10042_v53, 0.0 }
 0x2b3   :  { %v2898_v45 = vsel %vm147_vm0, %v10041_v5, 0.0  ;;  %v10043_v23 = vld [vmem:[#allocation19_spill] sm:$0xff]  ;;  %v2919_v63 = vsel %vm147_vm0, %v10044_v34, 0.0  ;;  %v3285_v46 = vpop.eup %3284  ;;  %3304 = vpow2.f32 %v2848_v7  ;;  %v10045_v50 = vld [vmem:[#allocation140_spill] sm:$0xff]  ;;  %v10046_v55 = vld [vmem:[#allocation18_spill] sm:$0xff] }
 0x2b4   :  { %10040 = vst [vmem:[#allocation145_spill] sm:$0xff] %v8298_v61  ;;  %v2912_v28 = vsel %vm147_vm0, %v10043_v23, 0.0  ;;  %v2926_v18 = vsel %vm147_vm0, %v10045_v50, 0.0  ;;  %v2933_v54 = vsel %vm147_vm0, %v10046_v55, 0.0  ;;  %v10047_v5 = vld [vmem:[#allocation15_spill] sm:$0xff]  ;;  %v3287_v49 = vpop.eup %3286  ;;  %3306 = vpow2.f32 %v2850_v36  ;;  %v10050_v34 = vld [vmem:[#allocation24_spill] sm:$0xff] }
 0x2b5   :  { %v2940_v12 = vsel %vm147_vm0, %v10047_v5, 0.0  ;;  %v10048_v53 = vld [vmem:[#allocation7_spill] sm:$0xff]  ;;  %v2961_v7 = vsel %vm147_vm0, %v10050_v34, 0.0  ;;  %v3289_v52 = vpop.eup %3288  ;;  %3308 = vpow2.f32 %v2852_v60  ;;  %v10051_v50 = vld [vmem:[#allocation36_spill] sm:$0xff]  ;;  %v10052_v55 = vld [vmem:[#allocation37_spill] sm:$0xff]  ;;  %v2989_v60 = vsel %vm147_vm0, %v8131_v11, 0.0 }
 0x2b6   :  { %v2947_v33 = vsel %vm147_vm0, %v10048_v53, 0.0  ;;  %v10049_v23 = vld [vmem:[#allocation35_spill] sm:$0xff]  ;;  %v2968_v8 = vsel %vm147_vm0, %v10051_v50, 0.0  ;;  %v2975_v20 = vsel %vm147_vm0, %v10052_v55, 0.0  ;;  %v10053_v5 = vld [vmem:[#allocation144_spill] sm:$0xff]  ;;  %v3291_v29 = vpop.eup %3290  ;;  %3310 = vpow2.f32 %v2854_v38 }
 0x2b7   :  { %v2954_v56 = vsel %vm147_vm0, %v10049_v23, 0.0  ;;  %v2982_v36 = vsel %vm147_vm0, %v10053_v5, 0.0  ;;  %v2899_v53 = vsel %vm147_vm0, %v8158_v2, 0.0  ;;  %v2906_v23 = vsel %vm147_vm0, %v8168_v32, 0.0  ;;  %v3293_v34 = vpop.eup %3292 }
 0x2b8   :  { %3312 = vpow2.f32 %v2856_v58  ;;  %v2913_v50 = vsel %vm147_vm0, %v8179_v39, 0.0  ;;  %v2920_v55 = vsel %vm147_vm0, %v8190_v22, 0.0  ;;  %v2927_v38 = vsel %vm147_vm0, %v8201_v6, 0.0  ;;  %v3295_v5 = vpop.eup %3294 }
 0x2b9   :  { %3314 = vpow2.f32 %v8217_v57  ;;  %v2934_v32 = vsel %vm147_vm0, %v8212_v30, 0.0  ;;  %v2996_v11 = vsel %vm147_vm0, %v8140_v1, 0.0  ;;  %v3003_v2 = vsel %vm147_vm0, %v8149_v48, 0.0  ;;  %v3297_v58 = vpop.eup %3296 }
 0x2ba   :  { %3316 = vpow2.f32 %v8222_v40  ;;  %v2900_v39 = vadd.f32 %v2899_v53, %v2898_v45  ;;  %v2907_v22 = vadd.f32 %v2906_v23, %v2905_v51  ;;  %v2941_v6 = vsel %vm147_vm0, %v8229_v27, 0.0  ;;  %v3299_v47 = vpop.eup %3298 }
 0x2bb   :  { %3318 = vpow2.f32 %v8227_v10  ;;  %v2914_v57 = vadd.f32 %v2913_v50, %v2912_v28  ;;  %v2921_v4 = vadd.f32 %v2920_v55, %v2919_v63  ;;  %v2928_v30 = vadd.f32 %v2927_v38, %v2926_v18  ;;  %v3301_v61 = vpop.eup %3300 }
 0x2bc   :  { %3320 = vpow2.f32 %v8234_v21  ;;  %v2935_v1 = vadd.f32 %v2934_v32, %v2933_v54  ;;  %v2948_v48 = vsel %vm147_vm0, %v8246_v15, 0.0  ;;  %v2955_v40 = vsel %vm147_vm0, %v8263_v0, 0.0  ;;  %v3303_v45 = vpop.eup %3302 }
 0x2bd   :  { %3322 = vpow2.f32 %v8239_v42  ;;  %v2942_v27 = vadd.f32 %v2941_v6, %v2940_v12  ;;  %v2962_v10 = vsel %vm147_vm0, %v8277_v14, 0.0  ;;  %v2969_v51 = vsel %vm147_vm0, %v8288_v43, 0.0  ;;  %v3305_v28 = vpop.eup %3304 }
 0x2be   :  { %3324 = vpow2.f32 %v8244_v62  ;;  %v2976_v54 = vsel %vm147_vm0, %v3281_v24, 0.0  ;;  %v2983_v21 = vsel %vm147_vm0, %v3283_v13, 0.0  ;;  %v2990_v15 = vsel %vm147_vm0, %v3285_v46, 0.0  ;;  %v3307_v0 = vpop.eup %3306 }
 0x2bf   :  { %3326 = vpow2.f32 %v8251_v35  ;;  %v2949_v42 = vadd.f32 %v2948_v48, %v2947_v33  ;;  %v2956_v63 = vadd.f32 %v2955_v40, %v2954_v56  ;;  %v2997_v18 = vsel %vm147_vm0, %v3287_v49, 0.0  ;;  %v3309_v14 = vpop.eup %3308  ;;  %v10054_v40 = vld [vmem:[#allocation145_spill] sm:$0xff] }
 0x2c0   :  { %3328 = vpow2.f32 %v8256_v25  ;;  %v2963_v43 = vadd.f32 %v2962_v10, %v2961_v7  ;;  %v8366_v12 = vadd.f32 %v2969_v51, %v2968_v8  ;;  %v3004_v62 = vsel %vm147_vm0, %v3289_v52, 0.0  ;;  %v3311_v24 = vpop.eup %3310 }
 0x2c1   :  { %3330 = vpow2.f32 %v8261_v19  ;;  %v8370_v13 = vadd.f32 %v2976_v54, %v2975_v20  ;;  %v8372_v46 = vadd.f32 %v2983_v21, %v2982_v36  ;;  %v8374_v35 = vadd.f32 %v2990_v15, %v2989_v60 }
 0x2c2   :  { %v3313_v56 = vpop.eup %3312  ;;  %3332 = vpow2.f32 %v8268_v59  ;;  %v2901_v49 = vsel %vm147_vm0, %v3291_v29, 0.0  ;;  %v2908_v33 = vsel %vm147_vm0, %v3293_v34, 0.0  ;;  %v8379_v8 = vadd.f32 %v2997_v18, %v2996_v11 }
 0x2c3   :  { %v3315_v25 = vpop.eup %3314  ;;  %3334 = vpow2.f32 %v8273_v16  ;;  %v2915_v52 = vsel %vm147_vm0, %v3295_v5, 0.0  ;;  %v2922_v20 = vsel %vm147_vm0, %v3297_v58, 0.0  ;;  %v8384_v19 = vadd.f32 %v3004_v62, %v3003_v2 }
 0x2c4   :  { %v8386_v7 = vpop.eup %3316  ;;  %3336 = vpow2.f32 %v8275_v26  ;;  %v2929_v59 = vsel %vm147_vm0, %v3299_v47, 0.0  ;;  %v2936_v29 = vsel %vm147_vm0, %v3301_v61, 0.0  ;;  %v2943_v36 = vsel %vm147_vm0, %v3303_v45, 0.0 }
 0x2c5   :  { %v8392_v53 = vpop.eup %3318  ;;  %3338 = vpow2.f32 %v8282_v17  ;;  %v2902_v16 = vadd.f32 %v2901_v49, %v2900_v39  ;;  %v2909_v23 = vadd.f32 %v2908_v33, %v2907_v22  ;;  %v2950_v60 = vsel %vm147_vm0, %v3305_v28, 0.0 }
 0x2c6   :  { %v8396_v34 = vpop.eup %3320  ;;  %3340 = vpow2.f32 %v8284_v3  ;;  %v2916_v50 = vadd.f32 %v2915_v52, %v2914_v57  ;;  %v2923_v26 = vadd.f32 %v2922_v20, %v2921_v4  ;;  %v2957_v47 = vsel %vm147_vm0, %v3307_v0, 0.0 }
 0x2c7   :  { %v3323_v55 = vpop.eup %3322  ;;  %3342 = vpow2.f32 %v8286_v31  ;;  %v2930_v61 = vadd.f32 %v2929_v59, %v2928_v30  ;;  %v2937_v38 = vadd.f32 %v2936_v29, %v2935_v1  ;;  %v2944_v5 = vadd.f32 %v2943_v36, %v2942_v27 }
 0x2c8   :  { %v3325_v32 = vpop.eup %3324  ;;  %3344 = vpow2.f32 %v8290_v41  ;;  %v2903_v17 = vsel %vm147_vm0, %v3323_v55, 0.0  ;;  %v2951_v11 = vadd.f32 %v2950_v60, %v2949_v42  ;;  %v2964_v2 = vsel %vm147_vm0, %v3309_v14, 0.0 }
 0x2c9   :  { %v3327_v58 = vpop.eup %3326  ;;  %3346 = vpow2.f32 %v8292_v37  ;;  %v2904_v4 = vadd.f32 %v2903_v17, %v2902_v16  ;;  %v2910_v3 = vsel %vm147_vm0, %v3325_v32, 0.0  ;;  %v2958_v39 = vadd.f32 %v2957_v47, %v2956_v63 }
 0x2ca   :  { %v3329_v22 = vpop.eup %3328  ;;  %3348 = vpow2.f32 %v8294_v44  ;;  %v2911_v31 = vadd.f32 %v2910_v3, %v2909_v23  ;;  %v2917_v6 = vsel %vm147_vm0, %v3327_v58, 0.0  ;;  %v2971_v41 = vsel %vm147_vm0, %v3311_v24, 0.0 }
 0x2cb   :  { %v3331_v57 = vpop.eup %3330  ;;  %3350 = vpow2.f32 %v8296_v9  ;;  %v2918_v30 = vadd.f32 %v2917_v6, %v2916_v50  ;;  %v2924_v1 = vsel %vm147_vm0, %v3329_v22, 0.0  ;;  %v2965_v48 = vadd.f32 %v2964_v2, %v2963_v43 }
 0x2cc   :  { %v3333_v37 = vpop.eup %3332  ;;  %3352 = vpow2.f32 %v10054_v40  ;;  %v2925_v45 = vadd.f32 %v2924_v1, %v2923_v26  ;;  %v2931_v27 = vsel %vm147_vm0, %v3331_v57, 0.0  ;;  %v2978_v44 = vsel %vm147_vm0, %v3313_v56, 0.0  ;;  %v10056_v57 = vld [vmem:[#allocation56_spill] sm:$0xff]  ;;  %v10058_v40 = vld [vmem:[#allocation79_spill] sm:$0xff] }
 0x2cd   :  { %v3335_v10 = vpop.eup %3334  ;;  %v2932_v51 = vadd.f32 %v2931_v27, %v2930_v61  ;;  %v2938_v28 = vsel %vm147_vm0, %v3333_v37, 0.0  ;;  %v2972_v54 = vadd.f32 %v2971_v41, %v8366_v12  ;;  %3354 = vlog2.f32 %v2904_v4 }
 0x2ce   :  { %v3337_v9 = vpop.eup %3336  ;;  %v2939_v21 = vadd.f32 %v2938_v28, %v2937_v38  ;;  %v2945_v15 = vsel %vm147_vm0, %v3335_v10, 0.0  ;;  %v2985_v0 = vsel %vm147_vm0, %v3315_v25, 0.0  ;;  %3356 = vlog2.f32 %v2911_v31  ;;  %v10059_v10 = vld [vmem:[#allocation11_spill] sm:$0xff]  ;;  %v10060_v28 = vld [vmem:[#allocation80_spill] sm:$0xff] }
 0x2cf   :  { %v3339_v42 = vpop.eup %3338  ;;  %v2946_v63 = vadd.f32 %v2945_v15, %v2944_v5  ;;  %v2952_v18 = vsel %vm147_vm0, %v3337_v9, 0.0  ;;  %v2979_v14 = vadd.f32 %v2978_v44, %v8370_v13  ;;  %3358 = vlog2.f32 %v2918_v30  ;;  %v10061_v15 = vld [vmem:[#allocation59_spill] sm:$0xff] }
 0x2d0   :  { %v3341_v43 = vpop.eup %3340  ;;  %v2953_v62 = vadd.f32 %v2952_v18, %v2951_v11  ;;  %v2959_v24 = vsel %vm147_vm0, %v3339_v42, 0.0  ;;  %v2992_v12 = vsel %vm147_vm0, %v8386_v7, 0.0  ;;  %3360 = vlog2.f32 %v2925_v45  ;;  %v10062_v42 = vld [vmem:[#allocation122_spill] sm:$0xff] }
 0x2d1   :  { %v3343_v56 = vpop.eup %3342  ;;  %v2960_v49 = vadd.f32 %v2959_v24, %v2958_v39  ;;  %v2966_v33 = vsel %vm147_vm0, %v3341_v43, 0.0  ;;  %v2986_v25 = vadd.f32 %v2985_v0, %v8372_v46  ;;  %3362 = vlog2.f32 %v2932_v51  ;;  %v10055_v39 = vld [vmem:[#allocation55_spill] sm:$0xff] }
 0x2d2   :  { %v3345_v52 = vpop.eup %3344  ;;  %v2967_v20 = vadd.f32 %v2966_v33, %v2965_v48  ;;  %v2973_v13 = vsel %vm147_vm0, %v3343_v56, 0.0  ;;  %v2999_v59 = vsel %vm147_vm0, %v8392_v53, 0.0  ;;  %3364 = vlog2.f32 %v2939_v21  ;;  %v10057_v48 = vld [vmem:[#allocation57_spill] sm:$0xff] }
 0x2d3   :  { %v3347_v29 = vpop.eup %3346  ;;  %v2974_v36 = vadd.f32 %v2973_v13, %v2972_v54  ;;  %v2980_v7 = vsel %vm147_vm0, %v3345_v52, 0.0  ;;  %v2993_v16 = vadd.f32 %v2992_v12, %v8374_v35  ;;  %3366 = vlog2.f32 %v2946_v63  ;;  %v10064_v12 = vld [vmem:[#allocation81_spill] sm:$0xff]  ;;  %v10065_v52 = vld [vmem:[#allocation58_spill] sm:$0xff] }
 0x2d4   :  { %v3349_v23 = vpop.eup %3348  ;;  %v2981_v60 = vadd.f32 %v2980_v7, %v2979_v14  ;;  %v2987_v46 = vsel %vm147_vm0, %v3347_v29, 0.0  ;;  %v3006_v50 = vsel %vm147_vm0, %v8396_v34, 0.0  ;;  %3368 = vlog2.f32 %v2953_v62  ;;  %v10063_v62 = vld [vmem:[#allocation61_spill] sm:$0xff] }
 0x2d5   :  { %v3351_v26 = vpop.eup %3350  ;;  %v2994_v47 = vsel %vm147_vm0, %v3349_v23, 0.0  ;;  %v3000_v53 = vadd.f32 %v2999_v59, %v8379_v8  ;;  %3370 = vlog2.f32 %v2960_v49  ;;  %v2988_v61 = vadd.f32 %v2987_v46, %v2986_v25 }
 0x2d6   :  { %v3353_v55 = vpop.eup %3352  ;;  %v3001_v38 = vsel %vm147_vm0, %v3351_v26, 0.0  ;;  %3372 = vlog2.f32 %v2967_v20  ;;  %v3007_v5 = vadd.f32 %v3006_v50, %v8384_v19  ;;  %v2995_v17 = vadd.f32 %v2994_v47, %v2993_v16  ;;  %v10067_v16 = vld [vmem:[#allocation129_spill] sm:$0xff]  ;;  %v10068_v47 = vld [vmem:[#allocation63_spill] sm:$0xff] }
 0x2d7   :  { %v3355_v35 = vpop.eup %3354  ;;  %3374 = vlog2.f32 %v2974_v36  ;;  %v3008_v34 = vsel %vm147_vm0, %v3353_v55, 0.0  ;;  %v3002_v58 = vadd.f32 %v3001_v38, %v3000_v53  ;;  %v10066_v36 = vld [vmem:[#allocation25_spill] sm:$0xff]  ;;  %v10069_v55 = vld [vmem:[#allocation132_spill] sm:$0xff] }
 0x2d8   :  { %v3357_v32 = vpop.eup %3356  ;;  %v3011_v11 = vmul.f32 0.6931472, %v3355_v35  ;;  %3376 = vlog2.f32 %v2981_v60  ;;  %v3009_v6 = vadd.f32 %v3008_v34, %v3007_v5  ;;  %v10070_v5 = vld [vmem:[#allocation133_spill] sm:$0xff] }
 0x2d9   :  { %v3359_v2 = vpop.eup %3358  ;;  %v3013_v4 = vmul.f32 0.6931472, %v3357_v32  ;;  %3378 = vlog2.f32 %v2988_v61 }
 0x2da   :  { %v3361_v8 = vpop.eup %3360  ;;  %v3015_v3 = vmul.f32 0.6931472, %v3359_v2  ;;  %v3042_v22 = vadd.f32 %v3011_v11, %v10055_v39  ;;  %3380 = vlog2.f32 %v2995_v17  ;;  %v10071_v11 = vld [vmem:[#allocation65_spill] sm:$0xff] }
 0x2db   :  { %v3363_v31 = vpop.eup %3362  ;;  %v3017_v41 = vmul.f32 0.6931472, %v3361_v8  ;;  %v3043_v19 = vadd.f32 %v3013_v4, %v10056_v57  ;;  %3382 = vlog2.f32 %v3002_v58  ;;  %v10072_v58 = vld [vmem:[#allocation151_spill] sm:$0xff]  ;;  %v10074_v57 = vld [vmem:[#allocation134_spill] sm:$0xff] }
 0x2dc   :  { %v3365_v30 = vpop.eup %3364  ;;  %v3019_v1 = vmul.f32 0.6931472, %v3363_v31  ;;  %v3044_v37 = vadd.f32 %v3015_v3, %v10057_v48  ;;  %v3090_v45 = vsub.f32 %v3042_v22, %v10058_v40  ;;  %3384 = vlog2.f32 %v3009_v6  ;;  %v10073_v6 = vld [vmem:[#allocation62_spill] sm:$0xff] }
 0x2dd   :  { %v3367_v27 = vpop.eup %3366  ;;  %v3021_v44 = vmul.f32 0.6931472, %v3365_v30  ;;  %v3045_v51 = vadd.f32 %v3017_v41, %v10059_v10  ;;  %v3091_v54 = vsub.f32 %v3043_v19, %v10060_v28  ;;  %v10075_v40 = vld [vmem:[#allocation14_spill] sm:$0xff] }
 0x2de   :  { %v3369_v9 = vpop.eup %3368  ;;  %v3023_v21 = vmul.f32 0.6931472, %v3367_v27  ;;  %v3046_v0 = vadd.f32 %v3019_v1, %v10061_v15  ;;  %v3092_v63 = vsub.f32 %v3044_v37, %v10062_v42  ;;  %v3106_v18 = vsel %vm147_vm0, %v3090_v45, 0.0  ;;  %v10076_v27 = vld [vmem:[#allocation152_spill] sm:$0xff]  ;;  %v10078_v15 = vld [vmem:[#allocation157_spill] sm:$0xff] }
 0x2df   :  { %v3371_v14 = vpop.eup %3370  ;;  %v3025_v43 = vmul.f32 0.6931472, %v3369_v9  ;;  %v3047_v24 = vadd.f32 %v3021_v44, %v10063_v62  ;;  %v3093_v56 = vsub.f32 %v3045_v51, %v10064_v12  ;;  %v3107_v49 = vsel %vm147_vm0, %v3091_v54, 0.0  ;;  %v10077_v9 = vld [vmem:[#allocation138_spill] sm:$0xff]  ;;  %v10080_v62 = vld [vmem:[#allocation85_spill] sm:$0xff] }
 0x2e0   :  { %v3373_v33 = vpop.eup %3372  ;;  %v3027_v25 = vmul.f32 0.6931472, %v3371_v14  ;;  %v3048_v20 = vadd.f32 %v3023_v21, %v10065_v52  ;;  %v3108_v13 = vadd.f32 %v3107_v49, %v3106_v18  ;;  %v3094_v23 = vsub.f32 %v3046_v0, %v10067_v16  ;;  %v10079_v14 = vld [vmem:[#allocation9_spill] sm:$0xff]  ;;  %v10081_v49 = vld [vmem:[#allocation139_spill] sm:$0xff] }
 0x2e1   :  { %v3375_v59 = vpop.eup %3374  ;;  %v3029_v29 = vmul.f32 0.6931472, %v3373_v33  ;;  %v3049_v7 = vadd.f32 %v3025_v43, %v10066_v36  ;;  %v3109_v60 = vsel %vm147_vm0, %v3092_v63, 0.0  ;;  %v3095_v61 = vsub.f32 %v3047_v24, %v10069_v55  ;;  %v10084_v36 = vld [vmem:[#allocation137_spill] sm:$0xff] }
 0x2e2   :  { %v3377_v46 = vpop.eup %3376  ;;  %v3110_v50 = vadd.f32 %v3109_v60, %v3108_v13  ;;  %v3031_v26 = vmul.f32 0.6931472, %v3375_v59  ;;  %v3050_v53 = vadd.f32 %v3027_v25, %v10068_v47  ;;  %v3111_v38 = vsel %vm147_vm0, %v3093_v56, 0.0  ;;  %v10082_v25 = vld [vmem:[#allocation54_spill] sm:$0xff]  ;;  %v10083_v59 = vld [vmem:[#allocation12_spill] sm:$0xff] }
 0x2e3   :  { %v3379_v35 = vpop.eup %3378  ;;  %v3096_v32 = vsub.f32 %v3048_v20, %v10070_v5  ;;  %v3033_v34 = vmul.f32 0.6931472, %v3377_v46  ;;  %v3051_v2 = vadd.f32 %v3029_v29, %v10071_v11  ;;  %v3097_v4 = vsub.f32 %v3049_v7, %v10072_v58  ;;  %v10085_v60 = vld [vmem:[#allocation68_spill] sm:$0xff] }
 0x2e4   :  { %v3112_v17 = vadd.f32 %v3111_v38, %v3110_v50  ;;  %v3113_v8 = vsel %vm147_vm0, %v3094_v23, 0.0  ;;  %v3381_v3 = vpop.eup %3380  ;;  %v3035_v31 = vmul.f32 0.6931472, %v3379_v35  ;;  %v3052_v41 = vadd.f32 %v3031_v26, %v10073_v6  ;;  %v10086_v47 = vld [vmem:[#allocation72_spill] sm:$0xff] }
 0x2e5   :  { %v3383_v22 = vpop.eup %3382  ;;  %v3098_v19 = vsub.f32 %v3050_v53, %v10074_v57  ;;  %v3115_v30 = vsel %vm147_vm0, %v3095_v61, 0.0  ;;  %v3117_v48 = vsel %vm147_vm0, %v3096_v32, 0.0  ;;  %v3037_v37 = vmul.f32 0.6931472, %v3381_v3 }
 0x2e6   :  { %v3114_v39 = vadd.f32 %v3113_v8, %v3112_v17  ;;  %v3053_v45 = vadd.f32 %v3033_v34, %v10075_v40  ;;  %v3099_v44 = vsub.f32 %v3051_v2, %v10076_v27  ;;  %v3119_v10 = vsel %vm147_vm0, %v3097_v4, 0.0  ;;  %v3385_v51 = vpop.eup %3384 }
 0x2e7   :  { %v3039_v54 = vmul.f32 0.6931472, %v3383_v22  ;;  %v3054_v21 = vadd.f32 %v3035_v31, %v10077_v9  ;;  %v3100_v0 = vsub.f32 %v3052_v41, %v10078_v15  ;;  %v3121_v42 = vsel %vm147_vm0, %v3098_v19, 0.0 }
 0x2e8   :  { %v3116_v1 = vadd.f32 %v3115_v30, %v3114_v39  ;;  %v3041_v18 = vmul.f32 0.6931472, %v3385_v51  ;;  %v3055_v43 = vadd.f32 %v3037_v37, %v10079_v14  ;;  %v3101_v24 = vsub.f32 %v3053_v45, %v10080_v62 }
 0x2e9   :  { %v3123_v12 = vsel %vm147_vm0, %v3099_v44, 0.0  ;;  %v3056_v33 = vadd.f32 %v3039_v54, %v10081_v49  ;;  %v3102_v52 = vsub.f32 %v3054_v21, %v10082_v25  ;;  %v3125_v20 = vsel %vm147_vm0, %v3100_v0, 0.0 }
 0x2ea   :  { %v3118_v28 = vadd.f32 %v3117_v48, %v3116_v1  ;;  %v3057_v29 = vadd.f32 %v3041_v18, %v10083_v59  ;;  %v3103_v7 = vsub.f32 %v3055_v43, %v10084_v36  ;;  %v3127_v16 = vsel %vm147_vm0, %v3101_v24, 0.0 }
 0x2eb   :  { %v3104_v46 = vsub.f32 %v3056_v33, %v10085_v60  ;;  %v3129_v50 = vsel %vm147_vm0, %v3102_v52, 0.0 }
 0x2ec   :  { %v3120_v63 = vadd.f32 %v3119_v10, %v3118_v28  ;;  %v3105_v53 = vsub.f32 %v3057_v29, %v10086_v47  ;;  %v3131_v55 = vsel %vm147_vm0, %v3103_v7, 0.0 }
 0x2ed   :  { %v3133_v38 = vsel %vm147_vm0, %v3104_v46, 0.0 }
 0x2ee   :  { %v3122_v56 = vadd.f32 %v3121_v42, %v3120_v63  ;;  %v3135_v5 = vsel %vm147_vm0, %v3105_v53, 0.0 }
 0x2f0   :  { %v3124_v13 = vadd.f32 %v3123_v12, %v3122_v56 }
 0x2f2   :  { %v3126_v23 = vadd.f32 %v3125_v20, %v3124_v13 }
 0x2f4   :  { %v3128_v26 = vadd.f32 %v3127_v16, %v3126_v23 }
 0x2f6   :  { %v3130_v61 = vadd.f32 %v3129_v50, %v3128_v26 }
 0x2f8   :  { %v3132_v35 = vadd.f32 %v3131_v55, %v3130_v61 }
 0x2fa   :  { %v3134_v32 = vadd.f32 %v3133_v38, %v3132_v35 }
 0x2fc   :  { %v3136_v17 = vadd.f32 %v3135_v5, %v3134_v32 }
 0x2fe   :  { %3138 = vst.msk [vmem:[#allocation4] sm:$0x1] %vm3137_vm1, %v3136_v17 }
 0x2ff   :  { %3461 = shalt.err (!%p3458_p4)
}
 0x300   :  { %s3462_s5 = scalar_lea.hbm %s8501_s3, 16 }
 0x301   :  { %p3463_p5 = scmp.ne.s32.totalorder %s8501_s3, %s3462_s5  ;;  %p3466_p6 = scmp.lt.u32.totalorder %s3462_s5, %s8501_s3 }
 0x303   :  { %p3468_p7 = pnand %p3466_p6, %p3463_p5 }
 0x305   :  { %3471 = shalt.err (!%p3468_p7)
}
 0x306   :  { %3148 = dma.vmem_to_hbm [thread:$0]  %s3146_s1, 16, %s8501_s3, [#allocation5]  }
 0x307   :  { %3472 = dma.done.wait [#allocation5], 16  }
 0x308   :  { %3473 = vsyncadd [#allocation5], 4294967280 }
 0x309   :  { %3152 = vsyncpa [#allocation5], 1 }

</bundles_post_ra>
